<compile_context>
chip_gen: v5e
topology: v5e:2x2
jax: 0.10.0
libtpu: 0.0.40
codegen_flags: <defaults>
</compile_context>

<pallas_src>
import functools

import numpy as np
import jax
import jax.numpy as jnp
from jax.experimental import pallas as pl
from jax.experimental.pallas import tpu as pltpu

LANES = 128


# ----------------------------------------------------------------------------
# Fused kernel: conv1+pool1+sigmoid, conv2+pool2+sigmoid, FC1+ReLU, FC2
# ----------------------------------------------------------------------------
def _cnn_kernel(x4_ref, w1_ref, b1_ref, w2_ref, b2_ref,
                wf1_ref, bf1_ref, wf2_ref, bf2_ref, out_ref, *, tb):
    f32, bf16 = jnp.float32, jnp.bfloat16
    r1 = 8 * tb      # rows per conv1 output-row class: (q, b), q in [0,8)
    r2 = 6 * tb      # rows per conv2 output-row class: (p, b), p in [0,6)

    # ---- Conv1 + MaxPool1 + Sigmoid -----------------------------------------
    # x4_ref[0, m] holds padded-input rows h with h % 4 == m, rows ordered
    # (h // 4, batch), lanes = w*3 + ci (108 of 128 used).
    x_cls = [x4_ref[0, m] for m in range(4)]                    # (9*tb, 128) bf16

    def in_rows(t):          # padded-input rows 4q + t, q = 0..7  (t in [0,8))
        off = (t // 4) * tb
        return x_cls[t % 4][off:off + r1, :]

    lhs1 = [in_rows(t) for t in range(8)]

    a1 = []                  # pooled conv1 activations, pi1 = 2q + parity
    for par in range(2):
        m = None
        for di in range(2):
            s = 2 * par + di                # conv1 output rows i1 = 4q + s
            acc = jnp.dot(lhs1[s], w1_ref[0], preferred_element_type=f32)
            for kh in range(1, 5):
                acc = acc + jnp.dot(lhs1[s + kh], w1_ref[kh],
                                    preferred_element_type=f32)
            ms = jnp.maximum(acc[:, :LANES], acc[:, LANES:])    # pool over dj
            m = ms if m is None else jnp.maximum(m, ms)         # pool over di
        z = m + b1_ref[...]                                     # bias after max
        a1.append(pl.reciprocal(1.0 + jnp.exp(-z), approx=True).astype(bf16))

    # ---- Conv2 + MaxPool2 + Sigmoid -----------------------------------------
    def p1_rows(t):          # pool1 rows 2p + t, p = 0..5  (t in [0,6))
        off = (t // 2) * tb
        return a1[t % 2][off:off + r2, :]

    lhs2 = [p1_rows(t) for t in range(6)]

    pooled2 = None
    for par in range(2):                    # conv2 output rows i2 = 2p + par
        acc = jnp.dot(lhs2[par], w2_ref[0], preferred_element_type=f32)
        for kh in range(1, 5):
            acc = acc + jnp.dot(lhs2[par + kh], w2_ref[kh],
                                preferred_element_type=f32)
        ms = jnp.maximum(acc[:, :LANES], acc[:, LANES:])        # pool over dj
        pooled2 = ms if pooled2 is None else jnp.maximum(pooled2, ms)
    a2 = pl.reciprocal(1.0 + jnp.exp(-(pooled2 + b2_ref[...])), approx=True)
    a2 = a2.astype(bf16)     # rows (pi2, b), lanes pj2*16 + co (96 used)

    # ---- Flatten + FC1 + ReLU (6 K-packed dots) ------------------------------
    h = jnp.dot(a2[0:tb, :], wf1_ref[0], preferred_element_type=f32)
    for p in range(1, 6):
        h = h + jnp.dot(a2[p * tb:(p + 1) * tb, :], wf1_ref[p],
                        preferred_element_type=f32)
    h = jnp.maximum(h + bf1_ref[...], 0.0).astype(bf16)

    # ---- FC2 ------------------------------------------------------------------
    out = jnp.dot(h, wf2_ref[...], preferred_element_type=f32) + bf2_ref[...]
    out_ref[...] = out.astype(out_ref.dtype)


# ----------------------------------------------------------------------------
# Host-side packing (layout glue on tiny tensors)
# ----------------------------------------------------------------------------
def _pack_conv_weight(w, in_width, n_pj):
    """Banded conv weight: (5, 128, 256) bf16.

    lane_in  = w_in * n_ci + ci
    lane_out = half * 128 + pj * n_co + co,  output column j = 2*pj + half
    value    = w[co, ci, kh, w_in - j] if 0 <= w_in - j < 5 else 0
    """
    n_co, n_ci, n_kh, n_kw = w.shape
    w_ = np.arange(in_width).reshape(-1, 1, 1, 1)
    a_ = np.arange(2).reshape(1, -1, 1, 1)
    p_ = np.arange(n_pj).reshape(1, 1, -1, 1)
    k_ = np.arange(n_kw).reshape(1, 1, 1, -1)
    sel = jnp.asarray((w_ == 2 * p_ + a_ + k_).astype(np.float32))
    band = jnp.einsum('wapk,ocgk->gwcapo', sel, w)        # (kh,w,ci,half,pj,co)
    band = band.reshape(n_kh, in_width * n_ci, 2, n_pj * n_co)
    band = jnp.pad(band, ((0, 0), (0, LANES - in_width * n_ci),
                          (0, 0), (0, LANES - n_pj * n_co)))
    return band.reshape(n_kh, LANES, 2 * LANES).astype(jnp.bfloat16)


def _stage_input(x, tb):
    """Padded input staged as (G, 4, 9*tb, 128) bf16.

    [g, m, r*tb + b, w*3 + ci] = x_padded[g*tb + b, ci, 4r + m, w]
    """
    B = x.shape[0]
    g = B // tb
    xpad = jnp.pad(x, ((0, 0), (0, 0), (2, 2), (2, 2)))          # (B,3,36,36)
    xt = xpad.transpose(0, 2, 3, 1).reshape(B, 36, 36 * 3)       # (b,h,w*3+ci)
    xt = jnp.pad(xt, ((0, 0), (0, 0), (0, LANES - 108)))
    xt = xt.reshape(g, tb, 9, 4, LANES).transpose(0, 3, 2, 1, 4)
    return xt.reshape(g, 4, 9 * tb, LANES).astype(jnp.bfloat16)


def cnn_forward(x, params, *, tb=None):
    w1, b1, w2, b2, wf1, bf1, wf2, bf2 = params
    B = x.shape[0]
    if tb is None:
        tb = B if B <= 8 else 8
    assert B % tb == 0, "batch must be divisible by the batch tile"
    g = B // tb
    f32, bf16 = jnp.float32, jnp.bfloat16

    x4 = _stage_input(x, tb)                                     # (g,4,9*tb,128)
    w1p = _pack_conv_weight(w1, 36, 16)                          # (5,128,256)
    w2p = _pack_conv_weight(w2, 16, 6)                           # (5,128,256)
    b1p = jnp.pad(jnp.tile(b1, 16), (0, LANES - 96)).reshape(1, LANES)
    b2p = jnp.pad(jnp.tile(b2, 6), (0, LANES - 96)).reshape(1, LANES)
    # FC1: feature = co*36 + pi2*6 + pj2 ; K lanes per dot = pj2*16 + co
    wf1r = wf1.reshape(120, 16, 6, 6).transpose(2, 3, 1, 0).reshape(6, 96, 120)
    wf1p = jnp.pad(wf1r, ((0, 0), (0, 32), (0, 8))).astype(bf16)  # (6,128,128)
    bf1p = jnp.pad(bf1, (0, 8)).reshape(1, LANES)
    wf2p = jnp.pad(wf2.T, ((0, 8), (0, 28))).astype(bf16)         # (128,128)
    bf2p = jnp.pad(bf2, (0, 28)).reshape(1, LANES)

    out = pl.pallas_call(
        functools.partial(_cnn_kernel, tb=tb),
        out_shape=jax.ShapeDtypeStruct((B, LANES), f32),
        grid=(g,),
        in_specs=[
            pl.BlockSpec((1, 4, 9 * tb, LANES), lambda i: (i, 0, 0, 0)),
            pl.BlockSpec((5, LANES, 2 * LANES), lambda i: (0, 0, 0)),
            pl.BlockSpec((1, LANES), lambda i: (0, 0)),
            pl.BlockSpec((5, LANES, 2 * LANES), lambda i: (0, 0, 0)),
            pl.BlockSpec((1, LANES), lambda i: (0, 0)),
            pl.BlockSpec((6, LANES, LANES), lambda i: (0, 0, 0)),
            pl.BlockSpec((1, LANES), lambda i: (0, 0)),
            pl.BlockSpec((LANES, LANES), lambda i: (0, 0)),
            pl.BlockSpec((1, LANES), lambda i: (0, 0)),
        ],
        out_specs=pl.BlockSpec((tb, LANES), lambda i: (i, 0)),
        compiler_params=pltpu.CompilerParams(
            dimension_semantics=("parallel",),
            vmem_limit_bytes=32 * 1024 * 1024),
    )(x4, w1p, b1p, w2p, b2p, wf1p, bf1p, wf2p, bf2p)
    return out[:, :100]


# ----------------------------------------------------------------------------
# Deterministic parameter init (PyTorch-style uniform(-1/sqrt(fan_in), ...))
# ----------------------------------------------------------------------------
def init_params(key):
    def u(k, shape, fan_in):
        bound = 1.0 / jnp.sqrt(jnp.float32(fan_in))
        return jax.random.uniform(k, shape, jnp.float32, -bound, bound)

    ks = jax.random.split(key, 8)
    w1 = u(ks[0], (6, 3, 5, 5), 3 * 25)
    b1 = u(ks[1], (6,), 3 * 25)
    w2 = u(ks[2], (16, 6, 5, 5), 6 * 25)
    b2 = u(ks[3], (16,), 6 * 25)
    wf1 = u(ks[4], (120, 576), 576)
    bf1 = u(ks[5], (120,), 576)
    wf2 = u(ks[6], (100, 120), 120)
    bf2 = u(ks[7], (100,), 120)
    return (w1, b1, w2, b2, wf1, bf1, wf2, bf2)


# ----------------------------------------------------------------------------
# Pure-JAX reference (sanity check against the Pallas path)
# ----------------------------------------------------------------------------
def cnn_reference(x, params):
    w1, b1, w2, b2, wf1, bf1, wf2, bf2 = params
    dn = ("NCHW", "OIHW", "NCHW")
    y = jax.lax.conv_general_dilated(x, w1, (1, 1), ((2, 2), (2, 2)),
                                     dimension_numbers=dn) + b1[None, :, None, None]
    y = 1.0 / (1.0 + jnp.exp(-y))
    y = jax.lax.reduce_window(y, -jnp.inf, jax.lax.max,
                              (1, 1, 2, 2), (1, 1, 2, 2), "VALID")
    y = jax.lax.conv_general_dilated(y, w2, (1, 1), ((0, 0), (0, 0)),
                                     dimension_numbers=dn) + b2[None, :, None, None]
    y = 1.0 / (1.0 + jnp.exp(-y))
    y = jax.lax.reduce_window(y, -jnp.inf, jax.lax.max,
                              (1, 1, 2, 2), (1, 1, 2, 2), "VALID")
    y = y.reshape(y.shape[0], -1)
    y = jnp.maximum(y @ wf1.T + bf1, 0.0)
    return y @ wf2.T + bf2


if __name__ == "__main__":
    key = jax.random.PRNGKey(0)
    k_params, k_x = jax.random.split(key)

    params = init_params(k_params)
    # Input must be 32x32 so the Flatten produces 16*6*6 = 576 features.
    x = jax.random.normal(k_x, (2, 3, 32, 32), dtype=jnp.float32)

    fwd = jax.jit(cnn_forward)
    out = jax.block_until_ready(fwd(x, params))

    assert out.shape == (2, 100), out.shape
    ref = cnn_reference(x, params)
    assert jnp.allclose(out, ref, rtol=5e-2, atol=5e-2), (
        "mismatch vs JAX reference, max abs err = %f"
        % float(jnp.max(jnp.abs(out - ref))))

    print("KERNEL_OK")
</pallas_src>

<mosaic_0001>
module attributes {stable_mosaic.version = 11 : i64} {
  func.func @_cnn_kernel(%arg0: i32, %arg1: memref<1x4x18x128xbf16, #tpu.memory_space<vmem>>, %arg2: memref<5x128x256xbf16, #tpu.memory_space<vmem>>, %arg3: memref<1x128xf32, #tpu.memory_space<vmem>>, %arg4: memref<5x128x256xbf16, #tpu.memory_space<vmem>>, %arg5: memref<1x128xf32, #tpu.memory_space<vmem>>, %arg6: memref<6x128x128xbf16, #tpu.memory_space<vmem>>, %arg7: memref<1x128xf32, #tpu.memory_space<vmem>>, %arg8: memref<128x128xbf16, #tpu.memory_space<vmem>>, %arg9: memref<1x128xf32, #tpu.memory_space<vmem>>, %arg10: memref<2x128xf32, #tpu.memory_space<vmem>>) attributes {dimension_semantics = [#tpu.dimension_semantics<parallel>], iteration_bounds = array<i64: 1>, scalar_prefetch = 0 : i64, scratch_operands = 0 : i64, tpu.core_type = #tpu.core_type<tc>, window_params = [{transform_indices = @transform_0, window_bounds = array<i64: 1, 4, 18, 128>}, {pipeline_mode = #tpu.pipeline_mode<synchronous>, transform_indices = @transform_1, window_bounds = array<i64: 5, 128, 256>}, {pipeline_mode = #tpu.pipeline_mode<synchronous>, transform_indices = @transform_2, window_bounds = array<i64: 1, 128>}, {pipeline_mode = #tpu.pipeline_mode<synchronous>, transform_indices = @transform_3, window_bounds = array<i64: 5, 128, 256>}, {pipeline_mode = #tpu.pipeline_mode<synchronous>, transform_indices = @transform_4, window_bounds = array<i64: 1, 128>}, {pipeline_mode = #tpu.pipeline_mode<synchronous>, transform_indices = @transform_5, window_bounds = array<i64: 6, 128, 128>}, {pipeline_mode = #tpu.pipeline_mode<synchronous>, transform_indices = @transform_6, window_bounds = array<i64: 1, 128>}, {pipeline_mode = #tpu.pipeline_mode<synchronous>, transform_indices = @transform_7, window_bounds = array<i64: 128, 128>}, {pipeline_mode = #tpu.pipeline_mode<synchronous>, transform_indices = @transform_8, window_bounds = array<i64: 1, 128>}, {transform_indices = @transform_9, window_bounds = array<i64: 2, 128>}]} {
    %c0 = arith.constant 0 : index
    %c0_0 = arith.constant 0 : index
    %c0_1 = arith.constant 0 : index
    %c0_2 = arith.constant 0 : index
    %0 = vector.load %arg1[%c0, %c0_0, %c0_1, %c0_2] : memref<1x4x18x128xbf16, #tpu.memory_space<vmem>>, vector<1x1x18x128xbf16>
    %1 = vector.shape_cast %0 : vector<1x1x18x128xbf16> to vector<18x128xbf16>
    %c0_3 = arith.constant 0 : index
    %c1 = arith.constant 1 : index
    %c0_4 = arith.constant 0 : index
    %c0_5 = arith.constant 0 : index
    %2 = vector.load %arg1[%c0_3, %c1, %c0_4, %c0_5] : memref<1x4x18x128xbf16, #tpu.memory_space<vmem>>, vector<1x1x18x128xbf16>
    %3 = vector.shape_cast %2 : vector<1x1x18x128xbf16> to vector<18x128xbf16>
    %c0_6 = arith.constant 0 : index
    %c2 = arith.constant 2 : index
    %c0_7 = arith.constant 0 : index
    %c0_8 = arith.constant 0 : index
    %4 = vector.load %arg1[%c0_6, %c2, %c0_7, %c0_8] : memref<1x4x18x128xbf16, #tpu.memory_space<vmem>>, vector<1x1x18x128xbf16>
    %5 = vector.shape_cast %4 : vector<1x1x18x128xbf16> to vector<18x128xbf16>
    %c0_9 = arith.constant 0 : index
    %c3 = arith.constant 3 : index
    %c0_10 = arith.constant 0 : index
    %c0_11 = arith.constant 0 : index
    %6 = vector.load %arg1[%c0_9, %c3, %c0_10, %c0_11] : memref<1x4x18x128xbf16, #tpu.memory_space<vmem>>, vector<1x1x18x128xbf16>
    %7 = vector.shape_cast %6 : vector<1x1x18x128xbf16> to vector<18x128xbf16>
    %8 = vector.extract_strided_slice %1 {offsets = [0, 0], sizes = [16, 128], strides = [1, 1]} : vector<18x128xbf16> to vector<16x128xbf16>
    %9 = vector.extract_strided_slice %3 {offsets = [0, 0], sizes = [16, 128], strides = [1, 1]} : vector<18x128xbf16> to vector<16x128xbf16>
    %10 = vector.extract_strided_slice %5 {offsets = [0, 0], sizes = [16, 128], strides = [1, 1]} : vector<18x128xbf16> to vector<16x128xbf16>
    %11 = vector.extract_strided_slice %7 {offsets = [0, 0], sizes = [16, 128], strides = [1, 1]} : vector<18x128xbf16> to vector<16x128xbf16>
    %12 = vector.extract_strided_slice %1 {offsets = [2, 0], sizes = [16, 128], strides = [1, 1]} : vector<18x128xbf16> to vector<16x128xbf16>
    %13 = vector.extract_strided_slice %3 {offsets = [2, 0], sizes = [16, 128], strides = [1, 1]} : vector<18x128xbf16> to vector<16x128xbf16>
    %14 = vector.extract_strided_slice %5 {offsets = [2, 0], sizes = [16, 128], strides = [1, 1]} : vector<18x128xbf16> to vector<16x128xbf16>
    %15 = vector.extract_strided_slice %7 {offsets = [2, 0], sizes = [16, 128], strides = [1, 1]} : vector<18x128xbf16> to vector<16x128xbf16>
    %c0_12 = arith.constant 0 : index
    %c0_13 = arith.constant 0 : index
    %c0_14 = arith.constant 0 : index
    %16 = vector.load %arg2[%c0_12, %c0_13, %c0_14] : memref<5x128x256xbf16, #tpu.memory_space<vmem>>, vector<1x128x256xbf16>
    %17 = vector.shape_cast %16 : vector<1x128x256xbf16> to vector<128x256xbf16>
    %cst = arith.constant dense<0.000000e+00> : vector<16x256xf32>
    %18 = tpu.matmul %8, %17, %cst {dimension_numbers = #tpu.dot_dimension_numbers<[1], [0], [0], [1], [0, 0, 1, 1], [], []>} : vector<16x128xbf16>, vector<128x256xbf16>, vector<16x256xf32> -> vector<16x256xf32>
    %c1_15 = arith.constant 1 : index
    %c0_16 = arith.constant 0 : index
    %c0_17 = arith.constant 0 : index
    %19 = vector.load %arg2[%c1_15, %c0_16, %c0_17] : memref<5x128x256xbf16, #tpu.memory_space<vmem>>, vector<1x128x256xbf16>
    %20 = vector.shape_cast %19 : vector<1x128x256xbf16> to vector<128x256xbf16>
    %cst_18 = arith.constant dense<0.000000e+00> : vector<16x256xf32>
    %21 = tpu.matmul %9, %20, %cst_18 {dimension_numbers = #tpu.dot_dimension_numbers<[1], [0], [0], [1], [0, 0, 1, 1], [], []>} : vector<16x128xbf16>, vector<128x256xbf16>, vector<16x256xf32> -> vector<16x256xf32>
    %22 = arith.addf %18, %21 : vector<16x256xf32>
    %c2_19 = arith.constant 2 : index
    %c0_20 = arith.constant 0 : index
    %c0_21 = arith.constant 0 : index
    %23 = vector.load %arg2[%c2_19, %c0_20, %c0_21] : memref<5x128x256xbf16, #tpu.memory_space<vmem>>, vector<1x128x256xbf16>
    %24 = vector.shape_cast %23 : vector<1x128x256xbf16> to vector<128x256xbf16>
    %cst_22 = arith.constant dense<0.000000e+00> : vector<16x256xf32>
    %25 = tpu.matmul %10, %24, %cst_22 {dimension_numbers = #tpu.dot_dimension_numbers<[1], [0], [0], [1], [0, 0, 1, 1], [], []>} : vector<16x128xbf16>, vector<128x256xbf16>, vector<16x256xf32> -> vector<16x256xf32>
    %26 = arith.addf %22, %25 : vector<16x256xf32>
    %c3_23 = arith.constant 3 : index
    %c0_24 = arith.constant 0 : index
    %c0_25 = arith.constant 0 : index
    %27 = vector.load %arg2[%c3_23, %c0_24, %c0_25] : memref<5x128x256xbf16, #tpu.memory_space<vmem>>, vector<1x128x256xbf16>
    %28 = vector.shape_cast %27 : vector<1x128x256xbf16> to vector<128x256xbf16>
    %cst_26 = arith.constant dense<0.000000e+00> : vector<16x256xf32>
    %29 = tpu.matmul %11, %28, %cst_26 {dimension_numbers = #tpu.dot_dimension_numbers<[1], [0], [0], [1], [0, 0, 1, 1], [], []>} : vector<16x128xbf16>, vector<128x256xbf16>, vector<16x256xf32> -> vector<16x256xf32>
    %30 = arith.addf %26, %29 : vector<16x256xf32>
    %c4 = arith.constant 4 : index
    %c0_27 = arith.constant 0 : index
    %c0_28 = arith.constant 0 : index
    %31 = vector.load %arg2[%c4, %c0_27, %c0_28] : memref<5x128x256xbf16, #tpu.memory_space<vmem>>, vector<1x128x256xbf16>
    %32 = vector.shape_cast %31 : vector<1x128x256xbf16> to vector<128x256xbf16>
    %cst_29 = arith.constant dense<0.000000e+00> : vector<16x256xf32>
    %33 = tpu.matmul %12, %32, %cst_29 {dimension_numbers = #tpu.dot_dimension_numbers<[1], [0], [0], [1], [0, 0, 1, 1], [], []>} : vector<16x128xbf16>, vector<128x256xbf16>, vector<16x256xf32> -> vector<16x256xf32>
    %34 = arith.addf %30, %33 : vector<16x256xf32>
    %35 = vector.extract_strided_slice %34 {offsets = [0, 0], sizes = [16, 128], strides = [1, 1]} : vector<16x256xf32> to vector<16x128xf32>
    %36 = vector.extract_strided_slice %34 {offsets = [0, 128], sizes = [16, 128], strides = [1, 1]} : vector<16x256xf32> to vector<16x128xf32>
    %37 = arith.maximumf %35, %36 : vector<16x128xf32>
    %c0_30 = arith.constant 0 : index
    %c0_31 = arith.constant 0 : index
    %c0_32 = arith.constant 0 : index
    %38 = vector.load %arg2[%c0_30, %c0_31, %c0_32] : memref<5x128x256xbf16, #tpu.memory_space<vmem>>, vector<1x128x256xbf16>
    %39 = vector.shape_cast %38 : vector<1x128x256xbf16> to vector<128x256xbf16>
    %cst_33 = arith.constant dense<0.000000e+00> : vector<16x256xf32>
    %40 = tpu.matmul %9, %39, %cst_33 {dimension_numbers = #tpu.dot_dimension_numbers<[1], [0], [0], [1], [0, 0, 1, 1], [], []>} : vector<16x128xbf16>, vector<128x256xbf16>, vector<16x256xf32> -> vector<16x256xf32>
    %c1_34 = arith.constant 1 : index
    %c0_35 = arith.constant 0 : index
    %c0_36 = arith.constant 0 : index
    %41 = vector.load %arg2[%c1_34, %c0_35, %c0_36] : memref<5x128x256xbf16, #tpu.memory_space<vmem>>, vector<1x128x256xbf16>
    %42 = vector.shape_cast %41 : vector<1x128x256xbf16> to vector<128x256xbf16>
    %cst_37 = arith.constant dense<0.000000e+00> : vector<16x256xf32>
    %43 = tpu.matmul %10, %42, %cst_37 {dimension_numbers = #tpu.dot_dimension_numbers<[1], [0], [0], [1], [0, 0, 1, 1], [], []>} : vector<16x128xbf16>, vector<128x256xbf16>, vector<16x256xf32> -> vector<16x256xf32>
    %44 = arith.addf %40, %43 : vector<16x256xf32>
    %c2_38 = arith.constant 2 : index
    %c0_39 = arith.constant 0 : index
    %c0_40 = arith.constant 0 : index
    %45 = vector.load %arg2[%c2_38, %c0_39, %c0_40] : memref<5x128x256xbf16, #tpu.memory_space<vmem>>, vector<1x128x256xbf16>
    %46 = vector.shape_cast %45 : vector<1x128x256xbf16> to vector<128x256xbf16>
    %cst_41 = arith.constant dense<0.000000e+00> : vector<16x256xf32>
    %47 = tpu.matmul %11, %46, %cst_41 {dimension_numbers = #tpu.dot_dimension_numbers<[1], [0], [0], [1], [0, 0, 1, 1], [], []>} : vector<16x128xbf16>, vector<128x256xbf16>, vector<16x256xf32> -> vector<16x256xf32>
    %48 = arith.addf %44, %47 : vector<16x256xf32>
    %c3_42 = arith.constant 3 : index
    %c0_43 = arith.constant 0 : index
    %c0_44 = arith.constant 0 : index
    %49 = vector.load %arg2[%c3_42, %c0_43, %c0_44] : memref<5x128x256xbf16, #tpu.memory_space<vmem>>, vector<1x128x256xbf16>
    %50 = vector.shape_cast %49 : vector<1x128x256xbf16> to vector<128x256xbf16>
    %cst_45 = arith.constant dense<0.000000e+00> : vector<16x256xf32>
    %51 = tpu.matmul %12, %50, %cst_45 {dimension_numbers = #tpu.dot_dimension_numbers<[1], [0], [0], [1], [0, 0, 1, 1], [], []>} : vector<16x128xbf16>, vector<128x256xbf16>, vector<16x256xf32> -> vector<16x256xf32>
    %52 = arith.addf %48, %51 : vector<16x256xf32>
    %c4_46 = arith.constant 4 : index
    %c0_47 = arith.constant 0 : index
    %c0_48 = arith.constant 0 : index
    %53 = vector.load %arg2[%c4_46, %c0_47, %c0_48] : memref<5x128x256xbf16, #tpu.memory_space<vmem>>, vector<1x128x256xbf16>
    %54 = vector.shape_cast %53 : vector<1x128x256xbf16> to vector<128x256xbf16>
    %cst_49 = arith.constant dense<0.000000e+00> : vector<16x256xf32>
    %55 = tpu.matmul %13, %54, %cst_49 {dimension_numbers = #tpu.dot_dimension_numbers<[1], [0], [0], [1], [0, 0, 1, 1], [], []>} : vector<16x128xbf16>, vector<128x256xbf16>, vector<16x256xf32> -> vector<16x256xf32>
    %56 = arith.addf %52, %55 : vector<16x256xf32>
    %57 = vector.extract_strided_slice %56 {offsets = [0, 0], sizes = [16, 128], strides = [1, 1]} : vector<16x256xf32> to vector<16x128xf32>
    %58 = vector.extract_strided_slice %56 {offsets = [0, 128], sizes = [16, 128], strides = [1, 1]} : vector<16x256xf32> to vector<16x128xf32>
    %59 = arith.maximumf %57, %58 : vector<16x128xf32>
    %60 = arith.maximumf %37, %59 : vector<16x128xf32>
    %c0_50 = arith.constant 0 : index
    %c0_51 = arith.constant 0 : index
    %61 = vector.load %arg3[%c0_50, %c0_51] : memref<1x128xf32, #tpu.memory_space<vmem>>, vector<1x128xf32>
    %62 = vector.broadcast %61 : vector<1x128xf32> to vector<16x128xf32>
    %63 = arith.addf %60, %62 : vector<16x128xf32>
    %cst_52 = arith.constant 0.000000e+00 : f32
    %64 = vector.broadcast %cst_52 : f32 to vector<16x128xf32>
    %65 = arith.subf %64, %63 : vector<16x128xf32>
    %66 = math.exp %65 : vector<16x128xf32>
    %cst_53 = arith.constant 1.000000e+00 : f32
    %67 = vector.broadcast %cst_53 : f32 to vector<16x128xf32>
    %68 = arith.addf %67, %66 : vector<16x128xf32>
    %69 = tpu.reciprocal %68 {approx = true} : vector<16x128xf32> -> vector<16x128xf32>
    %70 = arith.truncf %69 : vector<16x128xf32> to vector<16x128xbf16>
    %c0_54 = arith.constant 0 : index
    %c0_55 = arith.constant 0 : index
    %c0_56 = arith.constant 0 : index
    %71 = vector.load %arg2[%c0_54, %c0_55, %c0_56] : memref<5x128x256xbf16, #tpu.memory_space<vmem>>, vector<1x128x256xbf16>
    %72 = vector.shape_cast %71 : vector<1x128x256xbf16> to vector<128x256xbf16>
    %cst_57 = arith.constant dense<0.000000e+00> : vector<16x256xf32>
    %73 = tpu.matmul %10, %72, %cst_57 {dimension_numbers = #tpu.dot_dimension_numbers<[1], [0], [0], [1], [0, 0, 1, 1], [], []>} : vector<16x128xbf16>, vector<128x256xbf16>, vector<16x256xf32> -> vector<16x256xf32>
    %c1_58 = arith.constant 1 : index
    %c0_59 = arith.constant 0 : index
    %c0_60 = arith.constant 0 : index
    %74 = vector.load %arg2[%c1_58, %c0_59, %c0_60] : memref<5x128x256xbf16, #tpu.memory_space<vmem>>, vector<1x128x256xbf16>
    %75 = vector.shape_cast %74 : vector<1x128x256xbf16> to vector<128x256xbf16>
    %cst_61 = arith.constant dense<0.000000e+00> : vector<16x256xf32>
    %76 = tpu.matmul %11, %75, %cst_61 {dimension_numbers = #tpu.dot_dimension_numbers<[1], [0], [0], [1], [0, 0, 1, 1], [], []>} : vector<16x128xbf16>, vector<128x256xbf16>, vector<16x256xf32> -> vector<16x256xf32>
    %77 = arith.addf %73, %76 : vector<16x256xf32>
    %c2_62 = arith.constant 2 : index
    %c0_63 = arith.constant 0 : index
    %c0_64 = arith.constant 0 : index
    %78 = vector.load %arg2[%c2_62, %c0_63, %c0_64] : memref<5x128x256xbf16, #tpu.memory_space<vmem>>, vector<1x128x256xbf16>
    %79 = vector.shape_cast %78 : vector<1x128x256xbf16> to vector<128x256xbf16>
    %cst_65 = arith.constant dense<0.000000e+00> : vector<16x256xf32>
    %80 = tpu.matmul %12, %79, %cst_65 {dimension_numbers = #tpu.dot_dimension_numbers<[1], [0], [0], [1], [0, 0, 1, 1], [], []>} : vector<16x128xbf16>, vector<128x256xbf16>, vector<16x256xf32> -> vector<16x256xf32>
    %81 = arith.addf %77, %80 : vector<16x256xf32>
    %c3_66 = arith.constant 3 : index
    %c0_67 = arith.constant 0 : index
    %c0_68 = arith.constant 0 : index
    %82 = vector.load %arg2[%c3_66, %c0_67, %c0_68] : memref<5x128x256xbf16, #tpu.memory_space<vmem>>, vector<1x128x256xbf16>
    %83 = vector.shape_cast %82 : vector<1x128x256xbf16> to vector<128x256xbf16>
    %cst_69 = arith.constant dense<0.000000e+00> : vector<16x256xf32>
    %84 = tpu.matmul %13, %83, %cst_69 {dimension_numbers = #tpu.dot_dimension_numbers<[1], [0], [0], [1], [0, 0, 1, 1], [], []>} : vector<16x128xbf16>, vector<128x256xbf16>, vector<16x256xf32> -> vector<16x256xf32>
    %85 = arith.addf %81, %84 : vector<16x256xf32>
    %c4_70 = arith.constant 4 : index
    %c0_71 = arith.constant 0 : index
    %c0_72 = arith.constant 0 : index
    %86 = vector.load %arg2[%c4_70, %c0_71, %c0_72] : memref<5x128x256xbf16, #tpu.memory_space<vmem>>, vector<1x128x256xbf16>
    %87 = vector.shape_cast %86 : vector<1x128x256xbf16> to vector<128x256xbf16>
    %cst_73 = arith.constant dense<0.000000e+00> : vector<16x256xf32>
    %88 = tpu.matmul %14, %87, %cst_73 {dimension_numbers = #tpu.dot_dimension_numbers<[1], [0], [0], [1], [0, 0, 1, 1], [], []>} : vector<16x128xbf16>, vector<128x256xbf16>, vector<16x256xf32> -> vector<16x256xf32>
    %89 = arith.addf %85, %88 : vector<16x256xf32>
    %90 = vector.extract_strided_slice %89 {offsets = [0, 0], sizes = [16, 128], strides = [1, 1]} : vector<16x256xf32> to vector<16x128xf32>
    %91 = vector.extract_strided_slice %89 {offsets = [0, 128], sizes = [16, 128], strides = [1, 1]} : vector<16x256xf32> to vector<16x128xf32>
    %92 = arith.maximumf %90, %91 : vector<16x128xf32>
    %c0_74 = arith.constant 0 : index
    %c0_75 = arith.constant 0 : index
    %c0_76 = arith.constant 0 : index
    %93 = vector.load %arg2[%c0_74, %c0_75, %c0_76] : memref<5x128x256xbf16, #tpu.memory_space<vmem>>, vector<1x128x256xbf16>
    %94 = vector.shape_cast %93 : vector<1x128x256xbf16> to vector<128x256xbf16>
    %cst_77 = arith.constant dense<0.000000e+00> : vector<16x256xf32>
    %95 = tpu.matmul %11, %94, %cst_77 {dimension_numbers = #tpu.dot_dimension_numbers<[1], [0], [0], [1], [0, 0, 1, 1], [], []>} : vector<16x128xbf16>, vector<128x256xbf16>, vector<16x256xf32> -> vector<16x256xf32>
    %c1_78 = arith.constant 1 : index
    %c0_79 = arith.constant 0 : index
    %c0_80 = arith.constant 0 : index
    %96 = vector.load %arg2[%c1_78, %c0_79, %c0_80] : memref<5x128x256xbf16, #tpu.memory_space<vmem>>, vector<1x128x256xbf16>
    %97 = vector.shape_cast %96 : vector<1x128x256xbf16> to vector<128x256xbf16>
    %cst_81 = arith.constant dense<0.000000e+00> : vector<16x256xf32>
    %98 = tpu.matmul %12, %97, %cst_81 {dimension_numbers = #tpu.dot_dimension_numbers<[1], [0], [0], [1], [0, 0, 1, 1], [], []>} : vector<16x128xbf16>, vector<128x256xbf16>, vector<16x256xf32> -> vector<16x256xf32>
    %99 = arith.addf %95, %98 : vector<16x256xf32>
    %c2_82 = arith.constant 2 : index
    %c0_83 = arith.constant 0 : index
    %c0_84 = arith.constant 0 : index
    %100 = vector.load %arg2[%c2_82, %c0_83, %c0_84] : memref<5x128x256xbf16, #tpu.memory_space<vmem>>, vector<1x128x256xbf16>
    %101 = vector.shape_cast %100 : vector<1x128x256xbf16> to vector<128x256xbf16>
    %cst_85 = arith.constant dense<0.000000e+00> : vector<16x256xf32>
    %102 = tpu.matmul %13, %101, %cst_85 {dimension_numbers = #tpu.dot_dimension_numbers<[1], [0], [0], [1], [0, 0, 1, 1], [], []>} : vector<16x128xbf16>, vector<128x256xbf16>, vector<16x256xf32> -> vector<16x256xf32>
    %103 = arith.addf %99, %102 : vector<16x256xf32>
    %c3_86 = arith.constant 3 : index
    %c0_87 = arith.constant 0 : index
    %c0_88 = arith.constant 0 : index
    %104 = vector.load %arg2[%c3_86, %c0_87, %c0_88] : memref<5x128x256xbf16, #tpu.memory_space<vmem>>, vector<1x128x256xbf16>
    %105 = vector.shape_cast %104 : vector<1x128x256xbf16> to vector<128x256xbf16>
    %cst_89 = arith.constant dense<0.000000e+00> : vector<16x256xf32>
    %106 = tpu.matmul %14, %105, %cst_89 {dimension_numbers = #tpu.dot_dimension_numbers<[1], [0], [0], [1], [0, 0, 1, 1], [], []>} : vector<16x128xbf16>, vector<128x256xbf16>, vector<16x256xf32> -> vector<16x256xf32>
    %107 = arith.addf %103, %106 : vector<16x256xf32>
    %c4_90 = arith.constant 4 : index
    %c0_91 = arith.constant 0 : index
    %c0_92 = arith.constant 0 : index
    %108 = vector.load %arg2[%c4_90, %c0_91, %c0_92] : memref<5x128x256xbf16, #tpu.memory_space<vmem>>, vector<1x128x256xbf16>
    %109 = vector.shape_cast %108 : vector<1x128x256xbf16> to vector<128x256xbf16>
    %cst_93 = arith.constant dense<0.000000e+00> : vector<16x256xf32>
    %110 = tpu.matmul %15, %109, %cst_93 {dimension_numbers = #tpu.dot_dimension_numbers<[1], [0], [0], [1], [0, 0, 1, 1], [], []>} : vector<16x128xbf16>, vector<128x256xbf16>, vector<16x256xf32> -> vector<16x256xf32>
    %111 = arith.addf %107, %110 : vector<16x256xf32>
    %112 = vector.extract_strided_slice %111 {offsets = [0, 0], sizes = [16, 128], strides = [1, 1]} : vector<16x256xf32> to vector<16x128xf32>
    %113 = vector.extract_strided_slice %111 {offsets = [0, 128], sizes = [16, 128], strides = [1, 1]} : vector<16x256xf32> to vector<16x128xf32>
    %114 = arith.maximumf %112, %113 : vector<16x128xf32>
    %115 = arith.maximumf %92, %114 : vector<16x128xf32>
    %c0_94 = arith.constant 0 : index
    %c0_95 = arith.constant 0 : index
    %116 = vector.load %arg3[%c0_94, %c0_95] : memref<1x128xf32, #tpu.memory_space<vmem>>, vector<1x128xf32>
    %117 = vector.broadcast %116 : vector<1x128xf32> to vector<16x128xf32>
    %118 = arith.addf %115, %117 : vector<16x128xf32>
    %cst_96 = arith.constant 0.000000e+00 : f32
    %119 = vector.broadcast %cst_96 : f32 to vector<16x128xf32>
    %120 = arith.subf %119, %118 : vector<16x128xf32>
    %121 = math.exp %120 : vector<16x128xf32>
    %cst_97 = arith.constant 1.000000e+00 : f32
    %122 = vector.broadcast %cst_97 : f32 to vector<16x128xf32>
    %123 = arith.addf %122, %121 : vector<16x128xf32>
    %124 = tpu.reciprocal %123 {approx = true} : vector<16x128xf32> -> vector<16x128xf32>
    %125 = arith.truncf %124 : vector<16x128xf32> to vector<16x128xbf16>
    %126 = vector.extract_strided_slice %70 {offsets = [0, 0], sizes = [12, 128], strides = [1, 1]} : vector<16x128xbf16> to vector<12x128xbf16>
    %127 = vector.extract_strided_slice %125 {offsets = [0, 0], sizes = [12, 128], strides = [1, 1]} : vector<16x128xbf16> to vector<12x128xbf16>
    %128 = vector.extract_strided_slice %70 {offsets = [2, 0], sizes = [12, 128], strides = [1, 1]} : vector<16x128xbf16> to vector<12x128xbf16>
    %129 = vector.extract_strided_slice %125 {offsets = [2, 0], sizes = [12, 128], strides = [1, 1]} : vector<16x128xbf16> to vector<12x128xbf16>
    %130 = vector.extract_strided_slice %70 {offsets = [4, 0], sizes = [12, 128], strides = [1, 1]} : vector<16x128xbf16> to vector<12x128xbf16>
    %131 = vector.extract_strided_slice %125 {offsets = [4, 0], sizes = [12, 128], strides = [1, 1]} : vector<16x128xbf16> to vector<12x128xbf16>
    %c0_98 = arith.constant 0 : index
    %c0_99 = arith.constant 0 : index
    %c0_100 = arith.constant 0 : index
    %132 = vector.load %arg4[%c0_98, %c0_99, %c0_100] : memref<5x128x256xbf16, #tpu.memory_space<vmem>>, vector<1x128x256xbf16>
    %133 = vector.shape_cast %132 : vector<1x128x256xbf16> to vector<128x256xbf16>
    %cst_101 = arith.constant dense<0.000000e+00> : vector<12x256xf32>
    %134 = tpu.matmul %126, %133, %cst_101 {dimension_numbers = #tpu.dot_dimension_numbers<[1], [0], [0], [1], [0, 0, 1, 1], [], []>} : vector<12x128xbf16>, vector<128x256xbf16>, vector<12x256xf32> -> vector<12x256xf32>
    %c1_102 = arith.constant 1 : index
    %c0_103 = arith.constant 0 : index
    %c0_104 = arith.constant 0 : index
    %135 = vector.load %arg4[%c1_102, %c0_103, %c0_104] : memref<5x128x256xbf16, #tpu.memory_space<vmem>>, vector<1x128x256xbf16>
    %136 = vector.shape_cast %135 : vector<1x128x256xbf16> to vector<128x256xbf16>
    %cst_105 = arith.constant dense<0.000000e+00> : vector<12x256xf32>
    %137 = tpu.matmul %127, %136, %cst_105 {dimension_numbers = #tpu.dot_dimension_numbers<[1], [0], [0], [1], [0, 0, 1, 1], [], []>} : vector<12x128xbf16>, vector<128x256xbf16>, vector<12x256xf32> -> vector<12x256xf32>
    %138 = arith.addf %134, %137 : vector<12x256xf32>
    %c2_106 = arith.constant 2 : index
    %c0_107 = arith.constant 0 : index
    %c0_108 = arith.constant 0 : index
    %139 = vector.load %arg4[%c2_106, %c0_107, %c0_108] : memref<5x128x256xbf16, #tpu.memory_space<vmem>>, vector<1x128x256xbf16>
    %140 = vector.shape_cast %139 : vector<1x128x256xbf16> to vector<128x256xbf16>
    %cst_109 = arith.constant dense<0.000000e+00> : vector<12x256xf32>
    %141 = tpu.matmul %128, %140, %cst_109 {dimension_numbers = #tpu.dot_dimension_numbers<[1], [0], [0], [1], [0, 0, 1, 1], [], []>} : vector<12x128xbf16>, vector<128x256xbf16>, vector<12x256xf32> -> vector<12x256xf32>
    %142 = arith.addf %138, %141 : vector<12x256xf32>
    %c3_110 = arith.constant 3 : index
    %c0_111 = arith.constant 0 : index
    %c0_112 = arith.constant 0 : index
    %143 = vector.load %arg4[%c3_110, %c0_111, %c0_112] : memref<5x128x256xbf16, #tpu.memory_space<vmem>>, vector<1x128x256xbf16>
    %144 = vector.shape_cast %143 : vector<1x128x256xbf16> to vector<128x256xbf16>
    %cst_113 = arith.constant dense<0.000000e+00> : vector<12x256xf32>
    %145 = tpu.matmul %129, %144, %cst_113 {dimension_numbers = #tpu.dot_dimension_numbers<[1], [0], [0], [1], [0, 0, 1, 1], [], []>} : vector<12x128xbf16>, vector<128x256xbf16>, vector<12x256xf32> -> vector<12x256xf32>
    %146 = arith.addf %142, %145 : vector<12x256xf32>
    %c4_114 = arith.constant 4 : index
    %c0_115 = arith.constant 0 : index
    %c0_116 = arith.constant 0 : index
    %147 = vector.load %arg4[%c4_114, %c0_115, %c0_116] : memref<5x128x256xbf16, #tpu.memory_space<vmem>>, vector<1x128x256xbf16>
    %148 = vector.shape_cast %147 : vector<1x128x256xbf16> to vector<128x256xbf16>
    %cst_117 = arith.constant dense<0.000000e+00> : vector<12x256xf32>
    %149 = tpu.matmul %130, %148, %cst_117 {dimension_numbers = #tpu.dot_dimension_numbers<[1], [0], [0], [1], [0, 0, 1, 1], [], []>} : vector<12x128xbf16>, vector<128x256xbf16>, vector<12x256xf32> -> vector<12x256xf32>
    %150 = arith.addf %146, %149 : vector<12x256xf32>
    %151 = vector.extract_strided_slice %150 {offsets = [0, 0], sizes = [12, 128], strides = [1, 1]} : vector<12x256xf32> to vector<12x128xf32>
    %152 = vector.extract_strided_slice %150 {offsets = [0, 128], sizes = [12, 128], strides = [1, 1]} : vector<12x256xf32> to vector<12x128xf32>
    %153 = arith.maximumf %151, %152 : vector<12x128xf32>
    %c0_118 = arith.constant 0 : index
    %c0_119 = arith.constant 0 : index
    %c0_120 = arith.constant 0 : index
    %154 = vector.load %arg4[%c0_118, %c0_119, %c0_120] : memref<5x128x256xbf16, #tpu.memory_space<vmem>>, vector<1x128x256xbf16>
    %155 = vector.shape_cast %154 : vector<1x128x256xbf16> to vector<128x256xbf16>
    %cst_121 = arith.constant dense<0.000000e+00> : vector<12x256xf32>
    %156 = tpu.matmul %127, %155, %cst_121 {dimension_numbers = #tpu.dot_dimension_numbers<[1], [0], [0], [1], [0, 0, 1, 1], [], []>} : vector<12x128xbf16>, vector<128x256xbf16>, vector<12x256xf32> -> vector<12x256xf32>
    %c1_122 = arith.constant 1 : index
    %c0_123 = arith.constant 0 : index
    %c0_124 = arith.constant 0 : index
    %157 = vector.load %arg4[%c1_122, %c0_123, %c0_124] : memref<5x128x256xbf16, #tpu.memory_space<vmem>>, vector<1x128x256xbf16>
    %158 = vector.shape_cast %157 : vector<1x128x256xbf16> to vector<128x256xbf16>
    %cst_125 = arith.constant dense<0.000000e+00> : vector<12x256xf32>
    %159 = tpu.matmul %128, %158, %cst_125 {dimension_numbers = #tpu.dot_dimension_numbers<[1], [0], [0], [1], [0, 0, 1, 1], [], []>} : vector<12x128xbf16>, vector<128x256xbf16>, vector<12x256xf32> -> vector<12x256xf32>
    %160 = arith.addf %156, %159 : vector<12x256xf32>
    %c2_126 = arith.constant 2 : index
    %c0_127 = arith.constant 0 : index
    %c0_128 = arith.constant 0 : index
    %161 = vector.load %arg4[%c2_126, %c0_127, %c0_128] : memref<5x128x256xbf16, #tpu.memory_space<vmem>>, vector<1x128x256xbf16>
    %162 = vector.shape_cast %161 : vector<1x128x256xbf16> to vector<128x256xbf16>
    %cst_129 = arith.constant dense<0.000000e+00> : vector<12x256xf32>
    %163 = tpu.matmul %129, %162, %cst_129 {dimension_numbers = #tpu.dot_dimension_numbers<[1], [0], [0], [1], [0, 0, 1, 1], [], []>} : vector<12x128xbf16>, vector<128x256xbf16>, vector<12x256xf32> -> vector<12x256xf32>
    %164 = arith.addf %160, %163 : vector<12x256xf32>
    %c3_130 = arith.constant 3 : index
    %c0_131 = arith.constant 0 : index
    %c0_132 = arith.constant 0 : index
    %165 = vector.load %arg4[%c3_130, %c0_131, %c0_132] : memref<5x128x256xbf16, #tpu.memory_space<vmem>>, vector<1x128x256xbf16>
    %166 = vector.shape_cast %165 : vector<1x128x256xbf16> to vector<128x256xbf16>
    %cst_133 = arith.constant dense<0.000000e+00> : vector<12x256xf32>
    %167 = tpu.matmul %130, %166, %cst_133 {dimension_numbers = #tpu.dot_dimension_numbers<[1], [0], [0], [1], [0, 0, 1, 1], [], []>} : vector<12x128xbf16>, vector<128x256xbf16>, vector<12x256xf32> -> vector<12x256xf32>
    %168 = arith.addf %164, %167 : vector<12x256xf32>
    %c4_134 = arith.constant 4 : index
    %c0_135 = arith.constant 0 : index
    %c0_136 = arith.constant 0 : index
    %169 = vector.load %arg4[%c4_134, %c0_135, %c0_136] : memref<5x128x256xbf16, #tpu.memory_space<vmem>>, vector<1x128x256xbf16>
    %170 = vector.shape_cast %169 : vector<1x128x256xbf16> to vector<128x256xbf16>
    %cst_137 = arith.constant dense<0.000000e+00> : vector<12x256xf32>
    %171 = tpu.matmul %131, %170, %cst_137 {dimension_numbers = #tpu.dot_dimension_numbers<[1], [0], [0], [1], [0, 0, 1, 1], [], []>} : vector<12x128xbf16>, vector<128x256xbf16>, vector<12x256xf32> -> vector<12x256xf32>
    %172 = arith.addf %168, %171 : vector<12x256xf32>
    %173 = vector.extract_strided_slice %172 {offsets = [0, 0], sizes = [12, 128], strides = [1, 1]} : vector<12x256xf32> to vector<12x128xf32>
    %174 = vector.extract_strided_slice %172 {offsets = [0, 128], sizes = [12, 128], strides = [1, 1]} : vector<12x256xf32> to vector<12x128xf32>
    %175 = arith.maximumf %173, %174 : vector<12x128xf32>
    %176 = arith.maximumf %153, %175 : vector<12x128xf32>
    %c0_138 = arith.constant 0 : index
    %c0_139 = arith.constant 0 : index
    %177 = vector.load %arg5[%c0_138, %c0_139] : memref<1x128xf32, #tpu.memory_space<vmem>>, vector<1x128xf32>
    %178 = vector.broadcast %177 : vector<1x128xf32> to vector<12x128xf32>
    %179 = arith.addf %176, %178 : vector<12x128xf32>
    %cst_140 = arith.constant 0.000000e+00 : f32
    %180 = vector.broadcast %cst_140 : f32 to vector<12x128xf32>
    %181 = arith.subf %180, %179 : vector<12x128xf32>
    %182 = math.exp %181 : vector<12x128xf32>
    %cst_141 = arith.constant 1.000000e+00 : f32
    %183 = vector.broadcast %cst_141 : f32 to vector<12x128xf32>
    %184 = arith.addf %183, %182 : vector<12x128xf32>
    %185 = tpu.reciprocal %184 {approx = true} : vector<12x128xf32> -> vector<12x128xf32>
    %186 = arith.truncf %185 : vector<12x128xf32> to vector<12x128xbf16>
    %187 = vector.extract_strided_slice %186 {offsets = [0, 0], sizes = [2, 128], strides = [1, 1]} : vector<12x128xbf16> to vector<2x128xbf16>
    %c0_142 = arith.constant 0 : index
    %c0_143 = arith.constant 0 : index
    %c0_144 = arith.constant 0 : index
    %188 = vector.load %arg6[%c0_142, %c0_143, %c0_144] : memref<6x128x128xbf16, #tpu.memory_space<vmem>>, vector<1x128x128xbf16>
    %189 = vector.shape_cast %188 : vector<1x128x128xbf16> to vector<128x128xbf16>
    %cst_145 = arith.constant dense<0.000000e+00> : vector<2x128xf32>
    %190 = tpu.matmul %187, %189, %cst_145 {dimension_numbers = #tpu.dot_dimension_numbers<[1], [0], [0], [1], [0, 0, 1, 1], [], []>} : vector<2x128xbf16>, vector<128x128xbf16>, vector<2x128xf32> -> vector<2x128xf32>
    %191 = vector.extract_strided_slice %186 {offsets = [2, 0], sizes = [2, 128], strides = [1, 1]} : vector<12x128xbf16> to vector<2x128xbf16>
    %c1_146 = arith.constant 1 : index
    %c0_147 = arith.constant 0 : index
    %c0_148 = arith.constant 0 : index
    %192 = vector.load %arg6[%c1_146, %c0_147, %c0_148] : memref<6x128x128xbf16, #tpu.memory_space<vmem>>, vector<1x128x128xbf16>
    %193 = vector.shape_cast %192 : vector<1x128x128xbf16> to vector<128x128xbf16>
    %cst_149 = arith.constant dense<0.000000e+00> : vector<2x128xf32>
    %194 = tpu.matmul %191, %193, %cst_149 {dimension_numbers = #tpu.dot_dimension_numbers<[1], [0], [0], [1], [0, 0, 1, 1], [], []>} : vector<2x128xbf16>, vector<128x128xbf16>, vector<2x128xf32> -> vector<2x128xf32>
    %195 = arith.addf %190, %194 : vector<2x128xf32>
    %196 = vector.extract_strided_slice %186 {offsets = [4, 0], sizes = [2, 128], strides = [1, 1]} : vector<12x128xbf16> to vector<2x128xbf16>
    %c2_150 = arith.constant 2 : index
    %c0_151 = arith.constant 0 : index
    %c0_152 = arith.constant 0 : index
    %197 = vector.load %arg6[%c2_150, %c0_151, %c0_152] : memref<6x128x128xbf16, #tpu.memory_space<vmem>>, vector<1x128x128xbf16>
    %198 = vector.shape_cast %197 : vector<1x128x128xbf16> to vector<128x128xbf16>
    %cst_153 = arith.constant dense<0.000000e+00> : vector<2x128xf32>
    %199 = tpu.matmul %196, %198, %cst_153 {dimension_numbers = #tpu.dot_dimension_numbers<[1], [0], [0], [1], [0, 0, 1, 1], [], []>} : vector<2x128xbf16>, vector<128x128xbf16>, vector<2x128xf32> -> vector<2x128xf32>
    %200 = arith.addf %195, %199 : vector<2x128xf32>
    %201 = vector.extract_strided_slice %186 {offsets = [6, 0], sizes = [2, 128], strides = [1, 1]} : vector<12x128xbf16> to vector<2x128xbf16>
    %c3_154 = arith.constant 3 : index
    %c0_155 = arith.constant 0 : index
    %c0_156 = arith.constant 0 : index
    %202 = vector.load %arg6[%c3_154, %c0_155, %c0_156] : memref<6x128x128xbf16, #tpu.memory_space<vmem>>, vector<1x128x128xbf16>
    %203 = vector.shape_cast %202 : vector<1x128x128xbf16> to vector<128x128xbf16>
    %cst_157 = arith.constant dense<0.000000e+00> : vector<2x128xf32>
    %204 = tpu.matmul %201, %203, %cst_157 {dimension_numbers = #tpu.dot_dimension_numbers<[1], [0], [0], [1], [0, 0, 1, 1], [], []>} : vector<2x128xbf16>, vector<128x128xbf16>, vector<2x128xf32> -> vector<2x128xf32>
    %205 = arith.addf %200, %204 : vector<2x128xf32>
    %206 = vector.extract_strided_slice %186 {offsets = [8, 0], sizes = [2, 128], strides = [1, 1]} : vector<12x128xbf16> to vector<2x128xbf16>
    %c4_158 = arith.constant 4 : index
    %c0_159 = arith.constant 0 : index
    %c0_160 = arith.constant 0 : index
    %207 = vector.load %arg6[%c4_158, %c0_159, %c0_160] : memref<6x128x128xbf16, #tpu.memory_space<vmem>>, vector<1x128x128xbf16>
    %208 = vector.shape_cast %207 : vector<1x128x128xbf16> to vector<128x128xbf16>
    %cst_161 = arith.constant dense<0.000000e+00> : vector<2x128xf32>
    %209 = tpu.matmul %206, %208, %cst_161 {dimension_numbers = #tpu.dot_dimension_numbers<[1], [0], [0], [1], [0, 0, 1, 1], [], []>} : vector<2x128xbf16>, vector<128x128xbf16>, vector<2x128xf32> -> vector<2x128xf32>
    %210 = arith.addf %205, %209 : vector<2x128xf32>
    %211 = vector.extract_strided_slice %186 {offsets = [10, 0], sizes = [2, 128], strides = [1, 1]} : vector<12x128xbf16> to vector<2x128xbf16>
    %c5 = arith.constant 5 : index
    %c0_162 = arith.constant 0 : index
    %c0_163 = arith.constant 0 : index
    %212 = vector.load %arg6[%c5, %c0_162, %c0_163] : memref<6x128x128xbf16, #tpu.memory_space<vmem>>, vector<1x128x128xbf16>
    %213 = vector.shape_cast %212 : vector<1x128x128xbf16> to vector<128x128xbf16>
    %cst_164 = arith.constant dense<0.000000e+00> : vector<2x128xf32>
    %214 = tpu.matmul %211, %213, %cst_164 {dimension_numbers = #tpu.dot_dimension_numbers<[1], [0], [0], [1], [0, 0, 1, 1], [], []>} : vector<2x128xbf16>, vector<128x128xbf16>, vector<2x128xf32> -> vector<2x128xf32>
    %215 = arith.addf %210, %214 : vector<2x128xf32>
    %c0_165 = arith.constant 0 : index
    %c0_166 = arith.constant 0 : index
    %216 = vector.load %arg7[%c0_165, %c0_166] : memref<1x128xf32, #tpu.memory_space<vmem>>, vector<1x128xf32>
    %217 = vector.broadcast %216 : vector<1x128xf32> to vector<2x128xf32>
    %218 = arith.addf %215, %217 : vector<2x128xf32>
    %cst_167 = arith.constant 0.000000e+00 : f32
    %219 = vector.broadcast %cst_167 : f32 to vector<2x128xf32>
    %220 = arith.maximumf %218, %219 : vector<2x128xf32>
    %221 = arith.truncf %220 : vector<2x128xf32> to vector<2x128xbf16>
    %c0_168 = arith.constant 0 : index
    %c0_169 = arith.constant 0 : index
    %222 = vector.load %arg8[%c0_168, %c0_169] : memref<128x128xbf16, #tpu.memory_space<vmem>>, vector<128x128xbf16>
    %cst_170 = arith.constant dense<0.000000e+00> : vector<2x128xf32>
    %223 = tpu.matmul %221, %222, %cst_170 {dimension_numbers = #tpu.dot_dimension_numbers<[1], [0], [0], [1], [0, 0, 1, 1], [], []>} : vector<2x128xbf16>, vector<128x128xbf16>, vector<2x128xf32> -> vector<2x128xf32>
    %c0_171 = arith.constant 0 : index
    %c0_172 = arith.constant 0 : index
    %224 = vector.load %arg9[%c0_171, %c0_172] : memref<1x128xf32, #tpu.memory_space<vmem>>, vector<1x128xf32>
    %225 = vector.broadcast %224 : vector<1x128xf32> to vector<2x128xf32>
    %226 = arith.addf %223, %225 : vector<2x128xf32>
    %c0_173 = arith.constant 0 : index
    %c0_174 = arith.constant 0 : index
    %227 = vector.load %arg10[%c0_173, %c0_174] : memref<2x128xf32, #tpu.memory_space<vmem>>, vector<2x128xf32>
    tpu.vector_store %arg10[%c0_173, %c0_174], %226 {strides = array<i32>} : memref<2x128xf32, #tpu.memory_space<vmem>>, vector<2x128xf32>,
    return
  }
  func.func @transform_0(%arg0: i32) -> (i32, i32, i32, i32) {
    %c0_i32 = arith.constant 0 : i32
    %c0_i32_0 = arith.constant 0 : i32
    %c0_i32_1 = arith.constant 0 : i32
    %c0_i32_2 = arith.constant 0 : i32
    return %arg0, %c0_i32, %c0_i32_0, %c0_i32_1 : i32, i32, i32, i32
  }
  func.func @transform_1(%arg0: i32) -> (i32, i32, i32) {
    %c0_i32 = arith.constant 0 : i32
    %c0_i32_0 = arith.constant 0 : i32
    %c0_i32_1 = arith.constant 0 : i32
    %c0_i32_2 = arith.constant 0 : i32
    return %c0_i32, %c0_i32_0, %c0_i32_1 : i32, i32, i32
  }
  func.func @transform_2(%arg0: i32) -> (i32, i32) {
    %c0_i32 = arith.constant 0 : i32
    %c0_i32_0 = arith.constant 0 : i32
    %c0_i32_1 = arith.constant 0 : i32
    return %c0_i32, %c0_i32_0 : i32, i32
  }
  func.func @transform_3(%arg0: i32) -> (i32, i32, i32) {
    %c0_i32 = arith.constant 0 : i32
    %c0_i32_0 = arith.constant 0 : i32
    %c0_i32_1 = arith.constant 0 : i32
    %c0_i32_2 = arith.constant 0 : i32
    return %c0_i32, %c0_i32_0, %c0_i32_1 : i32, i32, i32
  }
  func.func @transform_4(%arg0: i32) -> (i32, i32) {
    %c0_i32 = arith.constant 0 : i32
    %c0_i32_0 = arith.constant 0 : i32
    %c0_i32_1 = arith.constant 0 : i32
    return %c0_i32, %c0_i32_0 : i32, i32
  }
  func.func @transform_5(%arg0: i32) -> (i32, i32, i32) {
    %c0_i32 = arith.constant 0 : i32
    %c0_i32_0 = arith.constant 0 : i32
    %c0_i32_1 = arith.constant 0 : i32
    %c0_i32_2 = arith.constant 0 : i32
    return %c0_i32, %c0_i32_0, %c0_i32_1 : i32, i32, i32
  }
  func.func @transform_6(%arg0: i32) -> (i32, i32) {
    %c0_i32 = arith.constant 0 : i32
    %c0_i32_0 = arith.constant 0 : i32
    %c0_i32_1 = arith.constant 0 : i32
    return %c0_i32, %c0_i32_0 : i32, i32
  }
  func.func @transform_7(%arg0: i32) -> (i32, i32) {
    %c0_i32 = arith.constant 0 : i32
    %c0_i32_0 = arith.constant 0 : i32
    %c0_i32_1 = arith.constant 0 : i32
    return %c0_i32, %c0_i32_0 : i32, i32
  }
  func.func @transform_8(%arg0: i32) -> (i32, i32) {
    %c0_i32 = arith.constant 0 : i32
    %c0_i32_0 = arith.constant 0 : i32
    %c0_i32_1 = arith.constant 0 : i32
    return %c0_i32, %c0_i32_0 : i32, i32
  }
  func.func @transform_9(%arg0: i32) -> (i32, i32) {
    %c0_i32 = arith.constant 0 : i32
    %c0_i32_0 = arith.constant 0 : i32
    return %arg0, %c0_i32 : i32, i32
  }
}

</mosaic_0001>

<bundles_post_ra>
// kernel: tile.13
= control target key start
LH: loop header
LB: loop body
LE: loop exit
PB: predicated region body
PF: predicated region fallthrough
CT: control target
= control target key end

     0   :  { %s28_s0 = inlined_call_operand.vmem [shape: f32[6], index: 0, kind: input, shape index: {}]   ;;  %s29_s1 = inlined_call_operand.vmem [shape: f32[16,6], index: 1, kind: output, shape index: {}]  }
   0x1   :  { %v4_v0 = vld [vmem:[%s28_s0] ss:$0 sm:$0xff] }
   0x2   :  { %5 = vst [vmem:[%s29_s1] sm:$0xff] %v4_v0 }
   0x3   :  { %8 = vst [vmem:[%s29_s1 + $0x8] sm:$0xff] %v4_v0 }

// kernel: tile.14
= control target key start
LH: loop header
LB: loop body
LE: loop exit
PB: predicated region body
PF: predicated region fallthrough
CT: control target
= control target key end

     0   :  { %s131_s10 = smov 90   ;;  %s132_s11 = smov 78   ;;  %vm3_vm0 = vcmask 48128   ;;  %vm9_vm1 = vcmask 786128   ;;  %vm15_vm2 = vcmask 736928   ;;  %vm21_vm3 = vcmask 687728   ;;  %s207_s0 = inlined_call_operand.vmem [shape: f32[16,6], index: 0, kind: input, shape index: {}]   ;;  %s208_s1 = inlined_call_operand.vmem [shape: f32[96], index: 1, kind: output, shape index: {}]  }
   0x1   :  { %v101_v0 = vld [vmem:[%s207_s0 + $0xf] sm:$0x1]   ;;  %v103_v1 = vld [vmem:[%s207_s0 + $0xd] sm:$0x1]   ;;  %v105_v2 = vld [vmem:[%s207_s0 + $0xb] sm:$0x1]  }
   0x2   :  { %7 = vrot.lane.b32.xlu0 %v101_v0, %s131_s10  ;;  %19 = vrot.lane.b32.xlu1 %v103_v1, %s132_s11  ;;  %s133_s14 = smov 66   ;;  %v102_v3 = vld [vmem:[%s207_s0 + $0xe] sm:$0x1]   ;;  %v104_v4 = vld [vmem:[%s207_s0 + $0xc] sm:$0x1]   ;;  %s134_s19 = smov 84  }
   0x3   :  { %31 = vrot.lane.b32.xlu2 %v105_v2, %s133_s14  ;;  %s135_s20 = smov 72   ;;  %v106_v5 = vld [vmem:[%s207_s0 + $0xa] sm:$0x1]   ;;  %s136_s23 = smov 60   ;;  %v107_v6 = vld [vmem:[%s207_s0 + $0x9] sm:$0x1]  }
   0x4   :  { %v108_v7 = vld [vmem:[%s207_s0 + $0x8] sm:$0x1]   ;;  %s137_s28 = smov 54   ;;  %s138_s29 = smov 48   ;;  %v109_v8 = vld [vmem:[%s207_s0 + $0x7] sm:$0x1]  }
   0x5   :  { %s139_s3 = smov 42   ;;  %v110_v9 = vld [vmem:[%s207_s0 + $0x6] sm:$0x1]   ;;  %v111_v10 = vld [vmem:[%s207_s0 + $0x5] sm:$0x1]   ;;  %s140_s8 = smov 36  }
   0x6   :  { %s141_s9 = smov 30   ;;  %v112_v11 = vld [vmem:[%s207_s0 + $0x4] sm:$0x1]   ;;  %s142_s12 = smov 24   ;;  %v113_v12 = vld [vmem:[%s207_s0 + $0x3] sm:$0x1]  }
   0x7   :  { %v114_v13 = vld [vmem:[%s207_s0 + $0x2] sm:$0x1]   ;;  %s143_s17 = smov 18   ;;  %s144_s18 = smov 12   ;;  %v115_v14 = vld [vmem:[%s207_s0 + $0x1] sm:$0x1]  }
   0x8   :  { %s145_s21 = smov 6   ;;  %v2_v15 = vld [vmem:[%s207_s0] sm:$0x1]   ;;  %vm27_vm4 = vcmask 638528   ;;  %vm33_vm5 = vcmask 589328   ;;  %vm39_vm6 = vcmask 540128  }
   0x9   :  { %4 = vst.msk [vmem:[#allocation0] sm:$0x1] %vm3_vm0, %v2_v15   ;;  %vm45_vm7 = vcmask 490928   ;;  %vm51_vm8 = vcmask 441728   ;;  %vm57_vm9 = vcmask 392528   ;;  %vm63_vm10 = vcmask 343328  }
   0xa   :  { %13 = vrot.lane.b32.xlu0 %v102_v3, %s134_s19  ;;  %25 = vrot.lane.b32.xlu1 %v104_v4, %s135_s20  ;;  %vm69_vm11 = vcmask 294128   ;;  %vm75_vm12 = vcmask 244928   ;;  %vm81_vm13 = vcmask 195728   ;;  %vm87_vm14 = vcmask 146528  }
   0xb   :  { %37 = vrot.lane.b32.xlu2 %v106_v5, %s136_s23  ;;  %vm93_vm15 = vcmask 97328  }
  0x12   :  { %43 = vrot.lane.b32.xlu0 %v107_v6, %s137_s28  ;;  %49 = vrot.lane.b32.xlu1 %v108_v7, %s138_s29 }
  0x13   :  { %55 = vrot.lane.b32.xlu2 %v109_v8, %s139_s3 }
  0x1a   :  { %61 = vrot.lane.b32.xlu0 %v110_v9, %s140_s8  ;;  %67 = vrot.lane.b32.xlu1 %v111_v10, %s141_s9 }
  0x1b   :  { %73 = vrot.lane.b32.xlu2 %v112_v11, %s142_s12 }
  0x22   :  { %79 = vrot.lane.b32.xlu0 %v113_v12, %s143_s17  ;;  %85 = vrot.lane.b32.xlu1 %v114_v13, %s144_s18 }
  0x23   :  { %91 = vrot.lane.b32.xlu2 %v115_v14, %s145_s21 }
  0x5d   :  { %v32_v16 = vpop.permute.xlu2 %31  }
  0x65   :  { %v38_v17 = vpop.permute.xlu2 %37  }
  0x6d   :  { %v56_v18 = vpop.permute.xlu2 %55  }
  0x74   :  { %v8_v19 = vpop.permute.xlu0 %7   ;;  %v20_v20 = vpop.permute.xlu1 %19  }
  0x75   :  { %10 = vst.msk [vmem:[#allocation0] sm:$0x1] %vm9_vm1, %v8_v19   ;;  %v74_v21 = vpop.permute.xlu2 %73  }
  0x7c   :  { %v14_v22 = vpop.permute.xlu0 %13   ;;  %v26_v23 = vpop.permute.xlu1 %25  }
  0x7d   :  { %16 = vst.msk [vmem:[#allocation0] sm:$0x1] %vm15_vm2, %v14_v22   ;;  %v92_v24 = vpop.permute.xlu2 %91  }
  0x7e   :  { %22 = vst.msk [vmem:[#allocation0] sm:$0x1] %vm21_vm3, %v20_v20  }
  0x7f   :  { %28 = vst.msk [vmem:[#allocation0] sm:$0x1] %vm27_vm4, %v26_v23  }
  0x80   :  { %34 = vst.msk [vmem:[#allocation0] sm:$0x1] %vm33_vm5, %v32_v16  }
  0x81   :  { %40 = vst.msk [vmem:[#allocation0] sm:$0x1] %vm39_vm6, %v38_v17  }
  0x84   :  { %v44_v25 = vpop.permute.xlu0 %43   ;;  %v50_v26 = vpop.permute.xlu1 %49  }
  0x85   :  { %46 = vst.msk [vmem:[#allocation0] sm:$0x1] %vm45_vm7, %v44_v25  }
  0x86   :  { %52 = vst.msk [vmem:[#allocation0] sm:$0x1] %vm51_vm8, %v50_v26  }
  0x87   :  { %58 = vst.msk [vmem:[#allocation0] sm:$0x1] %vm57_vm9, %v56_v18  }
  0x8c   :  { %v62_v27 = vpop.permute.xlu0 %61   ;;  %v68_v28 = vpop.permute.xlu1 %67  }
  0x8d   :  { %64 = vst.msk [vmem:[#allocation0] sm:$0x1] %vm63_vm10, %v62_v27  }
  0x8e   :  { %70 = vst.msk [vmem:[#allocation0] sm:$0x1] %vm69_vm11, %v68_v28  }
  0x8f   :  { %76 = vst.msk [vmem:[#allocation0] sm:$0x1] %vm75_vm12, %v74_v21  }
  0x94   :  { %v80_v29 = vpop.permute.xlu0 %79   ;;  %v86_v30 = vpop.permute.xlu1 %85  }
  0x95   :  { %82 = vst.msk [vmem:[#allocation0] sm:$0x1] %vm81_vm13, %v80_v29  }
  0x96   :  { %88 = vst.msk [vmem:[#allocation0] sm:$0x1] %vm87_vm14, %v86_v30  }
  0x97   :  { %94 = vst.msk [vmem:[#allocation0] sm:$0x1] %vm93_vm15, %v92_v24  }
  0x9e   :  { %v97_v31 = vld [vmem:[#allocation0] sm:$0x1] }
  0x9f   :  { %100 = vst [vmem:[%s208_s1] sm:$0x1] %v97_v31 }

// kernel: tile.18
= control target key start
LH: loop header
LB: loop body
LE: loop exit
PB: predicated region body
PF: predicated region fallthrough
CT: control target
= control target key end

     0   :  { %s22_s0 = inlined_call_operand.vmem [shape: f32[16], index: 0, kind: input, shape index: {}]   ;;  %s23_s1 = inlined_call_operand.vmem [shape: f32[6,16], index: 1, kind: output, shape index: {}]  }
   0x1   :  { %v4_v0 = vld [vmem:[%s22_s0] ss:$0 sm:$0xff] }
   0x2   :  { %5 = vst [vmem:[%s23_s1] sm:$0xff] %v4_v0 }

// kernel: tile.19
= control target key start
LH: loop header
LB: loop body
LE: loop exit
PB: predicated region body
PF: predicated region fallthrough
CT: control target
= control target key end

     0   :  { %s51_s10 = smov 80   ;;  %s52_s11 = smov 48   ;;  %vm3_vm0 = vcmask 130048   ;;  %vm9_vm1 = vcmask 786048   ;;  %vm15_vm2 = vcmask 654848   ;;  %vm21_vm3 = vcmask 523648   ;;  %s87_s0 = inlined_call_operand.vmem [shape: f32[6,16], index: 0, kind: input, shape index: {}]   ;;  %s88_s1 = inlined_call_operand.vmem [shape: f32[96], index: 1, kind: output, shape index: {}]  }
   0x1   :  { %v41_v0 = vld [vmem:[%s87_s0 + $0x5] sm:$0x1]   ;;  %v43_v1 = vld [vmem:[%s87_s0 + $0x3] sm:$0x1]   ;;  %v45_v2 = vld [vmem:[%s87_s0 + $0x1] sm:$0x1]  }
   0x2   :  { %7 = vrot.lane.b32.xlu0 %v41_v0, %s51_s10  ;;  %19 = vrot.lane.b32.xlu1 %v43_v1, %s52_s11  ;;  %s53_s14 = smov 16   ;;  %v42_v3 = vld [vmem:[%s87_s0 + $0x4] sm:$0x1]   ;;  %v44_v4 = vld [vmem:[%s87_s0 + $0x2] sm:$0x1]   ;;  %s54_s19 = smov 64  }
   0x3   :  { %31 = vrot.lane.b32.xlu2 %v45_v2, %s53_s14  ;;  %s55_s20 = smov 32   ;;  %v2_v5 = vld [vmem:[%s87_s0] sm:$0x1]   ;;  %vm27_vm4 = vcmask 392448   ;;  %vm33_vm5 = vcmask 261248  }
   0x4   :  { %4 = vst.msk [vmem:[#allocation0] sm:$0x1] %vm3_vm0, %v2_v5  }
   0xa   :  { %13 = vrot.lane.b32.xlu0 %v42_v3, %s54_s19  ;;  %25 = vrot.lane.b32.xlu1 %v44_v4, %s55_s20 }
  0x5d   :  { %v32_v6 = vpop.permute.xlu2 %31  }
  0x74   :  { %v8_v7 = vpop.permute.xlu0 %7   ;;  %v20_v8 = vpop.permute.xlu1 %19  }
  0x75   :  { %10 = vst.msk [vmem:[#allocation0] sm:$0x1] %vm9_vm1, %v8_v7  }
  0x7c   :  { %v14_v9 = vpop.permute.xlu0 %13   ;;  %v26_v10 = vpop.permute.xlu1 %25  }
  0x7d   :  { %16 = vst.msk [vmem:[#allocation0] sm:$0x1] %vm15_vm2, %v14_v9  }
  0x7e   :  { %22 = vst.msk [vmem:[#allocation0] sm:$0x1] %vm21_vm3, %v20_v8  }
  0x7f   :  { %28 = vst.msk [vmem:[#allocation0] sm:$0x1] %vm27_vm4, %v26_v10  }
  0x80   :  { %34 = vst.msk [vmem:[#allocation0] sm:$0x1] %vm33_vm5, %v32_v6  }
  0x87   :  { %v37_v11 = vld [vmem:[#allocation0] sm:$0x1] }
  0x88   :  { %40 = vst [vmem:[%s88_s1] sm:$0x1] %v37_v11 }

// kernel: cnn_forward.1
= control target key start
LH: loop header
LB: loop body
LE: loop exit
PB: predicated region body
PF: predicated region fallthrough
CT: control target
= control target key end

     0   :  { %s6297_s0 = inlined_call_operand.vmem [shape: bf16[1,4,18,128], index: 0, kind: input, shape index: {}]   ;;  %s6298_s1 = inlined_call_operand.vmem [shape: bf16[5,128,256], index: 1, kind: input, shape index: {}]   ;;  %s6299_s2 = inlined_call_operand.vmem [shape: f32[1,128], index: 2, kind: input, shape index: {}]   ;;  %s6300_s3 = inlined_call_operand.vmem [shape: bf16[5,128,256], index: 3, kind: input, shape index: {}]   ;;  %s6301_s4 = inlined_call_operand.vmem [shape: f32[1,128], index: 4, kind: input, shape index: {}]   ;;  %s6302_s5 = inlined_call_operand.vmem [shape: bf16[6,128,128], index: 5, kind: input, shape index: {}]   ;;  %s6303_s6 = inlined_call_operand.vmem [shape: f32[1,128], index: 6, kind: input, shape index: {}]   ;;  %s6304_s7 = inlined_call_operand.vmem [shape: bf16[128,128], index: 7, kind: input, shape index: {}]   ;;  %s6305_s8 = inlined_call_operand.vmem [shape: f32[1,128], index: 8, kind: input, shape index: {}]   ;;  %s6306_s9 = inlined_call_operand.hbm [shape: f32[2,128], index: 9, kind: output, shape index: {}]  }
   0x1   :  { %v2746_v0 = vld [vmem:[%s6298_s1 + $0xf0] sm:$0xf]  ;;  %v3791_v1 = vld [vmem:[%s6298_s1 + $0xf4] sm:$0xf0]  ;;  %v3790_v2 = vld [vmem:[%s6298_s1 + $0xf4] sm:$0xf] }
   0x2   :  { %v4091_v3 = vor.u32 %v3791_v1, %v2746_v0  ;;  %v2748_v4 = vld [vmem:[%s6298_s1 + $0xf8] sm:$0xf0]  ;;  %v2814_v5 = vld [vmem:[%s6298_s1 + $0x70] sm:$0xf]  ;;  %v3775_v6 = vld [vmem:[%s6298_s1 + $0x74] sm:$0xf0] }
   0x3   :  { %v4102_v7 = vor.u32 %v3790_v2, %v2748_v4  ;;  %v4104_v8 = vor.u32 %v3775_v6, %v2814_v5  ;;  %v3774_v9 = vld [vmem:[%s6298_s1 + $0x74] sm:$0xf]  ;;  %v2816_v10 = vld [vmem:[%s6298_s1 + $0x78] sm:$0xf0]  ;;  %v2738_v11 = vld [vmem:[%s6298_s1 + $0xe0] sm:$0xf] }
   0x4   :  { %6442 = vst [vmem:[#allocation5_spill] sm:$0xff] %v4091_v3  ;;  %167 = vmatpush.bf16.msra.mxu0 %v4091_v3  ;;  %v4116_v12 = vor.u32 %v3774_v9, %v2816_v10  ;;  %v3789_v13 = vld [vmem:[%s6298_s1 + $0xe4] sm:$0xf0]  ;;  %v3788_v14 = vld [vmem:[%s6298_s1 + $0xe4] sm:$0xf] }
   0x5   :  { %6443 = vst [vmem:[#allocation6_spill] sm:$0xff] %v4102_v7  ;;  %v2740_v15 = vld [vmem:[%s6298_s1 + $0xe8] sm:$0xf0]  ;;  %181 = vmatpush.bf16.msra.mxu1 %v4102_v7  ;;  %281 = vmatpush.bf16.msra.mxu2 %v4104_v8  ;;  %v4129_v16 = vor.u32 %v3789_v13, %v2738_v11  ;;  %v2806_v18 = vld [vmem:[%s6298_s1 + $0x60] sm:$0xf] }
   0x6   :  { %6444 = vst [vmem:[#allocation7_spill] sm:$0xff] %v4104_v8  ;;  %v4131_v17 = vor.u32 %v3788_v14, %v2740_v15  ;;  %v3773_v19 = vld [vmem:[%s6298_s1 + $0x64] sm:$0xf0]  ;;  %v3772_v20 = vld [vmem:[%s6298_s1 + $0x64] sm:$0xf]  ;;  %295 = vmatpush.bf16.msra.mxu3 %v4116_v12 }
   0x7   :  { %6445 = vst [vmem:[#allocation8_spill] sm:$0xff] %v4116_v12  ;;  %v4143_v21 = vor.u32 %v3773_v19, %v2806_v18  ;;  %v2808_v22 = vld [vmem:[%s6298_s1 + $0x68] sm:$0xf0]  ;;  %v2730_v23 = vld [vmem:[%s6298_s1 + $0xd0] sm:$0xf] }
   0x8   :  { %6446 = vst [vmem:[#allocation9_spill] sm:$0xff] %v4129_v16  ;;  %v3787_v24 = vld [vmem:[%s6298_s1 + $0xd4] sm:$0xf0]  ;;  %v4154_v25 = vor.u32 %v3772_v20, %v2808_v22  ;;  %v3786_v26 = vld [vmem:[%s6298_s1 + $0xd4] sm:$0xf]  ;;  %168 = vmatpush.bf16.msra.mxu0 %v4129_v16 }
   0x9   :  { %6447 = vst [vmem:[#allocation10_spill] sm:$0xff] %v4131_v17  ;;  %v2732_v27 = vld [vmem:[%s6298_s1 + $0xd8] sm:$0xf0]  ;;  %v2798_v28 = vld [vmem:[%s6298_s1 + $0x50] sm:$0xf]  ;;  %v4166_v29 = vor.u32 %v3787_v24, %v2730_v23  ;;  %182 = vmatpush.bf16.msra.mxu1 %v4131_v17  ;;  %282 = vmatpush.bf16.msra.mxu2 %v4143_v21 }
   0xa   :  { %6448 = vst [vmem:[#allocation11_spill] sm:$0xff] %v4143_v21  ;;  %v3771_v30 = vld [vmem:[%s6298_s1 + $0x54] sm:$0xf0]  ;;  %v3770_v31 = vld [vmem:[%s6298_s1 + $0x54] sm:$0xf]  ;;  %v4179_v33 = vor.u32 %v3786_v26, %v2732_v27  ;;  %296 = vmatpush.bf16.msra.mxu3 %v4154_v25 }
   0xb   :  { %6449 = vst [vmem:[#allocation12_spill] sm:$0xff] %v4154_v25  ;;  %v2800_v32 = vld [vmem:[%s6298_s1 + $0x58] sm:$0xf0]  ;;  %v4181_v34 = vor.u32 %v3771_v30, %v2798_v28  ;;  %v2722_v35 = vld [vmem:[%s6298_s1 + $0xc0] sm:$0xf] }
   0xc   :  { %6450 = vst [vmem:[#allocation13_spill] sm:$0xff] %v4166_v29  ;;  %v3785_v36 = vld [vmem:[%s6298_s1 + $0xc4] sm:$0xf0]  ;;  %v3784_v37 = vld [vmem:[%s6298_s1 + $0xc4] sm:$0xf]  ;;  %v4193_v38 = vor.u32 %v3770_v31, %v2800_v32  ;;  %169 = vmatpush.bf16.msra.mxu0 %v4166_v29 }
   0xd   :  { %6451 = vst [vmem:[#allocation14_spill] sm:$0xff] %v4179_v33  ;;  %v2724_v39 = vld [vmem:[%s6298_s1 + $0xc8] sm:$0xf0]  ;;  %v2790_v40 = vld [vmem:[%s6298_s1 + $0x40] sm:$0xf]  ;;  %v4211_v44 = vor.u32 %v3785_v36, %v2722_v35  ;;  %183 = vmatpush.bf16.msra.mxu1 %v4179_v33  ;;  %283 = vmatpush.bf16.msra.mxu2 %v4181_v34 }
   0xe   :  { %6452 = vst [vmem:[#allocation15_spill] sm:$0xff] %v4181_v34  ;;  %v3769_v41 = vld [vmem:[%s6298_s1 + $0x44] sm:$0xf0]  ;;  %v3768_v42 = vld [vmem:[%s6298_s1 + $0x44] sm:$0xf]  ;;  %v4215_v45 = vor.u32 %v3784_v37, %v2724_v39  ;;  %297 = vmatpush.bf16.msra.mxu3 %v4193_v38 }
   0xf   :  { %6453 = vst [vmem:[#allocation16_spill] sm:$0xff] %v4193_v38  ;;  %v2792_v43 = vld [vmem:[%s6298_s1 + $0x48] sm:$0xf0]  ;;  %v4217_v46 = vor.u32 %v3769_v41, %v2790_v40  ;;  %v2714_v47 = vld [vmem:[%s6298_s1 + $0xb0] sm:$0xf] }
  0x10   :  { %6454 = vst [vmem:[#allocation17_spill] sm:$0xff] %v4211_v44  ;;  %v3783_v48 = vld [vmem:[%s6298_s1 + $0xb4] sm:$0xf0]  ;;  %v3782_v49 = vld [vmem:[%s6298_s1 + $0xb4] sm:$0xf]  ;;  %v4229_v50 = vor.u32 %v3768_v42, %v2792_v43  ;;  %170 = vmatpush.bf16.msra.mxu0 %v4211_v44 }
  0x11   :  { %6455 = vst [vmem:[#allocation18_spill] sm:$0xff] %v4215_v45  ;;  %v2716_v51 = vld [vmem:[%s6298_s1 + $0xb8] sm:$0xf0]  ;;  %v2782_v52 = vld [vmem:[%s6298_s1 + $0x30] sm:$0xf]  ;;  %v4247_v56 = vor.u32 %v3783_v48, %v2714_v47  ;;  %184 = vmatpush.bf16.msra.mxu1 %v4215_v45  ;;  %284 = vmatpush.bf16.msra.mxu2 %v4217_v46 }
  0x12   :  { %6456 = vst [vmem:[#allocation19_spill] sm:$0xff] %v4217_v46  ;;  %v3767_v53 = vld [vmem:[%s6298_s1 + $0x34] sm:$0xf0]  ;;  %v3766_v54 = vld [vmem:[%s6298_s1 + $0x34] sm:$0xf]  ;;  %v4251_v57 = vor.u32 %v3782_v49, %v2716_v51  ;;  %298 = vmatpush.bf16.msra.mxu3 %v4229_v50 }
  0x13   :  { %v2784_v55 = vld [vmem:[%s6298_s1 + $0x38] sm:$0xf0]  ;;  %6457 = vst [vmem:[#allocation20_spill] sm:$0xff] %v4247_v56  ;;  %v4253_v58 = vor.u32 %v3767_v53, %v2782_v52  ;;  %v2706_v59 = vld [vmem:[%s6298_s1 + $0xa0] sm:$0xf] }
  0x14   :  { %6458 = vst [vmem:[#allocation21_spill] sm:$0xff] %v4251_v57  ;;  %v3781_v60 = vld [vmem:[%s6298_s1 + $0xa4] sm:$0xf0]  ;;  %v3780_v61 = vld [vmem:[%s6298_s1 + $0xa4] sm:$0xf]  ;;  %v4265_v62 = vor.u32 %v3766_v54, %v2784_v55  ;;  %171 = vmatpush.bf16.msra.mxu0 %v4247_v56 }
  0x15   :  { %v2708_v63 = vld [vmem:[%s6298_s1 + $0xa8] sm:$0xf0]  ;;  %v2774_v0 = vld [vmem:[%s6298_s1 + $0x20] sm:$0xf]  ;;  %v3765_v1 = vld [vmem:[%s6298_s1 + $0x24] sm:$0xf0]  ;;  %v4283_v5 = vor.u32 %v3781_v60, %v2706_v59  ;;  %185 = vmatpush.bf16.msra.mxu1 %v4251_v57  ;;  %285 = vmatpush.bf16.msra.mxu2 %v4253_v58 }
  0x16   :  { %v3764_v2 = vld [vmem:[%s6298_s1 + $0x24] sm:$0xf]  ;;  %v2776_v4 = vld [vmem:[%s6298_s1 + $0x28] sm:$0xf0]  ;;  %v4287_v6 = vor.u32 %v3780_v61, %v2708_v63  ;;  %v4289_v9 = vor.u32 %v3765_v1, %v2774_v0  ;;  %v2698_v10 = vld [vmem:[%s6298_s1 + $0x90] sm:$0xf]  ;;  %299 = vmatpush.bf16.msra.mxu3 %v4265_v62 }
  0x17   :  { %6459 = vst [vmem:[#allocation22_spill] sm:$0xff] %v4283_v5  ;;  %v3779_v11 = vld [vmem:[%s6298_s1 + $0x94] sm:$0xf0]  ;;  %v3778_v13 = vld [vmem:[%s6298_s1 + $0x94] sm:$0xf]  ;;  %v4301_v14 = vor.u32 %v3764_v2, %v2776_v4 }
  0x18   :  { %6460 = vst [vmem:[#allocation23_spill] sm:$0xff] %v4287_v6  ;;  %v2700_v15 = vld [vmem:[%s6298_s1 + $0x98] sm:$0xf0]  ;;  %v2766_v18 = vld [vmem:[%s6298_s1 + $0x10] sm:$0xf]  ;;  %172 = vmatpush.bf16.msra.mxu0 %v4283_v5  ;;  %v4319_v23 = vor.u32 %v3779_v11, %v2698_v10 }
  0x19   :  { %v3763_v19 = vld [vmem:[%s6298_s1 + $0x14] sm:$0xf0]  ;;  %v3762_v20 = vld [vmem:[%s6298_s1 + $0x14] sm:$0xf]  ;;  %v2768_v22 = vld [vmem:[%s6298_s1 + $0x18] sm:$0xf0]  ;;  %186 = vmatpush.bf16.msra.mxu1 %v4287_v6  ;;  %286 = vmatpush.bf16.msra.mxu2 %v4289_v9  ;;  %v4329_v27 = vor.u32 %v3778_v13, %v2700_v15 }
  0x1a   :  { %v2690_v24 = vld [vmem:[%s6298_s1 + $0x80] sm:$0xf]  ;;  %v3777_v26 = vld [vmem:[%s6298_s1 + $0x84] sm:$0xf0]  ;;  %v4331_v28 = vor.u32 %v3763_v19, %v2766_v18  ;;  %v3776_v30 = vld [vmem:[%s6298_s1 + $0x84] sm:$0xf]  ;;  %300 = vmatpush.bf16.msra.mxu3 %v4301_v14  ;;  %v4343_v35 = vor.u32 %v3762_v20, %v2768_v22 }
  0x1b   :  { %v2692_v31 = vld [vmem:[%s6298_s1 + $0x88] sm:$0xf0]  ;;  %v2758_v32 = vld [vmem:[%s6298_s1] sm:$0xf]  ;;  %v3761_v36 = vld [vmem:[%s6298_s1 + $0x4] sm:$0xf0]  ;;  %v4364_v43 = vor.u32 %v3777_v26, %v2690_v24 }
  0x1c   :  { %v3760_v37 = vld [vmem:[%s6298_s1 + $0x4] sm:$0xf]  ;;  %v2760_v39 = vld [vmem:[%s6298_s1 + $0x8] sm:$0xf0]  ;;  %v2898_v40 = vld [vmem:[%s6298_s1 + $0x170] sm:$0xf]  ;;  %173 = vmatpush.bf16.msra.mxu0 %v4319_v23  ;;  %v4377_v51 = vor.u32 %v3776_v30, %v2692_v31  ;;  %v4379_v52 = vor.u32 %v3761_v36, %v2758_v32 }
  0x1d   :  { %v3807_v41 = vld [vmem:[%s6298_s1 + $0x174] sm:$0xf0]  ;;  %v3806_v42 = vld [vmem:[%s6298_s1 + $0x174] sm:$0xf]  ;;  %v2900_v47 = vld [vmem:[%s6298_s1 + $0x178] sm:$0xf0]  ;;  %187 = vmatpush.bf16.msra.mxu1 %v4329_v27  ;;  %287 = vmatpush.bf16.msra.mxu2 %v4331_v28  ;;  %v4388_v55 = vor.u32 %v3760_v37, %v2760_v39 }
  0x1e   :  { %v2982_v48 = vld [vmem:[%s6298_s1 + $0x1f0] sm:$0xf]  ;;  %v3823_v49 = vld [vmem:[%s6298_s1 + $0x1f4] sm:$0xf0]  ;;  %6461 = vst [vmem:[#allocation24_spill] sm:$0xff] %v4379_v52  ;;  %301 = vmatpush.bf16.msra.mxu3 %v4343_v35  ;;  %v4390_v59 = vor.u32 %v3807_v41, %v2898_v40  ;;  %v4395_v61 = vor.u32 %v3806_v42, %v2900_v47  ;;  %v4433_v19 = vld [vmem:[%s6297_s0] sm:$0xff] }
  0x1f   :  { %v3822_v53 = vld [vmem:[%s6298_s1 + $0x1f4] sm:$0xf]  ;;  %v2984_v54 = vld [vmem:[%s6298_s1 + $0x1f8] sm:$0xf0]  ;;  %6462 = vst [vmem:[#allocation25_spill] sm:$0xff] %v4388_v55  ;;  %v4397_v63 = vor.u32 %v3823_v49, %v2982_v48  ;;  %v4428_v18 = vld [vmem:[%s6297_s0 + $0xc] sm:$0xff] }
  0x20   :  { %v2890_v60 = vld [vmem:[%s6298_s1 + $0x160] sm:$0xf]  ;;  %v3805_v0 = vld [vmem:[%s6298_s1 + $0x164] sm:$0xf0]  ;;  %v3804_v1 = vld [vmem:[%s6298_s1 + $0x164] sm:$0xf]  ;;  %174 = vmatpush.bf16.msra.mxu0 %v4364_v43  ;;  %v4409_v4 = vor.u32 %v3822_v53, %v2984_v54 }
  0x21   :  { %6463 = vst [vmem:[#allocation26_spill] sm:$0xff] %v4397_v63  ;;  %v2892_v2 = vld [vmem:[%s6298_s1 + $0x168] sm:$0xf0]  ;;  %v2974_v10 = vld [vmem:[%s6298_s1 + $0x1e0] sm:$0xf]  ;;  %188 = vmatpush.bf16.msra.mxu1 %v4377_v51  ;;  %288 = vmatpush.bf16.msra.mxu2 %v4379_v52  ;;  %v4437_v20 = vor.u32 %v3805_v0, %v2890_v60 }
  0x22   :  { %6464 = vst [vmem:[#allocation27_spill] sm:$0xff] %v4409_v4  ;;  %v3821_v11 = vld [vmem:[%s6298_s1 + $0x1e4] sm:$0xf0]  ;;  %v3820_v13 = vld [vmem:[%s6298_s1 + $0x1e4] sm:$0xf]  ;;  %302 = vmatpush.bf16.msra.mxu3 %v4388_v55  ;;  %v4441_v22 = vor.u32 %v3804_v1, %v2892_v2 }
  0x23   :  { %v2976_v15 = vld [vmem:[%s6298_s1 + $0x1e8] sm:$0xf0]  ;;  %6465 = vst [vmem:[#allocation28_spill] sm:$0xff] %v4428_v18  ;;  %v4443_v24 = vor.u32 %v3821_v11, %v2974_v10  ;;  %v2882_v26 = vld [vmem:[%s6298_s1 + $0x150] sm:$0xf]  ;;  %175 = vmatmul.bf16.vlgmr.msra.gmra.mxu0 %v4428_v18 }
  0x24   :  { %412 = vmatpush.bf16.msrb.mxu0 %v4390_v59  ;;  %v3803_v30 = vld [vmem:[%s6298_s1 + $0x154] sm:$0xf0]  ;;  %v3802_v31 = vld [vmem:[%s6298_s1 + $0x154] sm:$0xf]  ;;  %v4455_v32 = vor.u32 %v3820_v13, %v2976_v15  ;;  %v2884_v36 = vld [vmem:[%s6298_s1 + $0x158] sm:$0xf0]  ;;  %189 = vmatmul.bf16.vlgmr.msra.gmra.mxu1 %v4428_v18 }
  0x25   :  { %426 = vmatpush.bf16.msrb.mxu1 %v4395_v61  ;;  %547 = vmatpush.bf16.msrb.mxu2 %v4397_v63  ;;  %6466 = vst [vmem:[#allocation29_spill] sm:$0xff] %v4443_v24  ;;  %v2966_v37 = vld [vmem:[%s6298_s1 + $0x1d0] sm:$0xf]  ;;  %v3819_v39 = vld [vmem:[%s6298_s1 + $0x1d4] sm:$0xf0]  ;;  %v4476_v42 = vor.u32 %v3803_v30, %v2882_v26  ;;  %v4481_v47 = vor.u32 %v3802_v31, %v2884_v36 }
  0x26   :  { %561 = vmatpush.bf16.msrb.mxu3 %v4409_v4  ;;  %6467 = vst [vmem:[#allocation30_spill] sm:$0xff] %v4455_v32  ;;  %v3818_v40 = vld [vmem:[%s6298_s1 + $0x1d4] sm:$0xf]  ;;  %v2968_v41 = vld [vmem:[%s6298_s1 + $0x1d8] sm:$0xf0]  ;;  %289 = vmatmul.bf16.vlgmr.msra.gmra.mxu2 %v4433_v19  ;;  %v4483_v48 = vor.u32 %v3819_v39, %v2966_v37 }
  0x27   :  { %303 = vmatmul.bf16.vlgmr.msra.gmra.mxu3 %v4433_v19  ;;  %v2874_v49 = vld [vmem:[%s6298_s1 + $0x140] sm:$0xf]  ;;  %v3801_v53 = vld [vmem:[%s6298_s1 + $0x144] sm:$0xf0]  ;;  %v3800_v54 = vld [vmem:[%s6298_s1 + $0x144] sm:$0xf]  ;;  %v4495_v60 = vor.u32 %v3818_v40, %v2968_v41 }
  0x28   :  { %413 = vmatpush.bf16.msrb.mxu0 %v4437_v20  ;;  %6468 = vst [vmem:[#allocation31_spill] sm:$0xff] %v4483_v48  ;;  %v2876_v0 = vld [vmem:[%s6298_s1 + $0x148] sm:$0xf0]  ;;  %v2958_v1 = vld [vmem:[%s6298_s1 + $0x1c0] sm:$0xf]  ;;  %v4513_v13 = vor.u32 %v3801_v53, %v2874_v49 }
  0x29   :  { %427 = vmatpush.bf16.msrb.mxu1 %v4441_v22  ;;  %548 = vmatpush.bf16.msrb.mxu2 %v4443_v24  ;;  %6469 = vst [vmem:[#allocation32_spill] sm:$0xff] %v4495_v60  ;;  %v3817_v2 = vld [vmem:[%s6298_s1 + $0x1c4] sm:$0xf0]  ;;  %v3816_v10 = vld [vmem:[%s6298_s1 + $0x1c4] sm:$0xf]  ;;  %v4517_v15 = vor.u32 %v3800_v54, %v2876_v0 }
  0x2a   :  { %562 = vmatpush.bf16.msrb.mxu3 %v4455_v32  ;;  %v2960_v11 = vld [vmem:[%s6298_s1 + $0x1c8] sm:$0xf0]  ;;  %v4519_v26 = vor.u32 %v3817_v2, %v2958_v1  ;;  %v2866_v30 = vld [vmem:[%s6298_s1 + $0x130] sm:$0xf]  ;;  %v3799_v31 = vld [vmem:[%s6298_s1 + $0x134] sm:$0xf0] }
  0x2b   :  { %v3798_v36 = vld [vmem:[%s6298_s1 + $0x134] sm:$0xf]  ;;  %v4531_v37 = vor.u32 %v3816_v10, %v2960_v11  ;;  %v2868_v39 = vld [vmem:[%s6298_s1 + $0x138] sm:$0xf0]  ;;  %v2950_v40 = vld [vmem:[%s6298_s1 + $0x1b0] sm:$0xf]  ;;  %v4549_v54 = vor.u32 %v3799_v31, %v2866_v30 }
  0x2c   :  { %414 = vmatpush.bf16.msrb.mxu0 %v4476_v42  ;;  %6470 = vst [vmem:[#allocation33_spill] sm:$0xff] %v4519_v26  ;;  %v3815_v41 = vld [vmem:[%s6298_s1 + $0x1b4] sm:$0xf0]  ;;  %v3814_v49 = vld [vmem:[%s6298_s1 + $0x1b4] sm:$0xf]  ;;  %v4553_v0 = vor.u32 %v3798_v36, %v2868_v39 }
  0x2d   :  { %428 = vmatpush.bf16.msrb.mxu1 %v4481_v47  ;;  %549 = vmatpush.bf16.msrb.mxu2 %v4483_v48  ;;  %6471 = vst [vmem:[#allocation34_spill] sm:$0xff] %v4531_v37  ;;  %v2952_v53 = vld [vmem:[%s6298_s1 + $0x1b8] sm:$0xf0]  ;;  %v4555_v1 = vor.u32 %v3815_v41, %v2950_v40  ;;  %v2858_v2 = vld [vmem:[%s6298_s1 + $0x120] sm:$0xf] }
  0x2e   :  { %563 = vmatpush.bf16.msrb.mxu3 %v4495_v60  ;;  %v3797_v10 = vld [vmem:[%s6298_s1 + $0x124] sm:$0xf0]  ;;  %v3796_v11 = vld [vmem:[%s6298_s1 + $0x124] sm:$0xf]  ;;  %v4567_v30 = vor.u32 %v3814_v49, %v2952_v53  ;;  %v2860_v31 = vld [vmem:[%s6298_s1 + $0x128] sm:$0xf0] }
  0x2f   :  { %6472 = vst [vmem:[#allocation35_spill] sm:$0xff] %v4555_v1  ;;  %v2942_v36 = vld [vmem:[%s6298_s1 + $0x1a0] sm:$0xf]  ;;  %v3813_v39 = vld [vmem:[%s6298_s1 + $0x1a4] sm:$0xf0]  ;;  %v4585_v49 = vor.u32 %v3797_v10, %v2858_v2 }
  0x30   :  { %415 = vmatpush.bf16.msrb.mxu0 %v4513_v13  ;;  %6473 = vst [vmem:[#allocation36_spill] sm:$0xff] %v4567_v30  ;;  %v3812_v40 = vld [vmem:[%s6298_s1 + $0x1a4] sm:$0xf]  ;;  %v2944_v41 = vld [vmem:[%s6298_s1 + $0x1a8] sm:$0xf0]  ;;  %v4597_v60 = vor.u32 %v3813_v39, %v2942_v36 }
  0x31   :  { %429 = vmatpush.bf16.msrb.mxu1 %v4517_v15  ;;  %550 = vmatpush.bf16.msrb.mxu2 %v4519_v26  ;;  %v2850_v53 = vld [vmem:[%s6298_s1 + $0x110] sm:$0xf]  ;;  %v4595_v26 = vor.u32 %v3796_v11, %v2860_v31  ;;  %v3794_v2 = vld [vmem:[%s6298_s1 + $0x114] sm:$0xf]  ;;  %v2852_v10 = vld [vmem:[%s6298_s1 + $0x118] sm:$0xf0]  ;;  %v4609_v32 = vor.u32 %v3812_v40, %v2944_v41 }
  0x32   :  { %564 = vmatpush.bf16.msrb.mxu3 %v4531_v37  ;;  %v3795_v37 = vld [vmem:[%s6298_s1 + $0x114] sm:$0xf0]  ;;  %6474 = vst [vmem:[#allocation37_spill] sm:$0xff] %v4597_v60  ;;  %v2934_v48 = vld [vmem:[%s6298_s1 + $0x190] sm:$0xf] }
  0x33   :  { %6475 = vst [vmem:[#allocation38_spill] sm:$0xff] %v4609_v32  ;;  %v3811_v11 = vld [vmem:[%s6298_s1 + $0x194] sm:$0xf0]  ;;  %v3810_v31 = vld [vmem:[%s6298_s1 + $0x194] sm:$0xf]  ;;  %v4624_v40 = vor.u32 %v3795_v37, %v2850_v53 }
  0x34   :  { %416 = vmatpush.bf16.msrb.mxu0 %v4549_v54  ;;  %v2936_v36 = vld [vmem:[%s6298_s1 + $0x198] sm:$0xf0]  ;;  %v2842_v39 = vld [vmem:[%s6298_s1 + $0x100] sm:$0xf]  ;;  %v3793_v41 = vld [vmem:[%s6298_s1 + $0x104] sm:$0xf0]  ;;  %v4636_v24 = vor.u32 %v3811_v11, %v2934_v48 }
  0x35   :  { %430 = vmatpush.bf16.msrb.mxu1 %v4553_v0  ;;  %551 = vmatpush.bf16.msrb.mxu2 %v4555_v1  ;;  %v4634_v1 = vor.u32 %v3794_v2, %v2852_v10  ;;  %v2844_v37 = vld [vmem:[%s6298_s1 + $0x108] sm:$0xf0]  ;;  %v2926_v53 = vld [vmem:[%s6298_s1 + $0x180] sm:$0xf]  ;;  %v4645_v18 = vor.u32 %v3810_v31, %v2936_v36  ;;  %v3808_v48 = vld [vmem:[%s6298_s1 + $0x184] sm:$0xf] }
  0x36   :  { %565 = vmatpush.bf16.msrb.mxu3 %v4567_v30  ;;  %v3792_v30 = vld [vmem:[%s6298_s1 + $0x104] sm:$0xf]  ;;  %6477 = vst [vmem:[#allocation40_spill] sm:$0xff] %v4636_v24 }
  0x37   :  { %6476 = vst [vmem:[#allocation39_spill] sm:$0xff] %v4634_v1 }
  0x38   :  { %417 = vmatpush.bf16.msrb.mxu0 %v4585_v49  ;;  %6478 = vst [vmem:[#allocation41_spill] sm:$0xff] %v4645_v18 }
  0x39   :  { %431 = vmatpush.bf16.msrb.mxu1 %v4595_v26  ;;  %552 = vmatpush.bf16.msrb.mxu2 %v4597_v60  ;;  %v3809_v60 = vld [vmem:[%s6298_s1 + $0x184] sm:$0xf0] }
  0x3a   :  { %566 = vmatpush.bf16.msrb.mxu3 %v4609_v32 }
  0x3b   :  { %14 = vsyncpa [#allocation3], 0  ;;  %v2928_v2 = vld [vmem:[%s6298_s1 + $0x188] sm:$0xf0]  ;;  %v3062_v10 = vld [vmem:[%s6298_s1 + $0x270] sm:$0xf]  ;;  %v4663_v31 = vor.u32 %v3793_v41, %v2842_v39  ;;  %v4673_v4 = vor.u32 %v3792_v30, %v2844_v37  ;;  %v4675_v63 = vor.u32 %v3809_v60, %v2926_v53 }
  0x3c   :  { %v3839_v11 = vld [vmem:[%s6298_s1 + $0x274] sm:$0xf0]  ;;  %418 = vmatpush.bf16.msrb.mxu0 %v4624_v40  ;;  %v3838_v36 = vld [vmem:[%s6298_s1 + $0x274] sm:$0xf]  ;;  %v3064_v32 = vld [vmem:[%s6298_s1 + $0x278] sm:$0xf0]  ;;  %v4678_v39 = vor.u32 %v3808_v48, %v2928_v2 }
  0x3d   :  { %6479 = vst [vmem:[#allocation42_spill] sm:$0xff] %v4663_v31  ;;  %432 = vmatpush.bf16.msrb.mxu1 %v4634_v1  ;;  %553 = vmatpush.bf16.msrb.mxu2 %v4636_v24  ;;  %v4680_v41 = vor.u32 %v3839_v11, %v3062_v10  ;;  %v4682_v55 = vor.u32 %v3838_v36, %v3064_v32  ;;  %v3054_v52 = vld [vmem:[%s6298_s1 + $0x260] sm:$0xf]  ;;  %v3837_v24 = vld [vmem:[%s6298_s1 + $0x264] sm:$0xf0]  ;;  %v4694_v60 = vld [vmem:[%s6297_s0 + $0x18] sm:$0xff] }
  0x3e   :  { %6480 = vst [vmem:[#allocation43_spill] sm:$0xff] %v4673_v4  ;;  %567 = vmatpush.bf16.msrb.mxu3 %v4645_v18  ;;  %v3836_v32 = vld [vmem:[%s6298_s1 + $0x264] sm:$0xf]  ;;  %v3056_v30 = vld [vmem:[%s6298_s1 + $0x268] sm:$0xf0]  ;;  %v4711_v53 = vor.u32 %v3837_v24, %v3054_v52  ;;  %vm599_vm0 = vcmask 1046528  }
  0x3f   :  { %6481 = vst [vmem:[#allocation44_spill] sm:$0xff] %v4675_v63  ;;  %v4707_v37 = vld [vmem:[%s6297_s0 + $0x24] sm:$0xff]  ;;  %v4715_v48 = vor.u32 %v3836_v32, %v3056_v30  ;;  %v3046_v2 = vld [vmem:[%s6298_s1 + $0x250] sm:$0xf]  ;;  %v3835_v10 = vld [vmem:[%s6298_s1 + $0x254] sm:$0xf0] }
  0x40   :  { %6482 = vst [vmem:[#allocation45_spill] sm:$0xff] %v4678_v39  ;;  %419 = vmatpush.bf16.msrb.mxu0 %v4663_v31  ;;  %v3834_v52 = vld [vmem:[%s6298_s1 + $0x254] sm:$0xf]  ;;  %v3048_v24 = vld [vmem:[%s6298_s1 + $0x258] sm:$0xf0]  ;;  %v4735_v11 = vor.u32 %v3835_v10, %v3046_v2  ;;  %s4031_s28 = smov [#allocation2]  }
  0x41   :  { %6483 = vst [vmem:[#allocation46_spill] sm:$0xff] %v4680_v41  ;;  %433 = vmatpush.bf16.msrb.mxu1 %v4673_v4  ;;  %554 = vmatpush.bf16.msrb.mxu2 %v4675_v63  ;;  %v4739_v36 = vor.u32 %v3834_v52, %v3048_v24  ;;  %v3038_v32 = vld [vmem:[%s6298_s1 + $0x240] sm:$0xf]  ;;  %v3833_v30 = vld [vmem:[%s6298_s1 + $0x244] sm:$0xf0]  ;;  %s2650_s30 = sshll.u32 %s6306_s9, 4  ;;  %s2651_s30 = int_to_ptr.hbm [resolvable:$true] %s2650_s30 }
  0x42   :  { %6484 = vst [vmem:[#allocation47_spill] sm:$0xff] %v4682_v55  ;;  %568 = vmatpush.bf16.msrb.mxu3 %v4678_v39  ;;  %v3832_v2 = vld [vmem:[%s6298_s1 + $0x244] sm:$0xf]  ;;  %v3040_v10 = vld [vmem:[%s6298_s1 + $0x248] sm:$0xf0]  ;;  %v4755_v52 = vor.u32 %v3833_v30, %v3038_v32 }
  0x43   :  { %6485 = vst [vmem:[#allocation48_spill] sm:$0xff] %v4711_v53  ;;  %420 = vmatmul.bf16.vlgmr.msrb.gmra.mxu0 %v4694_v60  ;;  %v4759_v24 = vor.u32 %v3832_v2, %v3040_v10  ;;  %v3830_v32 = vld [vmem:[%s6298_s1 + $0x234] sm:$0xf]  ;;  %v3032_v30 = vld [vmem:[%s6298_s1 + $0x238] sm:$0xf0] }
  0x44   :  { %684 = vmatpush.bf16.msra.mxu0 %v4680_v41  ;;  %6486 = vst [vmem:[#allocation49_spill] sm:$0xff] %v4715_v48  ;;  %434 = vmatmul.bf16.vlgmr.msrb.gmra.mxu1 %v4694_v60  ;;  %v4779_v10 = vor.u32 %v3830_v32, %v3032_v30 }
  0x45   :  { %698 = vmatpush.bf16.msra.mxu1 %v4682_v55  ;;  %718 = vmatpush.bf16.msra.mxu2 %v4091_v3  ;;  %6487 = vst [vmem:[#allocation50_spill] sm:$0xff] %v4735_v11  ;;  %v3827_v3 = vld [vmem:[%s6298_s1 + $0x214] sm:$0xf0] }
  0x46   :  { %732 = vmatpush.bf16.msra.mxu3 %v4102_v7  ;;  %555 = vmatmul.bf16.vlgmr.msrb.gmra.mxu2 %v4707_v37  ;;  %6488 = vst [vmem:[#allocation51_spill] sm:$0xff] %v4739_v36  ;;  %v35_v7 = vld [vmem:[%s6297_s0 + $0x8] sm:$0x1] }
  0x47   :  { %569 = vmatmul.bf16.vlgmr.msrb.gmra.mxu3 %v4707_v37  ;;  %6489 = vst [vmem:[#allocation52_spill] sm:$0xff] %v4755_v52  ;;  %v597_v30 = vunpack.c.l.b16 %v35_v7  ;;  %v3826_v7 = vld [vmem:[%s6298_s1 + $0x214] sm:$0xf] }
  0x48   :  { %685 = vmatpush.bf16.msra.mxu0 %v4711_v53  ;;  %6490 = vst [vmem:[#allocation53_spill] sm:$0xff] %v4759_v24 }
  0x49   :  { %699 = vmatpush.bf16.msra.mxu1 %v4715_v48  ;;  %719 = vmatpush.bf16.msra.mxu2 %v4129_v16  ;;  %v3831_v16 = vld [vmem:[%s6298_s1 + $0x234] sm:$0xf0]  ;;  %6492 = vst [vmem:[#allocation55_spill] sm:$0xff] %v4779_v10 }
  0x4a   :  { %733 = vmatpush.bf16.msra.mxu3 %v4131_v17  ;;  %v3030_v17 = vld [vmem:[%s6298_s1 + $0x230] sm:$0xf] }
  0x4b   :  { %v4775_v2 = vor.u32 %v3831_v16, %v3030_v17  ;;  %v3828_v16 = vld [vmem:[%s6298_s1 + $0x224] sm:$0xf]  ;;  %v3024_v17 = vld [vmem:[%s6298_s1 + $0x228] sm:$0xf0] }
  0x4c   :  { %686 = vmatpush.bf16.msra.mxu0 %v4735_v11 }
  0x4d   :  { %700 = vmatpush.bf16.msra.mxu1 %v4739_v36  ;;  %720 = vmatpush.bf16.msra.mxu2 %v4166_v29  ;;  %6491 = vst [vmem:[#allocation54_spill] sm:$0xff] %v4775_v2  ;;  %v3829_v29 = vld [vmem:[%s6298_s1 + $0x224] sm:$0xf0] }
  0x4e   :  { %734 = vmatpush.bf16.msra.mxu3 %v4179_v33  ;;  %v3022_v33 = vld [vmem:[%s6298_s1 + $0x220] sm:$0xf] }
  0x4f   :  { %v4798_v32 = vor.u32 %v3829_v29, %v3022_v33  ;;  %v3016_v29 = vld [vmem:[%s6298_s1 + $0x218] sm:$0xf0] }
  0x50   :  { %687 = vmatpush.bf16.msra.mxu0 %v4755_v52 }
  0x51   :  { %701 = vmatpush.bf16.msra.mxu1 %v4759_v24  ;;  %721 = vmatpush.bf16.msra.mxu2 %v4211_v44  ;;  %6493 = vst [vmem:[#allocation56_spill] sm:$0xff] %v4798_v32  ;;  %v4802_v44 = vor.u32 %v3828_v16, %v3024_v17  ;;  %v598_v16 = vpack.c.b16 %v597_v30, %v597_v30 }
  0x52   :  { %735 = vmatpush.bf16.msra.mxu3 %v4215_v45  ;;  %v3014_v45 = vld [vmem:[%s6298_s1 + $0x210] sm:$0xf]  ;;  %v4822_v17 = vor.u32 %v3826_v7, %v3016_v29  ;;  %v600_v7 = vrot.slane %v4433_v19, 1 }
  0x53   :  { %6494 = vst [vmem:[#allocation57_spill] sm:$0xff] %v4802_v44  ;;  %v4818_v33 = vor.u32 %v3827_v3, %v3014_v45  ;;  %v3824_v3 = vld [vmem:[%s6298_s1 + $0x204] sm:$0xf]  ;;  %v3008_v45 = vld [vmem:[%s6298_s1 + $0x208] sm:$0xf0]  ;;  %v601_v29 = vrot.slane %v598_v16, 1 }
  0x54   :  { %688 = vmatpush.bf16.msra.mxu0 %v4775_v2  ;;  %6496 = vst [vmem:[#allocation59_spill] sm:$0xff] %v4822_v17  ;;  %v6501_v19 = vld [vmem:[#allocation26_spill] sm:$0xff]  ;;  %v6502_v16 = vld [vmem:[#allocation27_spill] sm:$0xff] }
  0x55   :  { %702 = vmatpush.bf16.msra.mxu1 %v4779_v10  ;;  %722 = vmatpush.bf16.msra.mxu2 %v4247_v56  ;;  %6495 = vst [vmem:[#allocation58_spill] sm:$0xff] %v4818_v33  ;;  %v3825_v56 = vld [vmem:[%s6298_s1 + $0x204] sm:$0xf0] }
  0x56   :  { %736 = vmatpush.bf16.msra.mxu3 %v4251_v57  ;;  %v3006_v57 = vld [vmem:[%s6298_s1 + $0x200] sm:$0xf] }
  0x57   :  { %v4838_v30 = vor.u32 %v3825_v56, %v3006_v57  ;;  %v6499_v56 = vld [vmem:[#allocation24_spill] sm:$0xff]  ;;  %v6500_v57 = vld [vmem:[#allocation25_spill] sm:$0xff] }
  0x58   :  { %689 = vmatpush.bf16.msra.mxu0 %v4798_v32 }
  0x59   :  { %703 = vmatpush.bf16.msra.mxu1 %v4802_v44  ;;  %723 = vmatpush.bf16.msra.mxu2 %v4283_v5  ;;  %6497 = vst [vmem:[#allocation60_spill] sm:$0xff] %v4838_v30  ;;  %v4848_v5 = vsel %vm599_vm0, %v600_v7, %v601_v29  ;;  %v6505_v7 = vld [vmem:[#allocation30_spill] sm:$0xff]  ;;  %v6506_v29 = vld [vmem:[#allocation31_spill] sm:$0xff] }
  0x5a   :  { %737 = vmatpush.bf16.msra.mxu3 %v4287_v6  ;;  %v4843_v6 = vor.u32 %v3824_v3, %v3008_v45  ;;  %v6503_v3 = vld [vmem:[#allocation28_spill] sm:$0xff]  ;;  %v6504_v45 = vld [vmem:[#allocation29_spill] sm:$0xff] }
  0x5c   :  { %690 = vmatpush.bf16.msra.mxu0 %v4818_v33  ;;  %6498 = vst [vmem:[#allocation61_spill] sm:$0xff] %v4843_v6 }
  0x5d   :  { %704 = vmatpush.bf16.msra.mxu1 %v4822_v17  ;;  %724 = vmatpush.bf16.msra.mxu2 %v4319_v23 }
  0x5e   :  { %738 = vmatpush.bf16.msra.mxu3 %v4329_v27 }
  0x60   :  { %691 = vmatpush.bf16.msra.mxu0 %v4838_v30 }
  0x61   :  { %705 = vmatpush.bf16.msra.mxu1 %v4843_v6  ;;  %725 = vmatpush.bf16.msra.mxu2 %v4364_v43 }
  0x62   :  { %739 = vmatpush.bf16.msra.mxu3 %v4377_v51 }
  0x63   :  { %692 = vmatmul.bf16.vlgmr.msra.gmra.mxu0 %v4848_v5 }
  0x64   :  { %746 = vmatpush.bf16.msrb.mxu0 %v4104_v8  ;;  %706 = vmatmul.bf16.vlgmr.msra.gmra.mxu1 %v4848_v5 }
  0x65   :  { %760 = vmatpush.bf16.msrb.mxu1 %v4116_v12  ;;  %774 = vmatpush.bf16.msrb.mxu2 %v4390_v59 }
  0x66   :  { %788 = vmatpush.bf16.msrb.mxu3 %v4395_v61  ;;  %726 = vmatmul.bf16.vlgmr.msra.gmra.mxu2 %v4694_v60 }
  0x67   :  { %740 = vmatmul.bf16.vlgmr.msra.gmra.mxu3 %v4694_v60 }
  0x68   :  { %747 = vmatpush.bf16.msrb.mxu0 %v4143_v21 }
  0x69   :  { %761 = vmatpush.bf16.msrb.mxu1 %v4154_v25  ;;  %775 = vmatpush.bf16.msrb.mxu2 %v4437_v20 }
  0x6a   :  { %789 = vmatpush.bf16.msrb.mxu3 %v4441_v22 }
  0x6c   :  { %748 = vmatpush.bf16.msrb.mxu0 %v4181_v34 }
  0x6d   :  { %762 = vmatpush.bf16.msrb.mxu1 %v4193_v38  ;;  %776 = vmatpush.bf16.msrb.mxu2 %v4476_v42 }
  0x6e   :  { %790 = vmatpush.bf16.msrb.mxu3 %v4481_v47 }
  0x70   :  { %749 = vmatpush.bf16.msrb.mxu0 %v4217_v46 }
  0x71   :  { %763 = vmatpush.bf16.msrb.mxu1 %v4229_v50  ;;  %777 = vmatpush.bf16.msrb.mxu2 %v4513_v13 }
  0x72   :  { %791 = vmatpush.bf16.msrb.mxu3 %v4517_v15 }
  0x74   :  { %750 = vmatpush.bf16.msrb.mxu0 %v4253_v58 }
  0x75   :  { %764 = vmatpush.bf16.msrb.mxu1 %v4265_v62  ;;  %778 = vmatpush.bf16.msrb.mxu2 %v4549_v54 }
  0x76   :  { %792 = vmatpush.bf16.msrb.mxu3 %v4553_v0 }
  0x78   :  { %751 = vmatpush.bf16.msrb.mxu0 %v4289_v9 }
  0x79   :  { %765 = vmatpush.bf16.msrb.mxu1 %v4301_v14  ;;  %779 = vmatpush.bf16.msrb.mxu2 %v4585_v49 }
  0x7a   :  { %793 = vmatpush.bf16.msrb.mxu3 %v4595_v26 }
  0x7c   :  { %752 = vmatpush.bf16.msrb.mxu0 %v4331_v28 }
  0x7d   :  { %766 = vmatpush.bf16.msrb.mxu1 %v4343_v35  ;;  %780 = vmatpush.bf16.msrb.mxu2 %v4624_v40 }
  0x7e   :  { %794 = vmatpush.bf16.msrb.mxu3 %v4634_v1  ;;  %v6513_v1 = vld [vmem:[#allocation38_spill] sm:$0xff] }
  0x80   :  { %753 = vmatpush.bf16.msrb.mxu0 %v6499_v56 }
  0x81   :  { %767 = vmatpush.bf16.msrb.mxu1 %v6500_v57  ;;  %781 = vmatpush.bf16.msrb.mxu2 %v4663_v31  ;;  %v6511_v31 = vld [vmem:[#allocation36_spill] sm:$0xff] }
  0x82   :  { %795 = vmatpush.bf16.msrb.mxu3 %v4673_v4  ;;  %v6509_v4 = vld [vmem:[#allocation34_spill] sm:$0xff] }
  0x83   :  { %754 = vmatmul.bf16.vlgmr.msrb.gmra.mxu0 %v6503_v3 }
  0x84   :  { %806 = vmatpush.bf16.msra.mxu0 %v6501_v19  ;;  %768 = vmatmul.bf16.vlgmr.msrb.gmra.mxu1 %v6503_v3 }
  0x85   :  { %820 = vmatpush.bf16.msra.mxu1 %v6502_v16  ;;  %845 = vmatpush.bf16.msra.mxu2 %v4680_v41  ;;  %v6507_v41 = vld [vmem:[#allocation32_spill] sm:$0xff] }
  0x86   :  { %859 = vmatpush.bf16.msra.mxu3 %v4682_v55  ;;  %782 = vmatmul.bf16.vlgmr.msrb.gmra.mxu2 %v4707_v37  ;;  %v6508_v55 = vld [vmem:[#allocation33_spill] sm:$0xff] }
  0x87   :  { %796 = vmatmul.bf16.vlgmr.msrb.gmra.mxu3 %v4707_v37 }
  0x88   :  { %807 = vmatpush.bf16.msra.mxu0 %v6504_v45 }
  0x89   :  { %821 = vmatpush.bf16.msra.mxu1 %v6505_v7  ;;  %846 = vmatpush.bf16.msra.mxu2 %v4711_v53  ;;  %v6510_v53 = vld [vmem:[#allocation35_spill] sm:$0xff] }
  0x8a   :  { %860 = vmatpush.bf16.msra.mxu3 %v4715_v48  ;;  %v2661_v48 = vld [vmem:[%s6297_s0 + $0x14] sm:$0x1] }
  0x8c   :  { %808 = vmatpush.bf16.msra.mxu0 %v6506_v29 }
  0x8d   :  { %822 = vmatpush.bf16.msra.mxu1 %v6507_v41  ;;  %847 = vmatpush.bf16.msra.mxu2 %v4735_v11  ;;  %v6512_v11 = vld [vmem:[#allocation37_spill] sm:$0xff] }
  0x8e   :  { %861 = vmatpush.bf16.msra.mxu3 %v4739_v36  ;;  %v839_v36 = vunpack.c.l.b16 %v2661_v48 }
  0x90   :  { %809 = vmatpush.bf16.msra.mxu0 %v6508_v55 }
  0x91   :  { %823 = vmatpush.bf16.msra.mxu1 %v6509_v4  ;;  %848 = vmatpush.bf16.msra.mxu2 %v4755_v52  ;;  %v6514_v52 = vld [vmem:[#allocation40_spill] sm:$0xff] }
  0x92   :  { %862 = vmatpush.bf16.msra.mxu3 %v4759_v24  ;;  %v840_v24 = vpack.c.b16 %v839_v36, %v839_v36  ;;  %v6515_v36 = vld [vmem:[#allocation5_spill] sm:$0xff] }
  0x94   :  { %810 = vmatpush.bf16.msra.mxu0 %v6510_v53  ;;  %v842_v48 = vrot.slane %v840_v24, 1  ;;  %v6517_v24 = vld [vmem:[#allocation9_spill] sm:$0xff] }
  0x95   :  { %824 = vmatpush.bf16.msra.mxu1 %v6511_v31  ;;  %849 = vmatpush.bf16.msra.mxu2 %v4775_v2 }
  0x96   :  { %863 = vmatpush.bf16.msra.mxu3 %v4779_v10  ;;  %v841_v10 = vrot.slane %v6503_v3, 1  ;;  %v6518_v3 = vld [vmem:[#allocation10_spill] sm:$0xff] }
  0x98   :  { %811 = vmatpush.bf16.msra.mxu0 %v6512_v11 }
  0x99   :  { %825 = vmatpush.bf16.msra.mxu1 %v6513_v1  ;;  %850 = vmatpush.bf16.msra.mxu2 %v4798_v32  ;;  %v6516_v32 = vld [vmem:[#allocation6_spill] sm:$0xff] }
  0x9a   :  { %864 = vmatpush.bf16.msra.mxu3 %v4802_v44  ;;  %v4931_v44 = vsel %vm599_vm0, %v841_v10, %v842_v48  ;;  %v6519_v10 = vld [vmem:[#allocation13_spill] sm:$0xff]  ;;  %v6520_v48 = vld [vmem:[#allocation14_spill] sm:$0xff] }
  0x9c   :  { %812 = vmatpush.bf16.msra.mxu0 %v6514_v52 }
  0x9d   :  { %826 = vmatpush.bf16.msra.mxu1 %v4645_v18  ;;  %851 = vmatpush.bf16.msra.mxu2 %v4818_v33  ;;  %v6523_v33 = vld [vmem:[#allocation20_spill] sm:$0xff] }
  0x9e   :  { %865 = vmatpush.bf16.msra.mxu3 %v4822_v17 }
  0xa0   :  { %813 = vmatpush.bf16.msra.mxu0 %v4675_v63 }
  0xa1   :  { %827 = vmatpush.bf16.msra.mxu1 %v4678_v39  ;;  %852 = vmatpush.bf16.msra.mxu2 %v4838_v30  ;;  %v190_v30 = vpop.f32.mrf.mxu1 }
  0xa2   :  { %866 = vmatpush.bf16.msra.mxu3 %v4843_v6  ;;  %v176_v6 = vpop.f32.mrf.mxu0 }
  0xa3   :  { %814 = vmatmul.bf16.vlgmr.msra.gmra.mxu0 %v4848_v5 }
  0xa4   :  { %899 = vmatpush.bf16.msrb.mxu0 %v6515_v36  ;;  %828 = vmatmul.bf16.vlgmr.msra.gmra.mxu1 %v4848_v5 }
  0xa5   :  { %913 = vmatpush.bf16.msrb.mxu1 %v6516_v32  ;;  %927 = vmatpush.bf16.msrb.mxu2 %v4104_v8  ;;  %v6522_v8 = vld [vmem:[#allocation18_spill] sm:$0xff] }
  0xa6   :  { %941 = vmatpush.bf16.msrb.mxu3 %v4116_v12  ;;  %853 = vmatmul.bf16.vlgmr.msra.gmra.mxu2 %v4931_v44  ;;  %v6521_v12 = vld [vmem:[#allocation17_spill] sm:$0xff] }
  0xa7   :  { %867 = vmatmul.bf16.vlgmr.msra.gmra.mxu3 %v4931_v44 }
  0xa8   :  { %900 = vmatpush.bf16.msrb.mxu0 %v6517_v24 }
  0xa9   :  { %914 = vmatpush.bf16.msrb.mxu1 %v6518_v3  ;;  %928 = vmatpush.bf16.msrb.mxu2 %v4143_v21  ;;  %v290_v21 = vpop.f32.mrf.mxu2 }
  0xaa   :  { %942 = vmatpush.bf16.msrb.mxu3 %v4154_v25  ;;  %v4952_v25 = vadd.f32 %v290_v21, %v176_v6  ;;  %v304_v17 = vpop.f32.mrf.mxu3  ;;  %v4985_v21 = vpop.f32.mrf.mxu0 }
  0xab   :  { %v4955_v2 = vadd.f32 %v304_v17, %v190_v30  ;;  %6527 = vst [vmem:[#allocation24_spill] sm:$0xff] %v4985_v21  ;;  %v4989_v6 = vpop.f32.mrf.mxu1 }
  0xac   :  { %901 = vmatpush.bf16.msrb.mxu0 %v6519_v10  ;;  %6528 = vst [vmem:[#allocation25_spill] sm:$0xff] %v4989_v6 }
  0xad   :  { %915 = vmatpush.bf16.msrb.mxu1 %v6520_v48  ;;  %929 = vmatpush.bf16.msrb.mxu2 %v4181_v34  ;;  %v6524_v34 = vld [vmem:[#allocation21_spill] sm:$0xff] }
  0xae   :  { %943 = vmatpush.bf16.msrb.mxu3 %v4193_v38  ;;  %v6525_v38 = vld [vmem:[#allocation22_spill] sm:$0xff] }
  0xb0   :  { %902 = vmatpush.bf16.msrb.mxu0 %v6521_v12 }
  0xb1   :  { %916 = vmatpush.bf16.msrb.mxu1 %v6522_v8  ;;  %930 = vmatpush.bf16.msrb.mxu2 %v4217_v46  ;;  %v6526_v46 = vld [vmem:[#allocation23_spill] sm:$0xff]  ;;  %v5004_v6 = vpop.f32.mrf.mxu2 }
  0xb2   :  { %944 = vmatpush.bf16.msrb.mxu3 %v4229_v50  ;;  %6529 = vst [vmem:[#allocation26_spill] sm:$0xff] %v5004_v6  ;;  %v5006_v21 = vpop.f32.mrf.mxu3  ;;  %v6541_v6 = vld [vmem:[#allocation51_spill] sm:$0xff] }
  0xb3   :  { %6530 = vst [vmem:[#allocation27_spill] sm:$0xff] %v5006_v21  ;;  %v6537_v21 = vld [vmem:[#allocation47_spill] sm:$0xff] }
  0xb4   :  { %903 = vmatpush.bf16.msrb.mxu0 %v6523_v33 }
  0xb5   :  { %917 = vmatpush.bf16.msrb.mxu1 %v6524_v34  ;;  %931 = vmatpush.bf16.msrb.mxu2 %v4253_v58 }
  0xb6   :  { %945 = vmatpush.bf16.msrb.mxu3 %v4265_v62 }
  0xb8   :  { %904 = vmatpush.bf16.msrb.mxu0 %v6525_v38 }
  0xb9   :  { %918 = vmatpush.bf16.msrb.mxu1 %v6526_v46  ;;  %932 = vmatpush.bf16.msrb.mxu2 %v4289_v9 }
  0xba   :  { %946 = vmatpush.bf16.msrb.mxu3 %v4301_v14 }
  0xbc   :  { %905 = vmatpush.bf16.msrb.mxu0 %v4319_v23 }
  0xbd   :  { %919 = vmatpush.bf16.msrb.mxu1 %v4329_v27  ;;  %933 = vmatpush.bf16.msrb.mxu2 %v4331_v28 }
  0xbe   :  { %947 = vmatpush.bf16.msrb.mxu3 %v4343_v35 }
  0xc0   :  { %906 = vmatpush.bf16.msrb.mxu0 %v4364_v43  ;;  %v421_v17 = vpop.f32.mrf.mxu0 }
  0xc1   :  { %920 = vmatpush.bf16.msrb.mxu1 %v4377_v51  ;;  %934 = vmatpush.bf16.msrb.mxu2 %v6499_v56  ;;  %v435_v30 = vpop.f32.mrf.mxu1 }
  0xc2   :  { %948 = vmatpush.bf16.msrb.mxu3 %v6500_v57 }
  0xc3   :  { %907 = vmatmul.bf16.vlgmr.msrb.gmra.mxu0 %v4707_v37 }
  0xc4   :  { %955 = vmatpush.bf16.msra.mxu0 %v4390_v59  ;;  %921 = vmatmul.bf16.vlgmr.msrb.gmra.mxu1 %v4707_v37 }
  0xc5   :  { %969 = vmatpush.bf16.msra.mxu1 %v4395_v61  ;;  %987 = vmatpush.bf16.msra.mxu2 %v6501_v19 }
  0xc6   :  { %1001 = vmatpush.bf16.msra.mxu3 %v6502_v16  ;;  %935 = vmatmul.bf16.vlgmr.msrb.gmra.mxu2 %v4694_v60 }
  0xc7   :  { %949 = vmatmul.bf16.vlgmr.msrb.gmra.mxu3 %v4694_v60 }
  0xc8   :  { %956 = vmatpush.bf16.msra.mxu0 %v4437_v20 }
  0xc9   :  { %970 = vmatpush.bf16.msra.mxu1 %v4441_v22  ;;  %988 = vmatpush.bf16.msra.mxu2 %v6504_v45 }
  0xca   :  { %1002 = vmatpush.bf16.msra.mxu3 %v6505_v7 }
  0xcc   :  { %957 = vmatpush.bf16.msra.mxu0 %v4476_v42 }
  0xcd   :  { %971 = vmatpush.bf16.msra.mxu1 %v4481_v47  ;;  %989 = vmatpush.bf16.msra.mxu2 %v6506_v29 }
  0xce   :  { %1003 = vmatpush.bf16.msra.mxu3 %v6507_v41 }
  0xd0   :  { %958 = vmatpush.bf16.msra.mxu0 %v4513_v13 }
  0xd1   :  { %972 = vmatpush.bf16.msra.mxu1 %v4517_v15  ;;  %990 = vmatpush.bf16.msra.mxu2 %v6508_v55  ;;  %v6534_v55 = vld [vmem:[#allocation43_spill] sm:$0xff] }
  0xd2   :  { %1004 = vmatpush.bf16.msra.mxu3 %v6509_v4  ;;  %v6531_v4 = vld [vmem:[#allocation39_spill] sm:$0xff] }
  0xd4   :  { %959 = vmatpush.bf16.msra.mxu0 %v4549_v54 }
  0xd5   :  { %973 = vmatpush.bf16.msra.mxu1 %v4553_v0  ;;  %991 = vmatpush.bf16.msra.mxu2 %v6510_v53  ;;  %v5013_v53 = vpop.f32.mrf.mxu0 }
  0xd6   :  { %1005 = vmatpush.bf16.msra.mxu3 %v6511_v31  ;;  %v6532_v31 = vld [vmem:[#allocation42_spill] sm:$0xff]  ;;  %6533 = vst [vmem:[#allocation28_spill] sm:$0xff] %v5013_v53  ;;  %v556_v53 = vpop.f32.mrf.mxu2 }
  0xd8   :  { %960 = vmatpush.bf16.msra.mxu0 %v4585_v49 }
  0xd9   :  { %974 = vmatpush.bf16.msra.mxu1 %v4595_v26  ;;  %992 = vmatpush.bf16.msra.mxu2 %v6512_v11  ;;  %v6536_v11 = vld [vmem:[#allocation46_spill] sm:$0xff] }
  0xda   :  { %1006 = vmatpush.bf16.msra.mxu3 %v6513_v1  ;;  %v5017_v1 = vpop.f32.mrf.mxu1 }
  0xdb   :  { %6535 = vst [vmem:[#allocation29_spill] sm:$0xff] %v5017_v1  ;;  %v6539_v1 = vld [vmem:[#allocation49_spill] sm:$0xff] }
  0xdc   :  { %961 = vmatpush.bf16.msra.mxu0 %v4624_v40 }
  0xdd   :  { %975 = vmatpush.bf16.msra.mxu1 %v6531_v4  ;;  %993 = vmatpush.bf16.msra.mxu2 %v6514_v52  ;;  %v441_v52 = vadd.f32 %v435_v30, %v4955_v2  ;;  %v6540_v2 = vld [vmem:[#allocation50_spill] sm:$0xff] }
  0xde   :  { %1007 = vmatpush.bf16.msra.mxu3 %v4645_v18  ;;  %v440_v18 = vadd.f32 %v421_v17, %v4952_v25 }
  0xe0   :  { %962 = vmatpush.bf16.msra.mxu0 %v6532_v31  ;;  %v575_v25 = vadd.f32 %v556_v53, %v440_v18  ;;  %v6542_v53 = vld [vmem:[#allocation52_spill] sm:$0xff] }
  0xe1   :  { %976 = vmatpush.bf16.msra.mxu1 %v6534_v55  ;;  %994 = vmatpush.bf16.msra.mxu2 %v4675_v63  ;;  %v6538_v63 = vld [vmem:[#allocation48_spill] sm:$0xff] }
  0xe2   :  { %1008 = vmatpush.bf16.msra.mxu3 %v4678_v39  ;;  %v570_v39 = vpop.f32.mrf.mxu3  ;;  %v707_v30 = vpop.f32.mrf.mxu1 }
  0xe3   :  { %963 = vmatmul.bf16.vlgmr.msra.gmra.mxu0 %v4848_v5 }
  0xe4   :  { %1026 = vmatpush.bf16.msrb.mxu0 %v6536_v11  ;;  %977 = vmatmul.bf16.vlgmr.msra.gmra.mxu1 %v4848_v5 }
  0xe5   :  { %1040 = vmatpush.bf16.msrb.mxu1 %v6537_v21  ;;  %1060 = vmatpush.bf16.msrb.mxu2 %v6515_v36  ;;  %v693_v36 = vpop.f32.mrf.mxu0 }
  0xe6   :  { %1074 = vmatpush.bf16.msrb.mxu3 %v6516_v32  ;;  %995 = vmatmul.bf16.vlgmr.msra.gmra.mxu2 %v4931_v44  ;;  %v576_v32 = vadd.f32 %v570_v39, %v441_v52  ;;  %v5035_v17 = vadd.f32 %v693_v36, %v575_v25  ;;  %v6543_v39 = vld [vmem:[#allocation53_spill] sm:$0xff]  ;;  %v2664_v52 = vld [vmem:[%s6297_s0 + $0x20] sm:$0x1] }
  0xe7   :  { %1009 = vmatmul.bf16.vlgmr.msra.gmra.mxu3 %v4931_v44  ;;  %v6547_v25 = vld [vmem:[#allocation57_spill] sm:$0xff] }
  0xe8   :  { %1027 = vmatpush.bf16.msrb.mxu0 %v6538_v63  ;;  %v5039_v41 = vadd.f32 %v707_v30, %v576_v32  ;;  %v6549_v32 = vld [vmem:[#allocation59_spill] sm:$0xff]  ;;  %v6550_v30 = vld [vmem:[#allocation60_spill] sm:$0xff] }
  0xe9   :  { %1041 = vmatpush.bf16.msrb.mxu1 %v6539_v1  ;;  %1061 = vmatpush.bf16.msrb.mxu2 %v6517_v24  ;;  %v6544_v24 = vld [vmem:[#allocation54_spill] sm:$0xff] }
  0xea   :  { %1075 = vmatpush.bf16.msrb.mxu3 %v6518_v3  ;;  %v716_v18 = vmax.f32 %v5035_v17, %v5039_v41  ;;  %v6545_v3 = vld [vmem:[#allocation55_spill] sm:$0xff] }
  0xec   :  { %1028 = vmatpush.bf16.msrb.mxu0 %v6540_v2 }
  0xed   :  { %1042 = vmatpush.bf16.msrb.mxu1 %v6541_v6  ;;  %1062 = vmatpush.bf16.msrb.mxu2 %v6519_v10  ;;  %v1020_v10 = vunpack.c.l.b16 %v2664_v52  ;;  %v5067_v52 = vpop.f32.mrf.mxu3 }
  0xee   :  { %1076 = vmatpush.bf16.msrb.mxu3 %v6520_v48  ;;  %v6546_v48 = vld [vmem:[#allocation56_spill] sm:$0xff] }
  0xf0   :  { %1029 = vmatpush.bf16.msrb.mxu0 %v6542_v53 }
  0xf1   :  { %1043 = vmatpush.bf16.msrb.mxu1 %v6543_v39  ;;  %1063 = vmatpush.bf16.msrb.mxu2 %v6521_v12  ;;  %v6548_v12 = vld [vmem:[#allocation58_spill] sm:$0xff] }
  0xf2   :  { %1077 = vmatpush.bf16.msrb.mxu3 %v6522_v8  ;;  %v1021_v8 = vpack.c.b16 %v1020_v10, %v1020_v10  ;;  %v6556_v10 = vld [vmem:[#allocation15_spill] sm:$0xff] }
  0xf4   :  { %1030 = vmatpush.bf16.msrb.mxu0 %v6544_v24  ;;  %v1023_v36 = vrot.slane %v1021_v8, 1  ;;  %v5091_v8 = vpop.f32.mrf.mxu0 }
  0xf5   :  { %1044 = vmatpush.bf16.msrb.mxu1 %v6545_v3  ;;  %1064 = vmatpush.bf16.msrb.mxu2 %v6523_v33  ;;  %v1022_v33 = vrot.slane %v4694_v60, 1  ;;  %v6553_v60 = vld [vmem:[#allocation8_spill] sm:$0xff] }
  0xf6   :  { %1078 = vmatpush.bf16.msrb.mxu3 %v6524_v34  ;;  %v5064_v34 = vpop.f32.mrf.mxu2 }
  0xf8   :  { %1031 = vmatpush.bf16.msrb.mxu0 %v6546_v48 }
  0xf9   :  { %1045 = vmatpush.bf16.msrb.mxu1 %v6547_v25  ;;  %1065 = vmatpush.bf16.msrb.mxu2 %v6525_v38  ;;  %v6551_v38 = vld [vmem:[#allocation61_spill] sm:$0xff] }
  0xfa   :  { %1079 = vmatpush.bf16.msrb.mxu3 %v6526_v46  ;;  %v5072_v46 = vsel %vm599_vm0, %v1022_v33, %v1023_v36  ;;  %v6558_v33 = vld [vmem:[#allocation19_spill] sm:$0xff] }
  0xfc   :  { %1032 = vmatpush.bf16.msrb.mxu0 %v6548_v12 }
  0xfd   :  { %1046 = vmatpush.bf16.msrb.mxu1 %v6549_v32  ;;  %1066 = vmatpush.bf16.msrb.mxu2 %v4319_v23  ;;  %v6552_v23 = vld [vmem:[#allocation7_spill] sm:$0xff] }
  0xfe   :  { %1080 = vmatpush.bf16.msrb.mxu3 %v4329_v27  ;;  %v6554_v27 = vld [vmem:[#allocation11_spill] sm:$0xff] }
 0x100   :  { %1033 = vmatpush.bf16.msrb.mxu0 %v6550_v30 }
 0x101   :  { %1047 = vmatpush.bf16.msrb.mxu1 %v6551_v38  ;;  %1067 = vmatpush.bf16.msrb.mxu2 %v4364_v43  ;;  %v6555_v43 = vld [vmem:[#allocation12_spill] sm:$0xff] }
 0x102   :  { %1081 = vmatpush.bf16.msrb.mxu3 %v4377_v51  ;;  %v727_v51 = vpop.f32.mrf.mxu2 }
 0x103   :  { %1034 = vmatmul.bf16.vlgmr.msrb.gmra.mxu0 %v5072_v46 }
 0x104   :  { %1088 = vmatpush.bf16.msra.mxu0 %v6552_v23  ;;  %1048 = vmatmul.bf16.vlgmr.msrb.gmra.mxu1 %v5072_v46  ;;  %v6569_v23 = vld [vmem:[#allocation29_spill] sm:$0xff] }
 0x105   :  { %1102 = vmatpush.bf16.msra.mxu1 %v6553_v60  ;;  %1116 = vmatpush.bf16.msra.mxu2 %v4390_v59  ;;  %v741_v59 = vpop.f32.mrf.mxu3 }
 0x106   :  { %1130 = vmatpush.bf16.msra.mxu3 %v4395_v61  ;;  %1068 = vmatmul.bf16.vlgmr.msrb.gmra.mxu2 %v4848_v5  ;;  %v6557_v61 = vld [vmem:[#allocation16_spill] sm:$0xff] }
 0x107   :  { %1082 = vmatmul.bf16.vlgmr.msrb.gmra.mxu3 %v4848_v5  ;;  %v5094_v5 = vpop.f32.mrf.mxu1 }
 0x108   :  { %1089 = vmatpush.bf16.msra.mxu0 %v6554_v27 }
 0x109   :  { %1103 = vmatpush.bf16.msra.mxu1 %v6555_v43  ;;  %1117 = vmatpush.bf16.msra.mxu2 %v4437_v20 }
 0x10a   :  { %1131 = vmatpush.bf16.msra.mxu3 %v4441_v22  ;;  %v729_v20 = vpop.f32.mrf.mxu2 }
 0x10c   :  { %1090 = vmatpush.bf16.msra.mxu0 %v6556_v10 }
 0x10d   :  { %1104 = vmatpush.bf16.msra.mxu1 %v6557_v61  ;;  %1118 = vmatpush.bf16.msra.mxu2 %v4476_v42  ;;  %v5100_v22 = vpop.f32.mrf.mxu3  ;;  %v755_v42 = vpop.f32.mrf.mxu0 }
 0x10e   :  { %1132 = vmatpush.bf16.msra.mxu3 %v4481_v47 }
 0x10f   :  { %v769_v47 = vpop.f32.mrf.mxu1 }
 0x110   :  { %1091 = vmatpush.bf16.msra.mxu0 %v6558_v33 }
 0x111   :  { %1105 = vmatpush.bf16.msra.mxu1 %v4229_v50  ;;  %1119 = vmatpush.bf16.msra.mxu2 %v4513_v13  ;;  %v6559_v13 = vld [vmem:[#allocation32_spill] sm:$0xff] }
 0x112   :  { %1133 = vmatpush.bf16.msra.mxu3 %v4517_v15  ;;  %v783_v50 = vpop.f32.mrf.mxu2 }
 0x114   :  { %1092 = vmatpush.bf16.msra.mxu0 %v4253_v58 }
 0x115   :  { %1106 = vmatpush.bf16.msra.mxu1 %v4265_v62  ;;  %1120 = vmatpush.bf16.msra.mxu2 %v4549_v54  ;;  %v797_v58 = vpop.f32.mrf.mxu3  ;;  %v757_v62 = vpop.f32.mrf.mxu0  ;;  %v6560_v54 = vld [vmem:[#allocation33_spill] sm:$0xff] }
 0x116   :  { %1134 = vmatpush.bf16.msra.mxu3 %v4553_v0  ;;  %v6561_v0 = vld [vmem:[#allocation34_spill] sm:$0xff] }
 0x118   :  { %1093 = vmatpush.bf16.msra.mxu0 %v4289_v9  ;;  %v771_v9 = vpop.f32.mrf.mxu1 }
 0x119   :  { %1107 = vmatpush.bf16.msra.mxu1 %v4301_v14  ;;  %1121 = vmatpush.bf16.msra.mxu2 %v4585_v49  ;;  %v772_v27 = vadd.f32 %v771_v9, %v5100_v22 }
 0x11a   :  { %1135 = vmatpush.bf16.msra.mxu3 %v4595_v26  ;;  %v785_v14 = vpop.f32.mrf.mxu2 }
 0x11c   :  { %1094 = vmatpush.bf16.msra.mxu0 %v4331_v28  ;;  %v756_v28 = vadd.f32 %v755_v42, %v727_v51  ;;  %v5154_v51 = vld [vmem:[%s6299_s2] ss:$0 sm:$0xff]  ;;  %v6570_v42 = vld [vmem:[#allocation37_spill] sm:$0xff] }
 0x11d   :  { %1108 = vmatpush.bf16.msra.mxu1 %v4343_v35  ;;  %1122 = vmatpush.bf16.msra.mxu2 %v4624_v40  ;;  %v799_v35 = vpop.f32.mrf.mxu3  ;;  %v2667_v40 = vld [vmem:[%s6297_s0 + $0x2c] sm:$0x1]  ;;  %s2648_s0 = sshll.u32 %s4031_s28, 4  ;;  %s2649_s0 = int_to_ptr.vmem [resolvable:$true] %s2648_s0 }
 0x11e   :  { %1136 = vmatpush.bf16.msra.mxu3 %v6531_v4  ;;  %v802_v15 = vadd.f32 %v783_v50, %v756_v28  ;;  %v3854_v28 = vld [vmem:[%s6300_s3 + $0x74] sm:$0xf] }
 0x120   :  { %1095 = vmatpush.bf16.msra.mxu0 %v6499_v56  ;;  %v815_v4 = vpop.f32.mrf.mxu0  ;;  %v6562_v56 = vld [vmem:[#allocation24_spill] sm:$0xff] }
 0x121   :  { %1109 = vmatpush.bf16.msra.mxu1 %v6500_v57  ;;  %1123 = vmatpush.bf16.msra.mxu2 %v6532_v31  ;;  %v6563_v57 = vld [vmem:[#allocation26_spill] sm:$0xff] }
 0x122   :  { %1137 = vmatpush.bf16.msra.mxu3 %v6534_v55  ;;  %v770_v55 = vadd.f32 %v769_v47, %v741_v59  ;;  %v6571_v47 = vld [vmem:[#allocation38_spill] sm:$0xff] }
 0x123   :  { %1096 = vmatmul.bf16.vlgmr.msra.gmra.mxu0 %v4707_v37 }
 0x124   :  { %1148 = vmatpush.bf16.msrb.mxu0 %v6501_v19  ;;  %1110 = vmatmul.bf16.vlgmr.msra.gmra.mxu1 %v4707_v37  ;;  %v803_v26 = vadd.f32 %v797_v58, %v770_v55  ;;  %v293_v19 = vadd.f32 %v6563_v57, %v6562_v56  ;;  %v1183_v55 = vrot.slane %v4707_v37, 1  ;;  %v6574_v37 = vld [vmem:[#allocation44_spill] sm:$0xff] }
 0x125   :  { %1162 = vmatpush.bf16.msrb.mxu1 %v6502_v16  ;;  %1187 = vmatpush.bf16.msrb.mxu2 %v6536_v11  ;;  %v6564_v16 = vld [vmem:[#allocation25_spill] sm:$0xff]  ;;  %v3851_v57 = vld [vmem:[%s6300_s3 + $0x54] sm:$0xf0] }
 0x126   :  { %1201 = vmatpush.bf16.msrb.mxu3 %v6537_v21  ;;  %1124 = vmatmul.bf16.vlgmr.msra.gmra.mxu2 %v4931_v44 }
 0x127   :  { %1138 = vmatmul.bf16.vlgmr.msra.gmra.mxu3 %v4931_v44  ;;  %v829_v44 = vpop.f32.mrf.mxu1 }
 0x128   :  { %1149 = vmatpush.bf16.msrb.mxu0 %v6504_v45  ;;  %v6565_v45 = vld [vmem:[#allocation27_spill] sm:$0xff]  ;;  %v817_v59 = vpop.f32.mrf.mxu0 }
 0x129   :  { %1163 = vmatpush.bf16.msrb.mxu1 %v6505_v7  ;;  %1188 = vmatpush.bf16.msrb.mxu2 %v6538_v63  ;;  %v834_v63 = vadd.f32 %v815_v4, %v802_v15  ;;  %v854_v49 = vpop.f32.mrf.mxu2  ;;  %v307_v7 = vadd.f32 %v6565_v45, %v6564_v16  ;;  %v3192_v16 = vld [vmem:[%s6300_s3 + $0x58] sm:$0xf0] }
 0x12a   :  { %1202 = vmatpush.bf16.msrb.mxu3 %v6539_v1  ;;  %v835_v1 = vadd.f32 %v829_v44, %v803_v26  ;;  %v868_v11 = vpop.f32.mrf.mxu3 }
 0x12b   :  { %v873_v31 = vadd.f32 %v854_v49, %v834_v63  ;;  %v443_v60 = vadd.f32 %v6569_v23, %v307_v7  ;;  %v3198_v63 = vld [vmem:[%s6300_s3 + $0x60] sm:$0xf] }
 0x12c   :  { %1150 = vmatpush.bf16.msrb.mxu0 %v6506_v29  ;;  %v6566_v29 = vld [vmem:[#allocation35_spill] sm:$0xff]  ;;  %v874_v21 = vadd.f32 %v868_v11, %v835_v1  ;;  %v3200_v1 = vld [vmem:[%s6300_s3 + $0x68] sm:$0xf0]  ;;  %v6575_v49 = vld [vmem:[#allocation45_spill] sm:$0xff] }
 0x12d   :  { %1164 = vmatpush.bf16.msrb.mxu1 %v6559_v13  ;;  %1189 = vmatpush.bf16.msrb.mxu2 %v6540_v2  ;;  %v6567_v2 = vld [vmem:[#allocation36_spill] sm:$0xff]  ;;  %v578_v33 = vadd.f32 %v5067_v52, %v443_v60  ;;  %v3174_v60 = vld [vmem:[%s6300_s3 + $0x30] sm:$0xf] }
 0x12e   :  { %1203 = vmatpush.bf16.msrb.mxu3 %v6541_v6  ;;  %v758_v6 = vadd.f32 %v757_v62, %v729_v20  ;;  %v877_v43 = vmax.f32 %v873_v31, %v874_v21  ;;  %v805_v20 = vadd.f32 %v799_v35, %v772_v27  ;;  %v6573_v35 = vld [vmem:[#allocation41_spill] sm:$0xff]  ;;  %v3847_v27 = vld [vmem:[%s6300_s3 + $0x34] sm:$0xf0] }
 0x12f   :  { %v831_v61 = vpop.f32.mrf.mxu1  ;;  %v715_v62 = vadd.f32 %v5094_v5, %v578_v33 }
 0x130   :  { %1151 = vmatpush.bf16.msrb.mxu0 %v6560_v54  ;;  %v804_v10 = vadd.f32 %v785_v14, %v758_v6  ;;  %v879_v22 = vmax.f32 %v716_v18, %v877_v43  ;;  %v837_v52 = vadd.f32 %v831_v61, %v805_v20  ;;  %v3206_v18 = vld [vmem:[%s6300_s3 + $0x70] sm:$0xf]  ;;  %v3849_v6 = vld [vmem:[%s6300_s3 + $0x44] sm:$0xf0]  ;;  %v3846_v43 = vld [vmem:[%s6300_s3 + $0x34] sm:$0xf]  ;;  %v5264_v61 = vor.u32 %v3847_v27, %v3174_v60 }
 0x131   :  { %1165 = vmatpush.bf16.msrb.mxu1 %v6561_v0  ;;  %1190 = vmatpush.bf16.msrb.mxu2 %v6542_v53  ;;  %v1181_v53 = vunpack.c.l.b16 %v2667_v40  ;;  %v856_v9 = vpop.f32.mrf.mxu2  ;;  %v3166_v20 = vld [vmem:[%s6300_s3 + $0x20] sm:$0xf] }
 0x132   :  { %1204 = vmatpush.bf16.msrb.mxu3 %v6543_v39  ;;  %v6568_v39 = vld [vmem:[#allocation28_spill] sm:$0xff]  ;;  %v870_v17 = vpop.f32.mrf.mxu3 }
 0x133   :  { %v442_v36 = vadd.f32 %v6568_v39, %v293_v19  ;;  %v1182_v50 = vpack.c.b16 %v1181_v53, %v1181_v53  ;;  %v876_v5 = vadd.f32 %v870_v17, %v837_v52  ;;  %v3184_v53 = vld [vmem:[%s6300_s3 + $0x48] sm:$0xf0]  ;;  %v3158_v17 = vld [vmem:[%s6300_s3 + $0x10] sm:$0xf] }
 0x134   :  { %1152 = vmatpush.bf16.msrb.mxu0 %v6566_v29 }
 0x135   :  { %1166 = vmatpush.bf16.msrb.mxu1 %v6567_v2  ;;  %1191 = vmatpush.bf16.msrb.mxu2 %v6544_v24  ;;  %v577_v24 = vadd.f32 %v5064_v34, %v442_v36  ;;  %v885_v34 = vadd.f32 %v5154_v51, %v879_v22  ;;  %v1184_v4 = vrot.slane %v1182_v50, 1  ;;  %v3848_v2 = vld [vmem:[%s6300_s3 + $0x44] sm:$0xf]  ;;  %v3845_v22 = vld [vmem:[%s6300_s3 + $0x24] sm:$0xf0] }
 0x136   :  { %1205 = vmatpush.bf16.msrb.mxu3 %v6545_v3  ;;  %v836_v3 = vadd.f32 %v817_v59, %v804_v10  ;;  %v5249_v23 = vor.u32 %v3848_v2, %v3184_v53  ;;  %v3176_v59 = vld [vmem:[%s6300_s3 + $0x38] sm:$0xf0]  ;;  %v5282_v52 = vor.u32 %v3845_v22, %v3166_v20 }
 0x137   :  { %v714_v58 = vadd.f32 %v5091_v8, %v577_v24  ;;  %v887_v14 = vsub.f32 0.0, %v885_v34  ;;  %v6572_v8 = vld [vmem:[#allocation40_spill] sm:$0xff]  ;;  %v1185_v40 = vsel %vm599_vm0, %v1183_v55, %v1184_v4  ;;  %v5267_v33 = vor.u32 %v3846_v43, %v3176_v59  ;;  %v3841_v55 = vld [vmem:[%s6300_s3 + $0x4] sm:$0xf0]  ;;  %v3142_v59 = vld [vmem:[%s6300_s3 + $0xf0] sm:$0xf] }
 0x138   :  { %1153 = vmatpush.bf16.msrb.mxu0 %v6570_v42  ;;  %v875_v41 = vadd.f32 %v856_v9, %v836_v3  ;;  %v3844_v42 = vld [vmem:[%s6300_s3 + $0x24] sm:$0xf]  ;;  %v3168_v3 = vld [vmem:[%s6300_s3 + $0x28] sm:$0xf0]  ;;  %6577 = vst [vmem:[#allocation31_spill] sm:$0xff] %v5282_v52 }
 0x139   :  { %1167 = vmatpush.bf16.msrb.mxu1 %v6571_v47  ;;  %1192 = vmatpush.bf16.msrb.mxu2 %v6546_v48  ;;  %v3855_v48 = vld [vmem:[%s6300_s3 + $0x74] sm:$0xf0]  ;;  %v717_v13 = vmax.f32 %v714_v58, %v715_v62  ;;  %v889_v44 = vmul.f32 1.442695, %v887_v14  ;;  %6576 = vst [vmem:[#allocation30_spill] sm:$0xff] %v5267_v33 }
 0x13a   :  { %1206 = vmatpush.bf16.msrb.mxu3 %v6547_v25  ;;  %v3208_v25 = vld [vmem:[%s6300_s3 + $0x78] sm:$0xf0]  ;;  %v878_v15 = vmax.f32 %v875_v41, %v876_v5  ;;  %v5185_v26 = vor.u32 %v3855_v48, %v3206_v18  ;;  %v5285_v41 = vor.u32 %v3844_v42, %v3168_v3  ;;  %v3843_v18 = vld [vmem:[%s6300_s3 + $0x14] sm:$0xf0]  ;;  %v3842_v14 = vld [vmem:[%s6300_s3 + $0x14] sm:$0xf] }
 0x13b   :  { %v5187_v54 = vor.u32 %v3854_v28, %v3208_v25  ;;  %3981 = vpow2.f32 %v889_v44  ;;  %v5300_v5 = vor.u32 %v3843_v18, %v3158_v17  ;;  %v3152_v44 = vld [vmem:[%s6300_s3 + $0x8] sm:$0xf0]  ;;  %v3144_v22 = vld [vmem:[%s6300_s3 + $0xf8] sm:$0xf0]  ;;  %v3366_v42 = vld [vmem:[%s6300_s3 + $0x1f0] sm:$0xf] }
 0x13c   :  { %1154 = vmatpush.bf16.msrb.mxu0 %v6572_v8  ;;  %v880_v0 = vmax.f32 %v717_v13, %v878_v15  ;;  %6578 = vst [vmem:[#allocation5_spill] sm:$0xff] %v5285_v41  ;;  %v3160_v8 = vld [vmem:[%s6300_s3 + $0x18] sm:$0xf0]  ;;  %v3840_v13 = vld [vmem:[%s6300_s3 + $0x4] sm:$0xf] }
 0x13d   :  { %1168 = vmatpush.bf16.msrb.mxu1 %v6573_v35  ;;  %1193 = vmatpush.bf16.msrb.mxu2 %v6548_v12  ;;  %v3853_v12 = vld [vmem:[%s6300_s3 + $0x64] sm:$0xf0]  ;;  %6579 = vst [vmem:[#allocation6_spill] sm:$0xff] %v5300_v5  ;;  %v5303_v25 = vor.u32 %v3842_v14, %v3160_v8  ;;  %v3150_v35 = vld [vmem:[%s6300_s3] sm:$0xf] }
 0x13e   :  { %1207 = vmatpush.bf16.msrb.mxu3 %v6549_v32  ;;  %v3852_v32 = vld [vmem:[%s6300_s3 + $0x64] sm:$0xf]  ;;  %v886_v31 = vadd.f32 %v5154_v51, %v880_v0  ;;  %v5208_v11 = vor.u32 %v3853_v12, %v3198_v63  ;;  %v5318_v63 = vor.u32 %v3841_v55, %v3150_v35  ;;  %v5321_v0 = vor.u32 %v3840_v13, %v3152_v44  ;;  %v3903_v3 = vld [vmem:[%s6300_s3 + $0x1f4] sm:$0xf0]  ;;  %v3869_v17 = vld [vmem:[%s6300_s3 + $0xe4] sm:$0xf0] }
 0x13f   :  { %v5212_v56 = vor.u32 %v3852_v32, %v3200_v1  ;;  %6580 = vst [vmem:[#allocation9_spill] sm:$0xff] %v5303_v25  ;;  %v3868_v18 = vld [vmem:[%s6300_s3 + $0xe4] sm:$0xf]  ;;  %v3901_v35 = vld [vmem:[%s6300_s3 + $0x1e4] sm:$0xf0] }
 0x140   :  { %1155 = vmatpush.bf16.msrb.mxu0 %v6574_v37  ;;  %v888_v19 = vsub.f32 0.0, %v886_v31  ;;  %v908_v47 = vpop.f32.mrf.mxu0  ;;  %6581 = vst [vmem:[#allocation10_spill] sm:$0xff] %v5318_v63  ;;  %v3900_v55 = vld [vmem:[%s6300_s3 + $0x1e4] sm:$0xf]  ;;  %v3360_v44 = vld [vmem:[%s6300_s3 + $0x1e8] sm:$0xf0] }
 0x141   :  { %1169 = vmatpush.bf16.msrb.mxu1 %v6575_v49  ;;  %1194 = vmatpush.bf16.msrb.mxu2 %v6550_v30  ;;  %v3190_v30 = vld [vmem:[%s6300_s3 + $0x50] sm:$0xf]  ;;  %v3982_v29 = vpop.eup %3981  ;;  %v922_v58 = vpop.f32.mrf.mxu1  ;;  %6582 = vst [vmem:[#allocation13_spill] sm:$0xff] %v5321_v0  ;;  %v3859_v43 = vld [vmem:[%s6300_s3 + $0x94] sm:$0xf0] }
 0x142   :  { %1208 = vmatpush.bf16.msrb.mxu3 %v6551_v38  ;;  %v3850_v38 = vld [vmem:[%s6300_s3 + $0x54] sm:$0xf]  ;;  %v891_v45 = vmul.f32 1.442695, %v888_v19  ;;  %v5228_v7 = vor.u32 %v3851_v57, %v3190_v30  ;;  %v893_v39 = vadd.f32 1.0, %v3982_v29 }
 0x143   :  { %1156 = vmatmul.bf16.vlgmr.msrb.gmra.mxu0 %v5072_v46  ;;  %v5231_v21 = vor.u32 %v3850_v38, %v3192_v16 }
 0x144   :  { %1170 = vmatmul.bf16.vlgmr.msrb.gmra.mxu1 %v5072_v46  ;;  %1195 = vmatmul.bf16.vlgmr.msrb.gmra.mxu2 %v1185_v40  ;;  %v3182_v46 = vld [vmem:[%s6300_s3 + $0x40] sm:$0xf]  ;;  %3983 = vpow2.f32 %v891_v45 }
 0x145   :  { %1470 = vmatpush.bf16.msra.mxu2 %v5185_v26  ;;  %1209 = vmatmul.bf16.vlgmr.msrb.gmra.mxu3 %v1185_v40  ;;  %v5246_v36 = vor.u32 %v3849_v6, %v3182_v46  ;;  %3985 = vrcp.f32 %v893_v39 }
 0x146   :  { %1484 = vmatpush.bf16.msra.mxu3 %v5187_v54 }
 0x148   :  { %v5329_v1 = vpop.f32.mrf.mxu0 }
 0x149   :  { %1471 = vmatpush.bf16.msra.mxu2 %v5208_v11  ;;  %v936_v50 = vpop.f32.mrf.mxu2  ;;  %v5331_v49 = vpop.f32.mrf.mxu1 }
 0x14a   :  { %1485 = vmatpush.bf16.msra.mxu3 %v5212_v56  ;;  %v3984_v10 = vpop.eup %3983  ;;  %v937_v62 = vadd.f32 %v936_v50, %v908_v47  ;;  %v950_v34 = vpop.f32.mrf.mxu3  ;;  %v5369_v50 = vor.u32 %v3903_v3, %v3366_v42  ;;  %v3865_v42 = vld [vmem:[%s6300_s3 + $0xc4] sm:$0xf0]  ;;  %v3864_v3 = vld [vmem:[%s6300_s3 + $0xc4] sm:$0xf] }
 0x14b   :  { %v894_v24 = vadd.f32 1.0, %v3984_v10  ;;  %v951_v9 = vadd.f32 %v950_v34, %v922_v58  ;;  %v3986_v48 = vpop.eup %3985  ;;  %v3871_v10 = vld [vmem:[%s6300_s3 + $0xf4] sm:$0xf0]  ;;  %v3902_v58 = vld [vmem:[%s6300_s3 + $0x1f4] sm:$0xf] }
 0x14c   :  { %v897_v4 = vpack.c.bf16 %v3986_v48, %v3986_v48  ;;  %v5356_v20 = vor.u32 %v3871_v10, %v3142_v59  ;;  %6583 = vst [vmem:[#allocation14_spill] sm:$0xff] %v5369_v50  ;;  %v3134_v34 = vld [vmem:[%s6300_s3 + $0xe0] sm:$0xf]  ;;  %v3136_v48 = vld [vmem:[%s6300_s3 + $0xe8] sm:$0xf0] }
 0x14d   :  { %1472 = vmatpush.bf16.msra.mxu2 %v5228_v7  ;;  %3987 = vrcp.f32 %v894_v24  ;;  %v3870_v24 = vld [vmem:[%s6300_s3 + $0xf4] sm:$0xf]  ;;  %v5394_v14 = vor.u32 %v3869_v17, %v3134_v34  ;;  %v5396_v8 = vor.u32 %v3868_v18, %v3136_v48  ;;  %v3352_v59 = vld [vmem:[%s6300_s3 + $0x1d8] sm:$0xf0]  ;;  %v3342_v34 = vld [vmem:[%s6300_s3 + $0x1c0] sm:$0xf] }
 0x14e   :  { %1486 = vmatpush.bf16.msra.mxu3 %v5231_v21  ;;  %v1386_v37 = vunpack.c.l.b16 %v897_v4  ;;  %v5367_v47 = vor.u32 %v3870_v24, %v3144_v22  ;;  %1356 = vmatpush.bf16.msra.mxu0 %v5356_v20  ;;  %v3118_v22 = vld [vmem:[%s6300_s3 + $0xc0] sm:$0xf]  ;;  %v3897_v17 = vld [vmem:[%s6300_s3 + $0x1c4] sm:$0xf0] }
 0x14f   :  { %v5485_v48 = vor.u32 %v3897_v17, %v3342_v34  ;;  %v3102_v17 = vld [vmem:[%s6300_s3 + $0xa0] sm:$0xf] }
 0x150   :  { %1370 = vmatpush.bf16.msra.mxu1 %v5367_v47 }
 0x151   :  { %1473 = vmatpush.bf16.msra.mxu2 %v5246_v36  ;;  %v5333_v30 = vpop.f32.mrf.mxu2  ;;  %6589 = vst [vmem:[#allocation23_spill] sm:$0xff] %v5485_v48 }
 0x152   :  { %1487 = vmatpush.bf16.msra.mxu3 %v5249_v23  ;;  %v5335_v57 = vpop.f32.mrf.mxu3  ;;  %1357 = vmatpush.bf16.msra.mxu0 %v5394_v14 }
 0x153   :  { %v3988_v28 = vpop.eup %3987 }
 0x154   :  { %v898_v15 = vpack.c.bf16 %v3988_v28, %v3988_v28  ;;  %v3358_v28 = vld [vmem:[%s6300_s3 + $0x1e0] sm:$0xf]  ;;  %1371 = vmatpush.bf16.msra.mxu1 %v5396_v8 }
 0x155   :  { %1474 = vmatpush.bf16.msra.mxu2 %v5264_v61  ;;  %v5410_v13 = vor.u32 %v3901_v35, %v3358_v28  ;;  %v3896_v28 = vld [vmem:[%s6300_s3 + $0x1c4] sm:$0xf]  ;;  %v3344_v35 = vld [vmem:[%s6300_s3 + $0x1c8] sm:$0xf0] }
 0x156   :  { %1488 = vmatpush.bf16.msra.mxu3 %v5267_v33  ;;  %v1387_v12 = vunpack.c.l.b16 %v898_v15  ;;  %v3126_v15 = vld [vmem:[%s6300_s3 + $0xd0] sm:$0xf] }
 0x157   :  { %6585 = vst [vmem:[#allocation18_spill] sm:$0xff] %v5410_v13 }
 0x158   :  { %v5323_v32 = vpack.c.b16 %v1387_v12, %v1386_v37  ;;  %v3867_v12 = vld [vmem:[%s6300_s3 + $0xd4] sm:$0xf0] }
 0x159   :  { %1475 = vmatpush.bf16.msra.mxu2 %v5282_v52 }
 0x15a   :  { %1489 = vmatpush.bf16.msra.mxu3 %v5285_v41 }
 0x15d   :  { %1476 = vmatpush.bf16.msra.mxu2 %v5300_v5 }
 0x15e   :  { %1490 = vmatpush.bf16.msra.mxu3 %v5303_v25 }
 0x160   :  { %v964_v40 = vpop.f32.mrf.mxu0 }
 0x161   :  { %1477 = vmatpush.bf16.msra.mxu2 %v5318_v63  ;;  %v978_v31 = vpop.f32.mrf.mxu1  ;;  %v983_v16 = vadd.f32 %v964_v40, %v937_v62  ;;  %v3368_v62 = vld [vmem:[%s6300_s3 + $0x1f8] sm:$0xf0]  ;;  %v5423_v40 = vor.u32 %v3900_v55, %v3360_v44  ;;  %v5494_v55 = vor.u32 %v3896_v28, %v3344_v35  ;;  %v3110_v44 = vld [vmem:[%s6300_s3 + $0xb0] sm:$0xf]  ;;  %v3861_v28 = vld [vmem:[%s6300_s3 + $0xa4] sm:$0xf0] }
 0x162   :  { %1491 = vmatpush.bf16.msra.mxu3 %v5321_v0  ;;  %v984_v45 = vadd.f32 %v978_v31, %v951_v9  ;;  %v5381_v9 = vor.u32 %v3902_v58, %v3368_v62  ;;  %v3866_v31 = vld [vmem:[%s6300_s3 + $0xd4] sm:$0xf]  ;;  %v5471_v58 = vor.u32 %v3865_v42, %v3118_v22  ;;  %v3120_v62 = vld [vmem:[%s6300_s3 + $0xc8] sm:$0xf0]  ;;  %v3895_v22 = vld [vmem:[%s6300_s3 + $0x1b4] sm:$0xf0] }
 0x163   :  { %6586 = vst [vmem:[#allocation20_spill] sm:$0xff] %v5423_v40  ;;  %v5483_v18 = vor.u32 %v3864_v3, %v3120_v62  ;;  %v3894_v42 = vld [vmem:[%s6300_s3 + $0x1b4] sm:$0xf]  ;;  %v3336_v62 = vld [vmem:[%s6300_s3 + $0x1b8] sm:$0xf0] }
 0x164   :  { %1478 = vmatmul.bf16.vlgmr.msra.gmra.mxu2 %v5323_v32  ;;  %6584 = vst [vmem:[#allocation17_spill] sm:$0xff] %v5381_v9  ;;  %v5535_v34 = vor.u32 %v3894_v42, %v3336_v62  ;;  %v3860_v35 = vld [vmem:[%s6300_s3 + $0xa4] sm:$0xf]  ;;  %v3893_v42 = vld [vmem:[%s6300_s3 + $0x1a4] sm:$0xf0] }
 0x165   :  { %1492 = vmatmul.bf16.vlgmr.msra.gmra.mxu3 %v5323_v32  ;;  %1728 = vmatpush.bf16.msrb.mxu2 %v5369_v50  ;;  %6590 = vst [vmem:[#allocation39_spill] sm:$0xff] %v5494_v55  ;;  %v3892_v62 = vld [vmem:[%s6300_s3 + $0x1a4] sm:$0xf]  ;;  %v3885_v50 = vld [vmem:[%s6300_s3 + $0x164] sm:$0xf0] }
 0x166   :  { %1742 = vmatpush.bf16.msrb.mxu3 %v5381_v9  ;;  %6592 = vst [vmem:[#allocation43_spill] sm:$0xff] %v5535_v34  ;;  %v3884_v0 = vld [vmem:[%s6300_s3 + $0x164] sm:$0xf] }
 0x168   :  { %v5337_v19 = vpop.f32.mrf.mxu0 }
 0x169   :  { %v5339_v38 = vpop.f32.mrf.mxu1  ;;  %v996_v29 = vpop.f32.mrf.mxu2  ;;  %1729 = vmatpush.bf16.msrb.mxu2 %v5410_v13 }
 0x16a   :  { %v1010_v46 = vpop.f32.mrf.mxu3  ;;  %v1015_v6 = vadd.f32 %v996_v29, %v983_v16  ;;  %v3128_v16 = vld [vmem:[%s6300_s3 + $0xd8] sm:$0xf0]  ;;  %1743 = vmatpush.bf16.msrb.mxu3 %v5423_v40 }
 0x16b   :  { %v1016_v2 = vadd.f32 %v1010_v46, %v984_v45  ;;  %v5432_v45 = vor.u32 %v3867_v12, %v3126_v15  ;;  %v5436_v29 = vor.u32 %v3866_v31, %v3128_v16  ;;  %v3350_v46 = vld [vmem:[%s6300_s3 + $0x1d0] sm:$0xf]  ;;  %v3863_v15 = vld [vmem:[%s6300_s3 + $0xb4] sm:$0xf0]  ;;  %v3862_v12 = vld [vmem:[%s6300_s3 + $0xb4] sm:$0xf] }
 0x16c   :  { %v5509_v16 = vor.u32 %v3863_v15, %v3110_v44  ;;  %v5549_v15 = vor.u32 %v3861_v28, %v3102_v17  ;;  %v3328_v28 = vld [vmem:[%s6300_s3 + $0x1a8] sm:$0xf0] }
 0x16d   :  { %1358 = vmatpush.bf16.msra.mxu0 %v5432_v45  ;;  %1372 = vmatpush.bf16.msra.mxu1 %v5436_v29 }
 0x171   :  { %v5407_v4 = vpop.f32.mrf.mxu2  ;;  %1359 = vmatpush.bf16.msra.mxu0 %v5471_v58  ;;  %1373 = vmatpush.bf16.msra.mxu1 %v5483_v18 }
 0x172   :  { %v5421_v37 = vpop.f32.mrf.mxu3 }
 0x175   :  { %1360 = vmatpush.bf16.msra.mxu0 %v5509_v16 }
 0x179   :  { %1361 = vmatpush.bf16.msra.mxu0 %v5549_v15 }
 0x180   :  { %v1035_v53 = vpop.f32.mrf.mxu0 }
 0x181   :  { %v5341_v39 = vadd.f32 %v1035_v53, %v1015_v6  ;;  %v1049_v60 = vpop.f32.mrf.mxu1  ;;  %v3899_v6 = vld [vmem:[%s6300_s3 + $0x1d4] sm:$0xf0] }
 0x182   :  { %v5343_v27 = vadd.f32 %v1049_v60, %v1016_v2  ;;  %v3898_v2 = vld [vmem:[%s6300_s3 + $0x1d4] sm:$0xf]  ;;  %v5452_v60 = vor.u32 %v3899_v6, %v3350_v46  ;;  %v3112_v46 = vld [vmem:[%s6300_s3 + $0xb8] sm:$0xf0] }
 0x183   :  { %v5459_v24 = vor.u32 %v3898_v2, %v3352_v59  ;;  %v5517_v2 = vor.u32 %v3862_v12, %v3112_v46  ;;  %v3334_v59 = vld [vmem:[%s6300_s3 + $0x1b0] sm:$0xf]  ;;  %v3104_v12 = vld [vmem:[%s6300_s3 + $0xa8] sm:$0xf0] }
 0x184   :  { %6587 = vst [vmem:[#allocation21_spill] sm:$0xff] %v5452_v60  ;;  %1730 = vmatpush.bf16.msrb.mxu2 %v5452_v60  ;;  %v5529_v3 = vor.u32 %v3895_v22, %v3334_v59  ;;  %v5557_v59 = vor.u32 %v3860_v35, %v3104_v12  ;;  %v3326_v22 = vld [vmem:[%s6300_s3 + $0x1a0] sm:$0xf]  ;;  %v5575_v35 = vor.u32 %v3892_v62, %v3328_v28  ;;  %v3094_v12 = vld [vmem:[%s6300_s3 + $0x90] sm:$0xf] }
 0x185   :  { %6588 = vst [vmem:[#allocation22_spill] sm:$0xff] %v5459_v24  ;;  %1744 = vmatpush.bf16.msrb.mxu3 %v5459_v24  ;;  %1374 = vmatpush.bf16.msra.mxu1 %v5517_v2  ;;  %v5569_v17 = vor.u32 %v3893_v42, %v3326_v22  ;;  %v3858_v22 = vld [vmem:[%s6300_s3 + $0x94] sm:$0xf]  ;;  %v3096_v62 = vld [vmem:[%s6300_s3 + $0x98] sm:$0xf0] }
 0x186   :  { %6591 = vst [vmem:[#allocation42_spill] sm:$0xff] %v5529_v3  ;;  %v3887_v24 = vld [vmem:[%s6300_s3 + $0x174] sm:$0xf0] }
 0x187   :  { %6593 = vst [vmem:[#allocation46_spill] sm:$0xff] %v5569_v17 }
 0x188   :  { %v5506_v31 = vpop.f32.mrf.mxu0  ;;  %1731 = vmatpush.bf16.msrb.mxu2 %v5485_v48  ;;  %6594 = vst [vmem:[#allocation47_spill] sm:$0xff] %v5575_v35  ;;  %v3857_v48 = vld [vmem:[%s6300_s3 + $0x84] sm:$0xf0] }
 0x189   :  { %v5450_v53 = vpop.f32.mrf.mxu2  ;;  %v5514_v6 = vpop.f32.mrf.mxu1  ;;  %1745 = vmatpush.bf16.msrb.mxu3 %v5494_v55  ;;  %1375 = vmatpush.bf16.msra.mxu1 %v5557_v59  ;;  %v3318_v55 = vld [vmem:[%s6300_s3 + $0x190] sm:$0xf] }
 0x18a   :  { %v5457_v10 = vpop.f32.mrf.mxu3 }
 0x18c   :  { %1732 = vmatpush.bf16.msrb.mxu2 %v5529_v3  ;;  %v5597_v3 = vor.u32 %v3858_v22, %v3096_v62  ;;  %v3320_v22 = vld [vmem:[%s6300_s3 + $0x198] sm:$0xf0] }
 0x18d   :  { %1746 = vmatpush.bf16.msrb.mxu3 %v5535_v34  ;;  %v5589_v34 = vor.u32 %v3859_v43, %v3094_v12  ;;  %v3890_v43 = vld [vmem:[%s6300_s3 + $0x194] sm:$0xf] }
 0x18e   :  { %1376 = vmatpush.bf16.msra.mxu1 %v5597_v3  ;;  %v5615_v62 = vor.u32 %v3890_v43, %v3320_v22  ;;  %v3088_v43 = vld [vmem:[%s6300_s3 + $0x88] sm:$0xf0]  ;;  %v3286_v22 = vld [vmem:[%s6300_s3 + $0x170] sm:$0xf] }
 0x18f   :  { %1362 = vmatpush.bf16.msra.mxu0 %v5589_v34  ;;  %v5641_v40 = vor.u32 %v3887_v24, %v3286_v22  ;;  %v3889_v24 = vld [vmem:[%s6300_s3 + $0x184] sm:$0xf0] }
 0x190   :  { %1733 = vmatpush.bf16.msrb.mxu2 %v5569_v17  ;;  %v3891_v17 = vld [vmem:[%s6300_s3 + $0x194] sm:$0xf0]  ;;  %6596 = vst [vmem:[#allocation49_spill] sm:$0xff] %v5615_v62 }
 0x191   :  { %v5546_v44 = vpop.f32.mrf.mxu2  ;;  %1747 = vmatpush.bf16.msrb.mxu3 %v5575_v35  ;;  %v5609_v12 = vor.u32 %v3891_v17, %v3318_v55  ;;  %v3086_v35 = vld [vmem:[%s6300_s3 + $0x80] sm:$0xf]  ;;  %v3856_v55 = vld [vmem:[%s6300_s3 + $0x84] sm:$0xf] }
 0x192   :  { %v5554_v46 = vpop.f32.mrf.mxu3  ;;  %v5627_v17 = vor.u32 %v3857_v48, %v3086_v35  ;;  %v5639_v60 = vor.u32 %v3856_v55, %v3088_v43  ;;  %v3886_v48 = vld [vmem:[%s6300_s3 + $0x174] sm:$0xf]  ;;  %v3288_v35 = vld [vmem:[%s6300_s3 + $0x178] sm:$0xf0]  ;;  %v3888_v55 = vld [vmem:[%s6300_s3 + $0x184] sm:$0xf] }
 0x193   :  { %6595 = vst [vmem:[#allocation48_spill] sm:$0xff] %v5609_v12  ;;  %v3312_v43 = vld [vmem:[%s6300_s3 + $0x188] sm:$0xf0] }
 0x194   :  { %1734 = vmatpush.bf16.msrb.mxu2 %v5609_v12  ;;  %v3310_v12 = vld [vmem:[%s6300_s3 + $0x180] sm:$0xf]  ;;  %1363 = vmatpush.bf16.msra.mxu0 %v5627_v17 }
 0x195   :  { %1748 = vmatpush.bf16.msrb.mxu3 %v5615_v62  ;;  %v5653_v62 = vor.u32 %v3886_v48, %v3288_v35  ;;  %1377 = vmatpush.bf16.msra.mxu1 %v5639_v60  ;;  %v5666_v9 = vor.u32 %v3889_v24, %v3310_v12  ;;  %v5668_v48 = vor.u32 %v3888_v55, %v3312_v43  ;;  %v3278_v35 = vld [vmem:[%s6300_s3 + $0x160] sm:$0xf]  ;;  %v3280_v24 = vld [vmem:[%s6300_s3 + $0x168] sm:$0xf0] }
 0x196   :  { %v5682_v12 = vor.u32 %v3885_v50, %v3278_v35  ;;  %v5691_v43 = vor.u32 %v3884_v0, %v3280_v24  ;;  %v3270_v50 = vld [vmem:[%s6300_s3 + $0x150] sm:$0xf]  ;;  %v3883_v35 = vld [vmem:[%s6300_s3 + $0x154] sm:$0xf0]  ;;  %v3272_v0 = vld [vmem:[%s6300_s3 + $0x158] sm:$0xf0] }
 0x197   :  { %6597 = vst [vmem:[#allocation50_spill] sm:$0xff] %v5666_v9 }
 0x198   :  { %1597 = vmatpush.bf16.msrb.mxu0 %v5641_v40  ;;  %6598 = vst [vmem:[#allocation51_spill] sm:$0xff] %v5668_v48  ;;  %1735 = vmatpush.bf16.msrb.mxu2 %v5666_v9  ;;  %v3264_v9 = vld [vmem:[%s6300_s3 + $0x148] sm:$0xf0] }
 0x199   :  { %1611 = vmatpush.bf16.msrb.mxu1 %v5653_v62  ;;  %1749 = vmatpush.bf16.msrb.mxu3 %v5668_v48 }
 0x19c   :  { %1893 = vmatpush.bf16.msra.mxu2 %v5356_v20  ;;  %1598 = vmatpush.bf16.msrb.mxu0 %v5682_v12  ;;  %v3882_v20 = vld [vmem:[%s6300_s3 + $0x154] sm:$0xf] }
 0x19d   :  { %1907 = vmatpush.bf16.msra.mxu3 %v5367_v47  ;;  %1612 = vmatpush.bf16.msrb.mxu1 %v5691_v43  ;;  %v5704_v47 = vor.u32 %v3883_v35, %v3270_v50  ;;  %v5711_v24 = vor.u32 %v3882_v20, %v3272_v0  ;;  %v3262_v50 = vld [vmem:[%s6300_s3 + $0x140] sm:$0xf]  ;;  %v3881_v35 = vld [vmem:[%s6300_s3 + $0x144] sm:$0xf0] }
 0x19e   :  { %v5726_v0 = vor.u32 %v3881_v35, %v3262_v50 }
 0x1a0   :  { %v5586_v42 = vpop.f32.mrf.mxu0  ;;  %1894 = vmatpush.bf16.msra.mxu2 %v5394_v14  ;;  %1599 = vmatpush.bf16.msrb.mxu0 %v5704_v47  ;;  %v3880_v14 = vld [vmem:[%s6300_s3 + $0x144] sm:$0xf] }
 0x1a1   :  { %v5594_v28 = vpop.f32.mrf.mxu1  ;;  %1908 = vmatpush.bf16.msra.mxu3 %v5396_v8  ;;  %1613 = vmatpush.bf16.msrb.mxu1 %v5711_v24  ;;  %v1098_v8 = vadd.f32 %v5586_v42, %v5450_v53  ;;  %v5735_v41 = vor.u32 %v3880_v14, %v3264_v9  ;;  %v3254_v53 = vld [vmem:[%s6300_s3 + $0x130] sm:$0xf]  ;;  %v3256_v42 = vld [vmem:[%s6300_s3 + $0x138] sm:$0xf0] }
 0x1a2   :  { %v1112_v25 = vadd.f32 %v5594_v28, %v5457_v10  ;;  %v3879_v10 = vld [vmem:[%s6300_s3 + $0x134] sm:$0xf0] }
 0x1a3   :  { %v5748_v9 = vor.u32 %v3879_v10, %v3254_v53  ;;  %v3248_v53 = vld [vmem:[%s6300_s3 + $0x128] sm:$0xf0] }
 0x1a4   :  { %1895 = vmatpush.bf16.msra.mxu2 %v5432_v45  ;;  %1600 = vmatpush.bf16.msrb.mxu0 %v5726_v0  ;;  %v3878_v45 = vld [vmem:[%s6300_s3 + $0x134] sm:$0xf] }
 0x1a5   :  { %1909 = vmatpush.bf16.msra.mxu3 %v5436_v29  ;;  %1614 = vmatpush.bf16.msrb.mxu1 %v5735_v41  ;;  %v5755_v50 = vor.u32 %v3878_v45, %v3256_v42  ;;  %v3240_v42 = vld [vmem:[%s6300_s3 + $0x118] sm:$0xf0] }
 0x1a8   :  { %v5687_v55 = vpop.f32.mrf.mxu0  ;;  %1896 = vmatpush.bf16.msra.mxu2 %v5471_v58  ;;  %1601 = vmatpush.bf16.msrb.mxu0 %v5748_v9  ;;  %v3876_v58 = vld [vmem:[%s6300_s3 + $0x124] sm:$0xf] }
 0x1a9   :  { %v1125_v13 = vpop.f32.mrf.mxu2  ;;  %v1113_v63 = vpop.f32.mrf.mxu1  ;;  %1910 = vmatpush.bf16.msra.mxu3 %v5483_v18  ;;  %1615 = vmatpush.bf16.msrb.mxu1 %v5755_v50  ;;  %v5779_v45 = vor.u32 %v3876_v58, %v3248_v53 }
 0x1aa   :  { %v1139_v22 = vpop.f32.mrf.mxu3  ;;  %v1144_v29 = vadd.f32 %v1125_v13, %v1098_v8  ;;  %v3246_v13 = vld [vmem:[%s6300_s3 + $0x120] sm:$0xf] }
 0x1ab   :  { %v1145_v28 = vadd.f32 %v1139_v22, %v1112_v25  ;;  %v3877_v25 = vld [vmem:[%s6300_s3 + $0x124] sm:$0xf0] }
 0x1ac   :  { %v5772_v8 = vor.u32 %v3877_v25, %v3246_v13  ;;  %1897 = vmatpush.bf16.msra.mxu2 %v5509_v16  ;;  %v3238_v16 = vld [vmem:[%s6300_s3 + $0x110] sm:$0xf] }
 0x1ad   :  { %1911 = vmatpush.bf16.msra.mxu3 %v5517_v2  ;;  %1616 = vmatpush.bf16.msrb.mxu1 %v5779_v45 }
 0x1ae   :  { %1602 = vmatpush.bf16.msrb.mxu0 %v5772_v8 }
 0x1b0   :  { %1898 = vmatpush.bf16.msra.mxu2 %v5549_v15 }
 0x1b1   :  { %v1127_v48 = vpop.f32.mrf.mxu2  ;;  %1912 = vmatpush.bf16.msra.mxu3 %v5557_v59 }
 0x1b2   :  { %v1141_v20 = vpop.f32.mrf.mxu3 }
 0x1b4   :  { %1899 = vmatpush.bf16.msra.mxu2 %v5589_v34 }
 0x1b5   :  { %1913 = vmatpush.bf16.msra.mxu3 %v5597_v3 }
 0x1b8   :  { %1900 = vmatpush.bf16.msra.mxu2 %v5627_v17  ;;  %v3446_v17 = vld [vmem:[%s6300_s3 + $0x270] sm:$0xf] }
 0x1b9   :  { %1914 = vmatpush.bf16.msra.mxu3 %v5639_v60  ;;  %v3918_v60 = vld [vmem:[%s6300_s3 + $0x274] sm:$0xf] }
 0x1c0   :  { %v1157_v5 = vpop.f32.mrf.mxu0 }
 0x1c1   :  { %v1171_v52 = vpop.f32.mrf.mxu1  ;;  %v1176_v35 = vadd.f32 %v1157_v5, %v1144_v29  ;;  %v939_v5 = vadd.f32 %v5333_v30, %v5329_v1 }
 0x1c2   :  { %v1177_v14 = vadd.f32 %v1171_v52, %v1145_v28  ;;  %v953_v52 = vadd.f32 %v5335_v57, %v5331_v49  ;;  %v1114_v49 = vadd.f32 %v1113_v63, %v5554_v46 }
 0x1c3   :  { %v985_v1 = vadd.f32 %v5337_v19, %v939_v5  ;;  %v3875_v19 = vld [vmem:[%s6300_s3 + $0x114] sm:$0xf0]  ;;  %v3232_v5 = vld [vmem:[%s6300_s3 + $0x108] sm:$0xf0] }
 0x1c4   :  { %v986_v30 = vadd.f32 %v5339_v38, %v953_v52  ;;  %v3874_v38 = vld [vmem:[%s6300_s3 + $0x114] sm:$0xf]  ;;  %v1147_v28 = vadd.f32 %v1141_v20, %v1114_v49 }
 0x1c5   :  { %v1017_v2 = vadd.f32 %v5407_v4, %v985_v1  ;;  %v5809_v4 = vor.u32 %v3874_v38, %v3240_v42 }
 0x1c6   :  { %v1018_v63 = vadd.f32 %v5421_v37, %v986_v30 }
 0x1c7   :  { %v1196_v33 = vpop.f32.mrf.mxu2  ;;  %1617 = vmatpush.bf16.msrb.mxu1 %v5809_v4 }
 0x1c8   :  { %v1215_v18 = vadd.f32 %v1196_v33, %v1176_v35  ;;  %v1210_v22 = vpop.f32.mrf.mxu3  ;;  %v1100_v33 = vadd.f32 %v5687_v55, %v5546_v44  ;;  %v1159_v29 = vpop.f32.mrf.mxu0  ;;  %v5799_v55 = vor.u32 %v3875_v19, %v3238_v16  ;;  %v6599_v35 = vmax.f32 %v5341_v39, %v5343_v27  ;;  %v3230_v39 = vld [vmem:[%s6300_s3 + $0x100] sm:$0xf]  ;;  %v3873_v27 = vld [vmem:[%s6300_s3 + $0x104] sm:$0xf0] }
 0x1c9   :  { %v1216_v10 = vadd.f32 %v1210_v22, %v1177_v14  ;;  %v1173_v46 = vpop.f32.mrf.mxu1  ;;  %v1057_v13 = vadd.f32 %v5514_v6, %v1018_v63  ;;  %v5825_v59 = vor.u32 %v3873_v27, %v3230_v39  ;;  %v3430_v27 = vld [vmem:[%s6300_s3 + $0x250] sm:$0xf] }
 0x1ca   :  { %v1146_v44 = vadd.f32 %v1127_v48, %v1100_v33  ;;  %1603 = vmatpush.bf16.msrb.mxu0 %v5799_v55  ;;  %v1056_v48 = vadd.f32 %v5506_v31, %v1017_v2  ;;  %v1179_v20 = vadd.f32 %v1173_v46, %v1147_v28  ;;  %v3872_v31 = vld [vmem:[%s6300_s3 + $0x104] sm:$0xf] }
 0x1cb   :  { %v1219_v57 = vmax.f32 %v1215_v18, %v1216_v10  ;;  %v5832_v22 = vor.u32 %v3872_v31, %v3232_v5  ;;  %v3915_v31 = vld [vmem:[%s6300_s3 + $0x254] sm:$0xf0] }
 0x1cc   :  { %v1178_v37 = vadd.f32 %v1159_v29, %v1146_v44  ;;  %v1059_v53 = vmax.f32 %v1056_v48, %v1057_v13  ;;  %v3448_v44 = vld [vmem:[%s6300_s3 + $0x278] sm:$0xf0]  ;;  %v3917_v48 = vld [vmem:[%s6300_s3 + $0x264] sm:$0xf0]  ;;  %v3916_v13 = vld [vmem:[%s6300_s3 + $0x264] sm:$0xf]  ;;  %v5898_v5 = vor.u32 %v3915_v31, %v3430_v27 }
 0x1cd   :  { %v1221_v14 = vmax.f32 %v6599_v35, %v1219_v57  ;;  %1618 = vmatpush.bf16.msrb.mxu1 %v5832_v22  ;;  %v5853_v35 = vor.u32 %v3918_v60, %v3448_v44  ;;  %v3905_v60 = vld [vmem:[%s6300_s3 + $0x204] sm:$0xf0]  ;;  %v3904_v44 = vld [vmem:[%s6300_s3 + $0x204] sm:$0xf] }
 0x1ce   :  { %1604 = vmatpush.bf16.msrb.mxu0 %v5825_v59 }
 0x1cf   :  { %v1223_v25 = vadd.f32 %v5154_v51, %v1221_v14  ;;  %v1198_v58 = vpop.f32.mrf.mxu2  ;;  %v3438_v14 = vld [vmem:[%s6300_s3 + $0x260] sm:$0xf] }
 0x1d0   :  { %v1217_v15 = vadd.f32 %v1198_v58, %v1178_v37  ;;  %v1212_v6 = vpop.f32.mrf.mxu3  ;;  %v5876_v58 = vor.u32 %v3917_v48, %v3438_v14  ;;  %v6617_v14 = vld [vmem:[#allocation46_spill] sm:$0xff]  ;;  %v6619_v48 = vld [vmem:[#allocation48_spill] sm:$0xff] }
 0x1d1   :  { %v1225_v52 = vsub.f32 0.0, %v1223_v25  ;;  %v1218_v18 = vadd.f32 %v1212_v6, %v1179_v20  ;;  %v3440_v25 = vld [vmem:[%s6300_s3 + $0x268] sm:$0xf0]  ;;  %v3432_v6 = vld [vmem:[%s6300_s3 + $0x258] sm:$0xf0] }
 0x1d2   :  { %v5878_v39 = vor.u32 %v3916_v13, %v3440_v25  ;;  %v6620_v13 = vld [vmem:[#allocation49_spill] sm:$0xff]  ;;  %v6621_v25 = vld [vmem:[#allocation50_spill] sm:$0xff] }
 0x1d3   :  { %v1227_v10 = vmul.f32 1.442695, %v1225_v52  ;;  %v1220_v1 = vmax.f32 %v1217_v15, %v1218_v18  ;;  %v3914_v15 = vld [vmem:[%s6300_s3 + $0x254] sm:$0xf]  ;;  %v3422_v18 = vld [vmem:[%s6300_s3 + $0x240] sm:$0xf] }
 0x1d4   :  { %v5900_v52 = vor.u32 %v3914_v15, %v3432_v6 }
 0x1d5   :  { %3989 = vpow2.f32 %v1227_v10  ;;  %v1222_v30 = vmax.f32 %v1059_v53, %v1220_v1  ;;  %v3913_v53 = vld [vmem:[%s6300_s3 + $0x244] sm:$0xf0] }
 0x1d6   :  { %v5918_v10 = vor.u32 %v3913_v53, %v3422_v18 }
 0x1d7   :  { %v1224_v33 = vadd.f32 %v5154_v51, %v1222_v30  ;;  %v3919_v51 = vld [vmem:[%s6300_s3 + $0x274] sm:$0xf0]  ;;  %v3414_v30 = vld [vmem:[%s6300_s3 + $0x230] sm:$0xf] }
 0x1d8   :  { %v5851_v28 = vor.u32 %v3919_v51, %v3446_v17  ;;  %v3390_v51 = vld [vmem:[%s6300_s3 + $0x200] sm:$0xf] }
 0x1d9   :  { %v1226_v34 = vsub.f32 0.0, %v1224_v33  ;;  %v3911_v33 = vld [vmem:[%s6300_s3 + $0x234] sm:$0xf0] }
 0x1db   :  { %v3990_v49 = vpop.eup %3989  ;;  %v1229_v3 = vmul.f32 1.442695, %v1226_v34  ;;  %v1515_v34 = vrot.slane %v5323_v32, 1 }
 0x1dc   :  { %v1231_v57 = vadd.f32 1.0, %v3990_v49  ;;  %v5939_v49 = vor.u32 %v3911_v33, %v3414_v30 }
 0x1dd   :  { %3991 = vpow2.f32 %v1229_v3 }
 0x1de   :  { %3993 = vrcp.f32 %v1231_v57  ;;  %v3406_v57 = vld [vmem:[%s6300_s3 + $0x220] sm:$0xf] }
 0x1e3   :  { %v3992_v29 = vpop.eup %3991 }
 0x1e4   :  { %v1232_v16 = vadd.f32 1.0, %v3992_v29  ;;  %v3994_v19 = vpop.eup %3993  ;;  %v3408_v29 = vld [vmem:[%s6300_s3 + $0x228] sm:$0xf0] }
 0x1e5   :  { %v1235_v38 = vpack.c.bf16 %v3994_v19, %v3994_v19 }
 0x1e6   :  { %3995 = vrcp.f32 %v1232_v16 }
 0x1e7   :  { %v1272_v46 = vunpack.c.l.b16 %v1235_v38  ;;  %v3398_v38 = vld [vmem:[%s6300_s3 + $0x210] sm:$0xf] }
 0x1ec   :  { %v3996_v2 = vpop.eup %3995 }
 0x1ed   :  { %v1236_v63 = vpack.c.bf16 %v3996_v2, %v3996_v2  ;;  %v3400_v2 = vld [vmem:[%s6300_s3 + $0x218] sm:$0xf0] }
 0x1ef   :  { %v1273_v42 = vunpack.c.l.b16 %v1236_v63 }
 0x1f1   :  { %v5858_v37 = vpack.c.b16 %v1273_v42, %v1272_v46  ;;  %v6614_v42 = vld [vmem:[#allocation39_spill] sm:$0xff] }
 0x1f3   :  { %1364 = vmatmul.bf16.vlgmr.msra.gmra.mxu0 %v5858_v37  ;;  %1378 = vmatmul.bf16.vlgmr.msra.gmra.mxu1 %v5858_v37  ;;  %v5872_v20 = vrot.slane %v5858_v37, 1 }
 0x1f4   :  { %1859 = vmatpush.bf16.msra.mxu0 %v5851_v28  ;;  %1873 = vmatpush.bf16.msra.mxu1 %v5853_v35 }
 0x1f5   :  { %1736 = vmatmul.bf16.vlgmr.msrb.gmra.mxu2 %v5872_v20  ;;  %1750 = vmatmul.bf16.vlgmr.msrb.gmra.mxu3 %v5872_v20 }
 0x1f6   :  { %1949 = vmatpush.bf16.msrb.mxu2 %v5641_v40  ;;  %1963 = vmatpush.bf16.msrb.mxu3 %v5653_v62  ;;  %v3912_v40 = vld [vmem:[%s6300_s3 + $0x244] sm:$0xf]  ;;  %v3424_v62 = vld [vmem:[%s6300_s3 + $0x248] sm:$0xf0] }
 0x1f7   :  { %v5920_v1 = vor.u32 %v3912_v40, %v3424_v62 }
 0x1f8   :  { %1860 = vmatpush.bf16.msra.mxu0 %v5876_v58  ;;  %1874 = vmatpush.bf16.msra.mxu1 %v5878_v39 }
 0x1fa   :  { %1950 = vmatpush.bf16.msrb.mxu2 %v5682_v12  ;;  %1964 = vmatpush.bf16.msrb.mxu3 %v5691_v43  ;;  %v3910_v12 = vld [vmem:[%s6300_s3 + $0x234] sm:$0xf]  ;;  %v3416_v43 = vld [vmem:[%s6300_s3 + $0x238] sm:$0xf0] }
 0x1fb   :  { %v5941_v3 = vor.u32 %v3910_v12, %v3416_v43  ;;  %v3927_v12 = vld [vmem:[%s6302_s5 + $0x38] sm:$0xff] }
 0x1fc   :  { %1861 = vmatpush.bf16.msra.mxu0 %v5898_v5  ;;  %1875 = vmatpush.bf16.msra.mxu1 %v5900_v52  ;;  %v3935_v43 = vld [vmem:[%s6302_s5 + $0x78] sm:$0xff] }
 0x1fe   :  { %1951 = vmatpush.bf16.msrb.mxu2 %v5704_v47  ;;  %1965 = vmatpush.bf16.msrb.mxu3 %v5711_v24  ;;  %v3909_v47 = vld [vmem:[%s6300_s3 + $0x224] sm:$0xf0]  ;;  %v3908_v24 = vld [vmem:[%s6300_s3 + $0x224] sm:$0xf] }
 0x1ff   :  { %v3407_v16 = vor.u32 %v3909_v47, %v3406_v57  ;;  %v3411_v19 = vor.u32 %v3908_v24, %v3408_v29  ;;  %v3925_v47 = vld [vmem:[%s6302_s5 + $0x28] sm:$0xff] }
 0x200   :  { %1862 = vmatpush.bf16.msra.mxu0 %v5918_v10  ;;  %1876 = vmatpush.bf16.msra.mxu1 %v5920_v1 }
 0x202   :  { %1952 = vmatpush.bf16.msrb.mxu2 %v5726_v0  ;;  %1966 = vmatpush.bf16.msrb.mxu3 %v5735_v41  ;;  %v3907_v0 = vld [vmem:[%s6300_s3 + $0x214] sm:$0xf0]  ;;  %v3906_v41 = vld [vmem:[%s6300_s3 + $0x214] sm:$0xf] }
 0x203   :  { %1605 = vmatmul.bf16.vlgmr.msrb.gmra.mxu0 %v1515_v34  ;;  %1619 = vmatmul.bf16.vlgmr.msrb.gmra.mxu1 %v1515_v34  ;;  %v3399_v17 = vor.u32 %v3907_v0, %v3398_v38  ;;  %v3403_v63 = vor.u32 %v3906_v41, %v3400_v2  ;;  %v3923_v41 = vld [vmem:[%s6302_s5 + $0x18] sm:$0xff] }
 0x204   :  { %1863 = vmatpush.bf16.msra.mxu0 %v5939_v49  ;;  %1877 = vmatpush.bf16.msra.mxu1 %v5941_v3 }
 0x205   :  { %1901 = vmatmul.bf16.vlgmr.msra.gmra.mxu2 %v1515_v34  ;;  %1915 = vmatmul.bf16.vlgmr.msra.gmra.mxu3 %v1515_v34  ;;  %v3926_v34 = vld [vmem:[%s6302_s5 + $0x30] sm:$0xff] }
 0x206   :  { %1953 = vmatpush.bf16.msrb.mxu2 %v5748_v9  ;;  %1967 = vmatpush.bf16.msrb.mxu3 %v5755_v50  ;;  %v3392_v9 = vld [vmem:[%s6300_s3 + $0x208] sm:$0xf0]  ;;  %v3391_v50 = vor.u32 %v3905_v60, %v3390_v51  ;;  %v3943_v51 = vld [vmem:[%s6302_s5 + $0xb8] sm:$0xff] }
 0x207   :  { %v3395_v46 = vor.u32 %v3904_v44, %v3392_v9  ;;  %v3951_v60 = vld [vmem:[%s6302_s5 + $0xf8] sm:$0xff]  ;;  %v3922_v44 = vld [vmem:[%s6302_s5 + $0x10] sm:$0xff] }
 0x208   :  { %1864 = vmatpush.bf16.msra.mxu0 %v3407_v16  ;;  %1878 = vmatpush.bf16.msra.mxu1 %v3411_v19  ;;  %v3931_v9 = vld [vmem:[%s6302_s5 + $0x58] sm:$0xff] }
 0x20a   :  { %1954 = vmatpush.bf16.msrb.mxu2 %v5772_v8  ;;  %1968 = vmatpush.bf16.msrb.mxu3 %v5779_v45  ;;  %v1777_v8 = vrot.slane %v5323_v32, 2  ;;  %v2013_v32 = vrot.slane %v5858_v37, 2  ;;  %v6609_v45 = vld [vmem:[#allocation18_spill] sm:$0xff] }
 0x20c   :  { %1865 = vmatpush.bf16.msra.mxu0 %v3399_v17  ;;  %1879 = vmatpush.bf16.msra.mxu1 %v3403_v63 }
 0x20e   :  { %1955 = vmatpush.bf16.msrb.mxu2 %v5799_v55  ;;  %1969 = vmatpush.bf16.msrb.mxu3 %v5809_v4  ;;  %v6610_v55 = vld [vmem:[#allocation20_spill] sm:$0xff]  ;;  %v6611_v4 = vld [vmem:[#allocation21_spill] sm:$0xff] }
 0x210   :  { %1866 = vmatpush.bf16.msra.mxu0 %v3391_v50  ;;  %1880 = vmatpush.bf16.msra.mxu1 %v3395_v46 }
 0x212   :  { %1956 = vmatpush.bf16.msrb.mxu2 %v5825_v59  ;;  %1970 = vmatpush.bf16.msrb.mxu3 %v5832_v22  ;;  %v6612_v59 = vld [vmem:[#allocation22_spill] sm:$0xff]  ;;  %v6613_v22 = vld [vmem:[#allocation23_spill] sm:$0xff] }
 0x213   :  { %1867 = vmatmul.bf16.vlgmr.msra.gmra.mxu0 %v1777_v8  ;;  %1881 = vmatmul.bf16.vlgmr.msra.gmra.mxu1 %v1777_v8 }
 0x214   :  { %1921 = vmatpush.bf16.msrb.mxu0 %v5185_v26  ;;  %1935 = vmatpush.bf16.msrb.mxu1 %v5187_v54  ;;  %v6600_v26 = vld [vmem:[#allocation30_spill] sm:$0xff]  ;;  %v6601_v54 = vld [vmem:[#allocation31_spill] sm:$0xff] }
 0x215   :  { %1957 = vmatmul.bf16.vlgmr.msrb.gmra.mxu2 %v5872_v20  ;;  %1971 = vmatmul.bf16.vlgmr.msrb.gmra.mxu3 %v5872_v20  ;;  %v6622_v20 = vld [vmem:[#allocation51_spill] sm:$0xff] }
 0x216   :  { %2015 = vmatpush.bf16.msra.mxu2 %v5851_v28  ;;  %2029 = vmatpush.bf16.msra.mxu3 %v5853_v35  ;;  %v6615_v28 = vld [vmem:[#allocation42_spill] sm:$0xff]  ;;  %v6616_v35 = vld [vmem:[#allocation43_spill] sm:$0xff] }
 0x218   :  { %1922 = vmatpush.bf16.msrb.mxu0 %v5208_v11  ;;  %1936 = vmatpush.bf16.msrb.mxu1 %v5212_v56  ;;  %v6602_v11 = vld [vmem:[#allocation5_spill] sm:$0xff]  ;;  %v6603_v56 = vld [vmem:[#allocation6_spill] sm:$0xff] }
 0x21a   :  { %2016 = vmatpush.bf16.msra.mxu2 %v5876_v58  ;;  %2030 = vmatpush.bf16.msra.mxu3 %v5878_v39  ;;  %v6039_v58 = vpop.f32.mrf.mxu2  ;;  %v6041_v39 = vpop.f32.mrf.mxu3 }
 0x21c   :  { %1923 = vmatpush.bf16.msrb.mxu0 %v5228_v7  ;;  %1937 = vmatpush.bf16.msrb.mxu1 %v5231_v21  ;;  %v6604_v7 = vld [vmem:[#allocation9_spill] sm:$0xff]  ;;  %v6605_v21 = vld [vmem:[#allocation10_spill] sm:$0xff] }
 0x21e   :  { %2017 = vmatpush.bf16.msra.mxu2 %v5898_v5  ;;  %2031 = vmatpush.bf16.msra.mxu3 %v5900_v52 }
 0x220   :  { %1924 = vmatpush.bf16.msrb.mxu0 %v5246_v36  ;;  %1938 = vmatpush.bf16.msrb.mxu1 %v5249_v23  ;;  %v6606_v36 = vld [vmem:[#allocation13_spill] sm:$0xff]  ;;  %v6607_v23 = vld [vmem:[#allocation14_spill] sm:$0xff] }
 0x222   :  { %2018 = vmatpush.bf16.msra.mxu2 %v5918_v10  ;;  %2032 = vmatpush.bf16.msra.mxu3 %v5920_v1  ;;  %v6047_v15 = vpop.f32.mrf.mxu2  ;;  %v6049_v6 = vpop.f32.mrf.mxu3 }
 0x224   :  { %1925 = vmatpush.bf16.msrb.mxu0 %v5264_v61  ;;  %1939 = vmatpush.bf16.msrb.mxu1 %v6600_v26  ;;  %v6608_v61 = vld [vmem:[#allocation17_spill] sm:$0xff] }
 0x226   :  { %2019 = vmatpush.bf16.msra.mxu2 %v5939_v49  ;;  %2033 = vmatpush.bf16.msra.mxu3 %v5941_v3  ;;  %v3934_v49 = vld [vmem:[%s6302_s5 + $0x70] sm:$0xff] }
 0x228   :  { %1926 = vmatpush.bf16.msrb.mxu0 %v6601_v54  ;;  %1940 = vmatpush.bf16.msrb.mxu1 %v6602_v11 }
 0x22a   :  { %2020 = vmatpush.bf16.msra.mxu2 %v3407_v16  ;;  %2034 = vmatpush.bf16.msra.mxu3 %v3411_v19  ;;  %v3924_v16 = vld [vmem:[%s6302_s5 + $0x20] sm:$0xff]  ;;  %v3933_v19 = vld [vmem:[%s6302_s5 + $0x68] sm:$0xff] }
 0x22c   :  { %1927 = vmatpush.bf16.msrb.mxu0 %v6603_v56  ;;  %1941 = vmatpush.bf16.msrb.mxu1 %v6604_v7  ;;  %v3930_v7 = vld [vmem:[%s6302_s5 + $0x50] sm:$0xff] }
 0x22e   :  { %2021 = vmatpush.bf16.msra.mxu2 %v3399_v17  ;;  %2035 = vmatpush.bf16.msra.mxu3 %v3403_v63  ;;  %v3932_v63 = vld [vmem:[%s6302_s5 + $0x60] sm:$0xff] }
 0x230   :  { %1928 = vmatpush.bf16.msrb.mxu0 %v6605_v21  ;;  %1942 = vmatpush.bf16.msrb.mxu1 %v6606_v36  ;;  %v3941_v21 = vld [vmem:[%s6302_s5 + $0xa8] sm:$0xff] }
 0x231   :  { %v3949_v36 = vld [vmem:[%s6302_s5 + $0xe8] sm:$0xff] }
 0x232   :  { %2022 = vmatpush.bf16.msra.mxu2 %v3391_v50  ;;  %2036 = vmatpush.bf16.msra.mxu3 %v3395_v46  ;;  %v3942_v50 = vld [vmem:[%s6302_s5 + $0xb0] sm:$0xff] }
 0x233   :  { %1929 = vmatmul.bf16.vlgmr.msrb.gmra.mxu0 %v5858_v37  ;;  %1943 = vmatmul.bf16.vlgmr.msrb.gmra.mxu1 %v5858_v37  ;;  %v6618_v37 = vld [vmem:[#allocation47_spill] sm:$0xff] }
 0x234   :  { %1981 = vmatpush.bf16.msra.mxu0 %v6607_v23  ;;  %1995 = vmatpush.bf16.msra.mxu1 %v6608_v61  ;;  %v3950_v46 = vld [vmem:[%s6302_s5 + $0xf0] sm:$0xff]  ;;  %v3920_v23 = vld [vmem:[%s6302_s5] sm:$0xff]  ;;  %v3967_v61 = vld [vmem:[%s6302_s5 + $0x178] sm:$0xff] }
 0x235   :  { %2023 = vmatmul.bf16.vlgmr.msra.gmra.mxu2 %v2013_v32  ;;  %2037 = vmatmul.bf16.vlgmr.msra.gmra.mxu3 %v2013_v32  ;;  %v3929_v32 = vld [vmem:[%s6302_s5 + $0x48] sm:$0xff] }
 0x236   :  { %2296 = vmatpush.bf16.msrb.mxu2 %v3943_v51  ;;  %2377 = vmatpush.bf16.msrb.mxu3 %v3951_v60 }
 0x238   :  { %1982 = vmatpush.bf16.msra.mxu0 %v6609_v45  ;;  %1996 = vmatpush.bf16.msra.mxu1 %v6610_v55  ;;  %v3940_v45 = vld [vmem:[%s6302_s5 + $0xa0] sm:$0xff] }
 0x239   :  { %v3948_v55 = vld [vmem:[%s6302_s5 + $0xe0] sm:$0xff] }
 0x23a   :  { %2297 = vmatpush.bf16.msrb.mxu2 %v3942_v50  ;;  %2378 = vmatpush.bf16.msrb.mxu3 %v3950_v46 }
 0x23c   :  { %1983 = vmatpush.bf16.msra.mxu0 %v6611_v4  ;;  %1997 = vmatpush.bf16.msra.mxu1 %v6612_v59  ;;  %v3966_v4 = vld [vmem:[%s6302_s5 + $0x170] sm:$0xff]  ;;  %v3928_v59 = vld [vmem:[%s6302_s5 + $0x40] sm:$0xff] }
 0x23e   :  { %2298 = vmatpush.bf16.msrb.mxu2 %v3941_v21  ;;  %2379 = vmatpush.bf16.msrb.mxu3 %v3949_v36 }
 0x240   :  { %1984 = vmatpush.bf16.msra.mxu0 %v6613_v22  ;;  %1998 = vmatpush.bf16.msra.mxu1 %v6614_v42 }
 0x242   :  { %2299 = vmatpush.bf16.msrb.mxu2 %v3940_v45  ;;  %2380 = vmatpush.bf16.msrb.mxu3 %v3948_v55 }
 0x244   :  { %1985 = vmatpush.bf16.msra.mxu0 %v6615_v28  ;;  %1999 = vmatpush.bf16.msra.mxu1 %v6616_v35  ;;  %v3939_v28 = vld [vmem:[%s6302_s5 + $0x98] sm:$0xff] }
 0x245   :  { %v3947_v35 = vld [vmem:[%s6302_s5 + $0xd8] sm:$0xff] }
 0x246   :  { %2300 = vmatpush.bf16.msrb.mxu2 %v3939_v28  ;;  %2381 = vmatpush.bf16.msrb.mxu3 %v3947_v35  ;;  %v3954_v35 = vld [vmem:[%s6302_s5 + $0x110] sm:$0xff] }
 0x248   :  { %1986 = vmatpush.bf16.msra.mxu0 %v6617_v14  ;;  %2000 = vmatpush.bf16.msra.mxu1 %v6618_v37  ;;  %v3959_v14 = vld [vmem:[%s6302_s5 + $0x138] sm:$0xff] }
 0x24c   :  { %1987 = vmatpush.bf16.msra.mxu0 %v6619_v48  ;;  %2001 = vmatpush.bf16.msra.mxu1 %v6620_v13 }
 0x250   :  { %1988 = vmatpush.bf16.msra.mxu0 %v6621_v25  ;;  %2002 = vmatpush.bf16.msra.mxu1 %v6622_v20  ;;  %v3965_v20 = vld [vmem:[%s6302_s5 + $0x168] sm:$0xff] }
 0x253   :  { %1989 = vmatmul.bf16.vlgmr.msra.gmra.mxu0 %v1777_v8  ;;  %2003 = vmatmul.bf16.vlgmr.msra.gmra.mxu1 %v1777_v8  ;;  %v3921_v8 = vld [vmem:[%s6302_s5 + $0x8] sm:$0xff] }
 0x254   :  { %2216 = vmatpush.bf16.msrb.mxu1 %v3927_v12  ;;  %2155 = vmatpush.bf16.msrb.mxu0 %v3935_v43 }
 0x258   :  { %2217 = vmatpush.bf16.msrb.mxu1 %v3926_v34  ;;  %2156 = vmatpush.bf16.msrb.mxu0 %v3934_v49 }
 0x25c   :  { %2218 = vmatpush.bf16.msrb.mxu1 %v3925_v47  ;;  %2157 = vmatpush.bf16.msrb.mxu0 %v3933_v19  ;;  %v3937_v19 = vld [vmem:[%s6302_s5 + $0x88] sm:$0xff] }
 0x260   :  { %2219 = vmatpush.bf16.msrb.mxu1 %v3924_v16  ;;  %2158 = vmatpush.bf16.msrb.mxu0 %v3932_v63 }
 0x264   :  { %2220 = vmatpush.bf16.msrb.mxu1 %v3923_v41  ;;  %2159 = vmatpush.bf16.msrb.mxu0 %v3931_v9  ;;  %v3945_v41 = vld [vmem:[%s6302_s5 + $0xc8] sm:$0xff] }
 0x268   :  { %2221 = vmatpush.bf16.msrb.mxu1 %v3922_v44  ;;  %2160 = vmatpush.bf16.msrb.mxu0 %v3930_v7 }
 0x26c   :  { %2222 = vmatpush.bf16.msrb.mxu1 %v3921_v8  ;;  %2161 = vmatpush.bf16.msrb.mxu0 %v3929_v32  ;;  %v3963_v8 = vld [vmem:[%s6302_s5 + $0x158] sm:$0xff] }
 0x270   :  { %v6043_v27 = vpop.f32.mrf.mxu0  ;;  %v6045_v31 = vpop.f32.mrf.mxu1  ;;  %2223 = vmatpush.bf16.msrb.mxu1 %v3920_v23  ;;  %2162 = vmatpush.bf16.msrb.mxu0 %v3928_v59 }
 0x271   :  { %v1480_v37 = vadd.f32 %v6039_v58, %v6043_v27  ;;  %v1494_v25 = vadd.f32 %v6041_v39, %v6045_v31  ;;  %v3938_v39 = vld [vmem:[%s6302_s5 + $0x90] sm:$0xff] }
 0x272   :  { %v3946_v27 = vld [vmem:[%s6302_s5 + $0xd0] sm:$0xff]  ;;  %2301 = vmatpush.bf16.msrb.mxu2 %v3938_v39 }
 0x273   :  { %v3958_v31 = vld [vmem:[%s6302_s5 + $0x130] sm:$0xff]  ;;  %2382 = vmatpush.bf16.msrb.mxu3 %v3946_v27 }
 0x274   :  { %2540 = vmatpush.bf16.msra.mxu1 %v3967_v61  ;;  %2456 = vmatpush.bf16.msra.mxu0 %v3959_v14  ;;  %v3955_v61 = vld [vmem:[%s6302_s5 + $0x118] sm:$0xff] }
 0x276   :  { %2302 = vmatpush.bf16.msrb.mxu2 %v3937_v19 }
 0x277   :  { %2383 = vmatpush.bf16.msrb.mxu3 %v3945_v41 }
 0x278   :  { %v6051_v5 = vpop.f32.mrf.mxu0  ;;  %v6053_v52 = vpop.f32.mrf.mxu1  ;;  %2541 = vmatpush.bf16.msra.mxu1 %v3966_v4  ;;  %2457 = vmatpush.bf16.msra.mxu0 %v3958_v31 }
 0x279   :  { %v6055_v18 = vpop.f32.mrf.mxu2  ;;  %v6057_v53 = vpop.f32.mrf.mxu3  ;;  %v1496_v63 = vadd.f32 %v6049_v6, %v6053_v52 }
 0x27c   :  { %2542 = vmatpush.bf16.msra.mxu1 %v3965_v20  ;;  %v3953_v20 = vld [vmem:[%s6302_s5 + $0x108] sm:$0xff] }
 0x280   :  { %v6059_v40 = vpop.f32.mrf.mxu0  ;;  %v6061_v62 = vpop.f32.mrf.mxu1 }
 0x281   :  { %v6063_v10 = vpop.f32.mrf.mxu2  ;;  %v6065_v1 = vpop.f32.mrf.mxu3  ;;  %v1625_v12 = vadd.f32 %v6059_v40, %v1480_v37  ;;  %v1626_v43 = vadd.f32 %v6061_v62, %v1494_v25  ;;  %v3964_v40 = vld [vmem:[%s6302_s5 + $0x160] sm:$0xff] }
 0x282   :  { %2543 = vmatpush.bf16.msra.mxu1 %v3964_v40 }
 0x283   :  { %v1756_v62 = vadd.f32 %v6055_v18, %v1625_v12  ;;  %v1757_v49 = vadd.f32 %v6057_v53, %v1626_v43  ;;  %v3957_v18 = vld [vmem:[%s6302_s5 + $0x128] sm:$0xff]  ;;  %v1482_v53 = vadd.f32 %v6047_v15, %v6051_v5 }
 0x284   :  { %2458 = vmatpush.bf16.msra.mxu0 %v3957_v18 }
 0x286   :  { %2544 = vmatpush.bf16.msra.mxu1 %v3963_v8  ;;  %v3971_v8 = vld [vmem:[%s6304_s7 + $0x18] sm:$0xff] }
 0x288   :  { %v6067_v30 = vpop.f32.mrf.mxu0  ;;  %v6069_v33 = vpop.f32.mrf.mxu1 }
 0x289   :  { %v6083_v3 = vpop.f32.mrf.mxu2  ;;  %v6085_v57 = vpop.f32.mrf.mxu3  ;;  %v1628_v15 = vadd.f32 %v6069_v33, %v1496_v63 }
 0x28b   :  { %v1759_v7 = vadd.f32 %v6065_v1, %v1628_v15  ;;  %v3969_v15 = vld [vmem:[%s6304_s7 + $0x8] sm:$0xff] }
 0x290   :  { %v6090_v24 = vpop.f32.mrf.mxu0  ;;  %v6092_v29 = vpop.f32.mrf.mxu1 }
 0x291   :  { %v6100_v38 = vpop.f32.mrf.mxu2  ;;  %v6102_v0 = vpop.f32.mrf.mxu3  ;;  %v1887_v51 = vadd.f32 %v6090_v24, %v1756_v62  ;;  %v1888_v9 = vadd.f32 %v6092_v29, %v1757_v49  ;;  %v3936_v29 = vld [vmem:[%s6302_s5 + $0x80] sm:$0xff] }
 0x292   :  { %2303 = vmatpush.bf16.msrb.mxu2 %v3936_v29 }
 0x293   :  { %v1891_v33 = vmax.f32 %v1887_v51, %v1888_v9  ;;  %v3974_v9 = vld [vmem:[%s6304_s7 + $0x30] sm:$0xff] }
 0x298   :  { %v6107_v2 = vpop.f32.mrf.mxu0  ;;  %v6109_v17 = vpop.f32.mrf.mxu1 }
 0x299   :  { %v1958_v26 = vpop.f32.mrf.mxu2  ;;  %v1972_v54 = vpop.f32.mrf.mxu3  ;;  %v1890_v1 = vadd.f32 %v6109_v17, %v1759_v7 }
 0x2a1   :  { %v6165_v22 = vpop.f32.mrf.mxu2  ;;  %v6167_v42 = vpop.f32.mrf.mxu3 }
 0x2b0   :  { %v1930_v11 = vpop.f32.mrf.mxu0  ;;  %v1944_v56 = vpop.f32.mrf.mxu1 }
 0x2b1   :  { %v1931_v34 = vadd.f32 %v1930_v11, %v6083_v3  ;;  %v1945_v58 = vadd.f32 %v1944_v56, %v6085_v57 }
 0x2b3   :  { %v1977_v47 = vadd.f32 %v1958_v26, %v1931_v34  ;;  %v1978_v16 = vadd.f32 %v1972_v54, %v1945_v58  ;;  %v1627_v26 = vadd.f32 %v6067_v30, %v1482_v53  ;;  %v3944_v54 = vld [vmem:[%s6302_s5 + $0xc0] sm:$0xff] }
 0x2b4   :  { %v3956_v30 = vld [vmem:[%s6302_s5 + $0x120] sm:$0xff]  ;;  %2384 = vmatpush.bf16.msrb.mxu3 %v3944_v54 }
 0x2b5   :  { %v1758_v56 = vadd.f32 %v6063_v10, %v1627_v26  ;;  %2459 = vmatpush.bf16.msra.mxu0 %v3956_v30  ;;  %v3961_v10 = vld [vmem:[%s6302_s5 + $0x148] sm:$0xff]  ;;  %v3952_v34 = vld [vmem:[%s6302_s5 + $0x100] sm:$0xff]  ;;  %v3970_v26 = vld [vmem:[%s6304_s7 + $0x10] sm:$0xff] }
 0x2b7   :  { %v1889_v32 = vadd.f32 %v6107_v2, %v1758_v56 }
 0x2b8   :  { %v1932_v48 = vpop.f32.mrf.mxu0  ;;  %v1946_v13 = vpop.f32.mrf.mxu1 }
 0x2b9   :  { %v2024_v3 = vpop.f32.mrf.mxu2  ;;  %v2038_v57 = vpop.f32.mrf.mxu3  ;;  %v1933_v6 = vadd.f32 %v1932_v48, %v6100_v38  ;;  %v1947_v5 = vadd.f32 %v1946_v13, %v6102_v0  ;;  %v3978_v38 = vld [vmem:[%s6301_s4] ss:$0 sm:$0xff]  ;;  %v3962_v0 = vld [vmem:[%s6302_s5 + $0x150] sm:$0xff]  ;;  %2460 = vmatpush.bf16.msra.mxu0 %v3955_v61  ;;  %v1892_v13 = vmax.f32 %v1889_v32, %v1890_v1 }
 0x2ba   :  { %2545 = vmatpush.bf16.msra.mxu1 %v3962_v0  ;;  %v3960_v48 = vld [vmem:[%s6302_s5 + $0x140] sm:$0xff] }
 0x2bb   :  { %v1979_v36 = vadd.f32 %v6165_v22, %v1933_v6  ;;  %v1980_v23 = vadd.f32 %v6167_v42, %v1947_v5  ;;  %v3968_v6 = vld [vmem:[%s6304_s7] sm:$0xff] }
 0x2bd   :  { %2461 = vmatpush.bf16.msra.mxu0 %v3954_v35 }
 0x2be   :  { %2546 = vmatpush.bf16.msra.mxu1 %v3961_v10 }
 0x2c1   :  { %v2026_v28 = vpop.f32.mrf.mxu2  ;;  %v2040_v42 = vpop.f32.mrf.mxu3  ;;  %2462 = vmatpush.bf16.msra.mxu0 %v3953_v20 }
 0x2c2   :  { %2547 = vmatpush.bf16.msra.mxu1 %v3960_v48 }
 0x2c5   :  { %2463 = vmatpush.bf16.msra.mxu0 %v3952_v34 }
 0x2d0   :  { %v1990_v60 = vpop.f32.mrf.mxu0  ;;  %v2004_v44 = vpop.f32.mrf.mxu1 }
 0x2d1   :  { %v2009_v50 = vadd.f32 %v1990_v60, %v1977_v47  ;;  %v2010_v46 = vadd.f32 %v2004_v44, %v1978_v16  ;;  %v3975_v44 = vld [vmem:[%s6304_s7 + $0x38] sm:$0xff] }
 0x2d2   :  { %2629 = vmatpush.bf16.msra.mxu2 %v3975_v44 }
 0x2d3   :  { %v2043_v52 = vadd.f32 %v2024_v3, %v2009_v50  ;;  %v2044_v24 = vadd.f32 %v2038_v57, %v2010_v46  ;;  %v3973_v50 = vld [vmem:[%s6304_s7 + $0x28] sm:$0xff]  ;;  %v3972_v46 = vld [vmem:[%s6304_s7 + $0x20] sm:$0xff] }
 0x2d5   :  { %v2047_v11 = vmax.f32 %v2043_v52, %v2044_v24 }
 0x2d6   :  { %2630 = vmatpush.bf16.msra.mxu2 %v3974_v9 }
 0x2d7   :  { %v2049_v21 = vmax.f32 %v1891_v33, %v2047_v11 }
 0x2d8   :  { %v1992_v45 = vpop.f32.mrf.mxu0  ;;  %v2006_v55 = vpop.f32.mrf.mxu1 }
 0x2d9   :  { %v2055_v4 = vadd.f32 %v3978_v38, %v2049_v21  ;;  %v2011_v59 = vadd.f32 %v1992_v45, %v1979_v36  ;;  %v2012_v22 = vadd.f32 %v2006_v55, %v1980_v23  ;;  %v3979_v23 = vld [vmem:[%s6303_s6] ss:$0 sm:$0xff] }
 0x2da   :  { %2631 = vmatpush.bf16.msra.mxu2 %v3973_v50 }
 0x2db   :  { %v2057_v14 = vsub.f32 0.0, %v2055_v4  ;;  %v2045_v2 = vadd.f32 %v2026_v28, %v2011_v59  ;;  %v2046_v37 = vadd.f32 %v2040_v42, %v2012_v22  ;;  %v3980_v4 = vld [vmem:[%s6305_s8] ss:$0 sm:$0xff] }
 0x2dd   :  { %v2059_v17 = vmul.f32 1.442695, %v2057_v14  ;;  %v2048_v25 = vmax.f32 %v2045_v2, %v2046_v37 }
 0x2de   :  { %2632 = vmatpush.bf16.msra.mxu2 %v3972_v46 }
 0x2df   :  { %3997 = vpow2.f32 %v2059_v17  ;;  %v2050_v12 = vmax.f32 %v1892_v13, %v2048_v25 }
 0x2e1   :  { %v2056_v43 = vadd.f32 %v3978_v38, %v2050_v12 }
 0x2e2   :  { %2633 = vmatpush.bf16.msra.mxu2 %v3971_v8 }
 0x2e3   :  { %v2058_v58 = vsub.f32 0.0, %v2056_v43 }
 0x2e5   :  { %v3998_v39 = vpop.eup %3997  ;;  %v2061_v27 = vmul.f32 1.442695, %v2058_v58 }
 0x2e6   :  { %v2063_v31 = vadd.f32 1.0, %v3998_v39  ;;  %2634 = vmatpush.bf16.msra.mxu2 %v3970_v26 }
 0x2e7   :  { %3999 = vpow2.f32 %v2061_v27 }
 0x2e8   :  { %4001 = vrcp.f32 %v2063_v31 }
 0x2ea   :  { %2635 = vmatpush.bf16.msra.mxu2 %v3969_v15 }
 0x2ed   :  { %v4000_v40 = vpop.eup %3999 }
 0x2ee   :  { %v4002_v62 = vpop.eup %4001  ;;  %v2064_v49 = vadd.f32 1.0, %v4000_v40  ;;  %2636 = vmatpush.bf16.msra.mxu2 %v3968_v6 }
 0x2ef   :  { %v2067_v3 = vpack.c.bf16 %v4002_v62, %v4002_v62 }
 0x2f0   :  { %4003 = vrcp.f32 %v2064_v49 }
 0x2f1   :  { %v2103_v57 = vunpack.c.l.b16 %v2067_v3  ;;  %2224 = vmatmul.bf16.vlgmr.msrb.gmra.mxu1 %v2067_v3 }
 0x2f3   :  { %v2104_v47 = vpack.c.b16 %v2103_v57, %v2103_v57 }
 0x2f5   :  { %v2105_v16 = vrot.slane %v2104_v47, 1  ;;  %v2246_v19 = vrot.slane %v2104_v47, 2  ;;  %v2327_v41 = vrot.slane %v2104_v47, 3 }
 0x2f6   :  { %v4004_v18 = vpop.eup %4003 }
 0x2f7   :  { %v2068_v53 = vpack.c.bf16 %v4004_v18, %v4004_v18  ;;  %2163 = vmatmul.bf16.vlgmr.msrb.gmra.mxu0 %v2105_v16  ;;  %2304 = vmatmul.bf16.vlgmr.msrb.gmra.mxu2 %v2246_v19 }
 0x2f8   :  { %2385 = vmatmul.bf16.vlgmr.msrb.gmra.mxu3 %v2327_v41 }
 0x2f9   :  { %v2488_v63 = vunpack.c.l.b16 %v2068_v53 }
 0x2fb   :  { %v2489_v51 = vpack.c.b16 %v2488_v63, %v2488_v63 }
 0x2fd   :  { %v2490_v60 = vrot.slane %v2489_v51, 1 }
 0x301   :  { %2548 = vmatmul.bf16.vlgmr.msra.gmra.mxu1 %v2490_v60 }
 0x307   :  { %2464 = vmatmul.bf16.vlgmr.msra.gmra.mxu0 %v2068_v53 }
 0x36e   :  { %v2225_v5 = vpop.f32.mrf.mxu1 }
 0x374   :  { %v2164_v52 = vpop.f32.mrf.mxu0 }
 0x375   :  { %v2226_v33 = vadd.f32 %v2225_v5, %v2164_v52 }
 0x376   :  { %v2227_v24 = vpop.f32.mrf.mxu1 }
 0x37a   :  { %v2305_v29 = vpop.f32.mrf.mxu2 }
 0x37b   :  { %v2386_v54 = vpop.f32.mrf.mxu3  ;;  %v2309_v38 = vadd.f32 %v2305_v29, %v2226_v33 }
 0x37c   :  { %v2166_v30 = vpop.f32.mrf.mxu0 }
 0x37d   :  { %v2390_v56 = vadd.f32 %v2386_v54, %v2309_v38 }
 0x37e   :  { %v2549_v11 = vpop.f32.mrf.mxu1 }
 0x382   :  { %v2307_v0 = vpop.f32.mrf.mxu2 }
 0x383   :  { %v2388_v7 = vpop.f32.mrf.mxu3 }
 0x384   :  { %v2465_v21 = vpop.f32.mrf.mxu0 }
 0x385   :  { %v2469_v36 = vadd.f32 %v2465_v21, %v2390_v56 }
 0x386   :  { %v2551_v61 = vpop.f32.mrf.mxu1 }
 0x387   :  { %v2553_v32 = vadd.f32 %v2549_v11, %v2469_v36 }
 0x389   :  { %v2558_v45 = vadd.f32 %v3979_v23, %v2553_v32 }
 0x38b   :  { %v2559_v55 = vmax.f32 %v2558_v45, 0.0 }
 0x38c   :  { %v2467_v10 = vpop.f32.mrf.mxu0 }
 0x38d   :  { %v2560_v1 = vpack.c.bf16 %v2559_v55, %v2559_v55 }
 0x38f   :  { %2637 = vmatmul.bf16.vlgmr.msra.gmra.mxu2 %v2560_v1 }
 0x412   :  { %v2638_v59 = vpop.f32.mrf.mxu2 }
 0x413   :  { %v2639_v22 = vadd.f32 %v3980_v4, %v2638_v59 }
 0x415   :  { %2642 = vst [vmem:[#allocation2] sm:$0x3] %v2639_v22 }
 0x416   :  { %2653 = dma.vmem_to_hbm [thread:$0]  %s2649_s0, 32, %s2651_s30, [#allocation3]  }
 0x41a   :  { %v2640_v28 = vpop.f32.mrf.mxu2 }
 0x41b   :  { %4029 = dma.done.wait [#allocation3], 32  }
 0x41c   :  { %4030 = vsyncadd [#allocation3], 4294967264 }
 0x41d   :  { %2658 = vsyncpa [#allocation3], 1 }

</bundles_post_ra>
